<compile_context>
chip_gen: v6e
topology: v6e:2x2x1
jax: 0.10.0
libtpu: 0.0.40
codegen_flags: <defaults>
</compile_context>

<pallas_src>
import jax
import jax.numpy as jnp
from jax.experimental import pallas as pl
from jax.experimental.pallas import tpu as pltpu

HIDDEN = 600
IN_FEATURES = 6
NUM_OUTPUT_FEATURES = 110 - 3   # 110 - X_CUR.shape[1]
OUT_PAD = 128                    # lane-dense padded output width


# ----------------------------- Pallas kernel ------------------------------- #
def _lstm_service_kernel(x_ref, w1_ref, b1_ref, w2_ref, b2_ref,
                         wl_ref, bl_ref, out_ref):
    """3 zero-state LSTM cells (f-gate elided) + padded Linear, one program.

    w*_ref: (3, in, H) bf16, gate order [input, cell, output]
    b*_ref: (3, 1, H)  f32  (b_ih + b_hh fused)
    wl_ref: (H, 128)   bf16, bl_ref: (1, 128) f32
    """

    def cell(inp_f32, w_ref, b_ref):
        # bf16 only at the MXU inputs; accumulate + activate in f32.
        inp = inp_f32.astype(jnp.bfloat16)

        def gate(k):
            return (jnp.dot(inp, w_ref[k], preferred_element_type=jnp.float32)
                    + b_ref[k])

        i = jax.nn.sigmoid(gate(0))   # input gate
        g = jnp.tanh(gate(1))         # cell gate
        o = jax.nn.sigmoid(gate(2))   # output gate
        # c' = i*g (f*c0 == 0), h' = o*tanh(c')
        return o * jnp.tanh(i * g)

    x = x_ref[...]                                   # (B, 6) f32
    h1 = cell(x,  w1_ref, b1_ref)
    h2 = cell(h1, w2_ref, b2_ref)
    # NOTE: the reference forward calls self.lstm2 again here (not lstm3).
    h3 = cell(h2, w2_ref, b2_ref)

    out_ref[...] = (jnp.dot(h3.astype(jnp.bfloat16), wl_ref[...],
                            preferred_element_type=jnp.float32)
                    + bl_ref[...])                   # (B, 128) f32


# ------------------------------ Param prep --------------------------------- #
def init_params(key, hidden=HIDDEN):
    """Deterministic synthetic params matching torch module shapes/init style."""
    ks = jax.random.split(key, 16)
    bound = 1.0 / jnp.sqrt(jnp.float32(hidden))

    def u(k, shape):
        return jax.random.uniform(k, shape, jnp.float32, -bound, bound)

    return {
        "lstm1": dict(w_ih=u(ks[0], (4 * hidden, IN_FEATURES)),
                      w_hh=u(ks[1], (4 * hidden, hidden)),
                      b_ih=u(ks[2], (4 * hidden,)),
                      b_hh=u(ks[3], (4 * hidden,))),
        "lstm2": dict(w_ih=u(ks[4], (4 * hidden, hidden)),
                      w_hh=u(ks[5], (4 * hidden, hidden)),
                      b_ih=u(ks[6], (4 * hidden,)),
                      b_hh=u(ks[7], (4 * hidden,))),
        # lstm3 exists in the module but is never used by forward.
        "lstm3": dict(w_ih=u(ks[8], (4 * hidden, hidden)),
                      w_hh=u(ks[9], (4 * hidden, hidden)),
                      b_ih=u(ks[10], (4 * hidden,)),
                      b_hh=u(ks[11], (4 * hidden,))),
        "linear": dict(w=u(ks[12], (NUM_OUTPUT_FEATURES, hidden)),
                       b=u(ks[13], (NUM_OUTPUT_FEATURES,))),
    }


def prepare_params(params, hidden=HIDDEN):
    """One-time: transpose, fuse biases, drop f-gate, stack gates, cast to bf16."""
    H = hidden
    gate_idx = (0, 2, 3)   # torch LSTM slab order is (i, f, g, o); f is dead (c0==0)

    def stacked(cell_p):
        w = cell_p["w_ih"]                            # (4H, in)
        b = cell_p["b_ih"] + cell_p["b_hh"]           # (4H,)  exact since h0 == 0
        w_st = jnp.stack(
            [w[k * H:(k + 1) * H, :].T for k in gate_idx]).astype(jnp.bfloat16)
        b_st = jnp.stack(
            [b[k * H:(k + 1) * H][None, :] for k in gate_idx]).astype(jnp.float32)
        return w_st, b_st                             # (3, in, H), (3, 1, H)

    w1, b1 = stacked(params["lstm1"])
    w2, b2 = stacked(params["lstm2"])

    pad = OUT_PAD - NUM_OUTPUT_FEATURES
    wl = jnp.pad(params["linear"]["w"].T.astype(jnp.bfloat16),
                 ((0, 0), (0, pad)))                                 # (H, 128)
    bl = jnp.pad(params["linear"]["b"][None, :].astype(jnp.float32),
                 ((0, 0), (0, pad)))                                 # (1, 128)

    return dict(w1=jax.device_put(w1), b1=jax.device_put(b1),
                w2=jax.device_put(w2), b2=jax.device_put(b2),
                wl=jax.device_put(wl), bl=jax.device_put(bl))


# ------------------------------ Forward call -------------------------------- #
def lstm_service_forward(y, prepped):
    """Mirrors LstmServiceModel.forward; `prepped` comes from prepare_params."""
    y = jnp.asarray(y, jnp.float32)
    if y.ndim != 3:
        y = y[None, ...]              # np.expand_dims(y, axis=0)
    x = y[0]                          # (batch, 6) — only the first step is used
    B = x.shape[0]

    vmem = pl.BlockSpec(memory_space=pltpu.MemorySpace.VMEM)
    args = (x, prepped["w1"], prepped["b1"], prepped["w2"], prepped["b2"],
            prepped["wl"], prepped["bl"])

    out_padded = pl.pallas_call(
        _lstm_service_kernel,
        out_shape=jax.ShapeDtypeStruct((B, OUT_PAD), jnp.float32),
        in_specs=[vmem] * len(args),
        out_specs=vmem,
    )(*args)
    return out_padded[:, :NUM_OUTPUT_FEATURES]


# ------------------------------ f32 reference ------------------------------- #
def _reference_forward(y, params):
    """Pure-JAX f32 reference mirroring torch semantics."""
    y = jnp.asarray(y, jnp.float32)
    if y.ndim != 3:
        y = y[None, ...]
    x = y[0]

    def cell(inp, p):
        gates = inp @ p["w_ih"].T + p["b_ih"] + p["b_hh"]
        i, f, g, o = jnp.split(gates, 4, axis=-1)
        c = jax.nn.sigmoid(i) * jnp.tanh(g)
        return jax.nn.sigmoid(o) * jnp.tanh(c)

    h1 = cell(x, params["lstm1"])
    h2 = cell(h1, params["lstm2"])
    h3 = cell(h2, params["lstm2"])     # lstm2 reused, as in the torch forward
    return h3 @ params["linear"]["w"].T + params["linear"]["b"]


if __name__ == "__main__":
    key = jax.random.PRNGKey(0)
    k_param, k_y = jax.random.split(key)

    params = init_params(k_param, HIDDEN)
    prepped = prepare_params(params, HIDDEN)   # one-time, outside the hot path

    # y: (seq=8, batch=2, features=6); forward consumes only y[0].
    y = jax.random.normal(k_y, (8, 2, IN_FEATURES), jnp.float32)

    out = jax.block_until_ready(lstm_service_forward(y, prepped))
    ref = jax.block_until_ready(_reference_forward(y, params))

    assert out.shape == (2, NUM_OUTPUT_FEATURES)
    # bf16 weight storage -> relaxed tolerance vs. the f32 reference.
    max_err = float(jnp.max(jnp.abs(out - ref)))
    assert max_err < 5e-2, f"max abs error {max_err}"

    print("KERNEL_OK")
</pallas_src>

<mosaic_0001>
module attributes {stable_mosaic.version = 11 : i64} {
  func.func @_lstm_service_kernel(%arg0: memref<2x6xf32, #tpu.memory_space<vmem>>, %arg1: memref<3x6x600xbf16, #tpu.memory_space<vmem>>, %arg2: memref<3x1x600xf32, #tpu.memory_space<vmem>>, %arg3: memref<3x600x600xbf16, #tpu.memory_space<vmem>>, %arg4: memref<3x1x600xf32, #tpu.memory_space<vmem>>, %arg5: memref<600x128xbf16, #tpu.memory_space<vmem>>, %arg6: memref<1x128xf32, #tpu.memory_space<vmem>>, %arg7: memref<2x128xf32, #tpu.memory_space<vmem>>) attributes {dimension_semantics = [], scalar_prefetch = 0 : i64, scratch_operands = 0 : i64, tpu.core_type = #tpu.core_type<tc>} {
    %c0 = arith.constant 0 : index
    %c0_0 = arith.constant 0 : index
    %0 = vector.load %arg0[%c0, %c0_0] : memref<2x6xf32, #tpu.memory_space<vmem>>, vector<2x6xf32>
    %1 = arith.truncf %0 : vector<2x6xf32> to vector<2x6xbf16>
    %c0_1 = arith.constant 0 : index
    %c0_2 = arith.constant 0 : index
    %c0_3 = arith.constant 0 : index
    %2 = vector.load %arg1[%c0_1, %c0_2, %c0_3] : memref<3x6x600xbf16, #tpu.memory_space<vmem>>, vector<1x6x600xbf16>
    %3 = vector.shape_cast %2 : vector<1x6x600xbf16> to vector<6x600xbf16>
    %cst = arith.constant dense<0.000000e+00> : vector<2x600xf32>
    %4 = tpu.matmul %1, %3, %cst {dimension_numbers = #tpu.dot_dimension_numbers<[1], [0], [0], [1], [0, 0, 1, 1], [], []>} : vector<2x6xbf16>, vector<6x600xbf16>, vector<2x600xf32> -> vector<2x600xf32>
    %c0_4 = arith.constant 0 : index
    %c0_5 = arith.constant 0 : index
    %c0_6 = arith.constant 0 : index
    %5 = vector.load %arg2[%c0_4, %c0_5, %c0_6] : memref<3x1x600xf32, #tpu.memory_space<vmem>>, vector<1x1x600xf32>
    %6 = vector.shape_cast %5 : vector<1x1x600xf32> to vector<1x600xf32>
    %7 = vector.broadcast %6 : vector<1x600xf32> to vector<2x600xf32>
    %8 = arith.addf %4, %7 : vector<2x600xf32>
    %9 = arith.negf %8 : vector<2x600xf32>
    %10 = math.exp %9 : vector<2x600xf32>
    %cst_7 = arith.constant 1.000000e+00 : f32
    %11 = vector.broadcast %cst_7 : f32 to vector<2x600xf32>
    %12 = arith.addf %11, %10 : vector<2x600xf32>
    %13 = arith.divf %11, %12 : vector<2x600xf32>
    %c1 = arith.constant 1 : index
    %c0_8 = arith.constant 0 : index
    %c0_9 = arith.constant 0 : index
    %14 = vector.load %arg1[%c1, %c0_8, %c0_9] : memref<3x6x600xbf16, #tpu.memory_space<vmem>>, vector<1x6x600xbf16>
    %15 = vector.shape_cast %14 : vector<1x6x600xbf16> to vector<6x600xbf16>
    %cst_10 = arith.constant dense<0.000000e+00> : vector<2x600xf32>
    %16 = tpu.matmul %1, %15, %cst_10 {dimension_numbers = #tpu.dot_dimension_numbers<[1], [0], [0], [1], [0, 0, 1, 1], [], []>} : vector<2x6xbf16>, vector<6x600xbf16>, vector<2x600xf32> -> vector<2x600xf32>
    %c1_11 = arith.constant 1 : index
    %c0_12 = arith.constant 0 : index
    %c0_13 = arith.constant 0 : index
    %17 = vector.load %arg2[%c1_11, %c0_12, %c0_13] : memref<3x1x600xf32, #tpu.memory_space<vmem>>, vector<1x1x600xf32>
    %18 = vector.shape_cast %17 : vector<1x1x600xf32> to vector<1x600xf32>
    %19 = vector.broadcast %18 : vector<1x600xf32> to vector<2x600xf32>
    %20 = arith.addf %16, %19 : vector<2x600xf32>
    %21 = math.tanh %20 : vector<2x600xf32>
    %c2 = arith.constant 2 : index
    %c0_14 = arith.constant 0 : index
    %c0_15 = arith.constant 0 : index
    %22 = vector.load %arg1[%c2, %c0_14, %c0_15] : memref<3x6x600xbf16, #tpu.memory_space<vmem>>, vector<1x6x600xbf16>
    %23 = vector.shape_cast %22 : vector<1x6x600xbf16> to vector<6x600xbf16>
    %cst_16 = arith.constant dense<0.000000e+00> : vector<2x600xf32>
    %24 = tpu.matmul %1, %23, %cst_16 {dimension_numbers = #tpu.dot_dimension_numbers<[1], [0], [0], [1], [0, 0, 1, 1], [], []>} : vector<2x6xbf16>, vector<6x600xbf16>, vector<2x600xf32> -> vector<2x600xf32>
    %c2_17 = arith.constant 2 : index
    %c0_18 = arith.constant 0 : index
    %c0_19 = arith.constant 0 : index
    %25 = vector.load %arg2[%c2_17, %c0_18, %c0_19] : memref<3x1x600xf32, #tpu.memory_space<vmem>>, vector<1x1x600xf32>
    %26 = vector.shape_cast %25 : vector<1x1x600xf32> to vector<1x600xf32>
    %27 = vector.broadcast %26 : vector<1x600xf32> to vector<2x600xf32>
    %28 = arith.addf %24, %27 : vector<2x600xf32>
    %29 = arith.negf %28 : vector<2x600xf32>
    %30 = math.exp %29 : vector<2x600xf32>
    %cst_20 = arith.constant 1.000000e+00 : f32
    %31 = vector.broadcast %cst_20 : f32 to vector<2x600xf32>
    %32 = arith.addf %31, %30 : vector<2x600xf32>
    %33 = arith.divf %31, %32 : vector<2x600xf32>
    %34 = arith.mulf %13, %21 : vector<2x600xf32>
    %35 = math.tanh %34 : vector<2x600xf32>
    %36 = arith.mulf %33, %35 : vector<2x600xf32>
    %37 = arith.truncf %36 : vector<2x600xf32> to vector<2x600xbf16>
    %c0_21 = arith.constant 0 : index
    %c0_22 = arith.constant 0 : index
    %c0_23 = arith.constant 0 : index
    %38 = vector.load %arg3[%c0_21, %c0_22, %c0_23] : memref<3x600x600xbf16, #tpu.memory_space<vmem>>, vector<1x600x600xbf16>
    %39 = vector.shape_cast %38 : vector<1x600x600xbf16> to vector<600x600xbf16>
    %cst_24 = arith.constant dense<0.000000e+00> : vector<2x600xf32>
    %40 = tpu.matmul %37, %39, %cst_24 {dimension_numbers = #tpu.dot_dimension_numbers<[1], [0], [0], [1], [0, 0, 1, 1], [], []>} : vector<2x600xbf16>, vector<600x600xbf16>, vector<2x600xf32> -> vector<2x600xf32>
    %c0_25 = arith.constant 0 : index
    %c0_26 = arith.constant 0 : index
    %c0_27 = arith.constant 0 : index
    %41 = vector.load %arg4[%c0_25, %c0_26, %c0_27] : memref<3x1x600xf32, #tpu.memory_space<vmem>>, vector<1x1x600xf32>
    %42 = vector.shape_cast %41 : vector<1x1x600xf32> to vector<1x600xf32>
    %43 = vector.broadcast %42 : vector<1x600xf32> to vector<2x600xf32>
    %44 = arith.addf %40, %43 : vector<2x600xf32>
    %45 = arith.negf %44 : vector<2x600xf32>
    %46 = math.exp %45 : vector<2x600xf32>
    %cst_28 = arith.constant 1.000000e+00 : f32
    %47 = vector.broadcast %cst_28 : f32 to vector<2x600xf32>
    %48 = arith.addf %47, %46 : vector<2x600xf32>
    %49 = arith.divf %47, %48 : vector<2x600xf32>
    %c1_29 = arith.constant 1 : index
    %c0_30 = arith.constant 0 : index
    %c0_31 = arith.constant 0 : index
    %50 = vector.load %arg3[%c1_29, %c0_30, %c0_31] : memref<3x600x600xbf16, #tpu.memory_space<vmem>>, vector<1x600x600xbf16>
    %51 = vector.shape_cast %50 : vector<1x600x600xbf16> to vector<600x600xbf16>
    %cst_32 = arith.constant dense<0.000000e+00> : vector<2x600xf32>
    %52 = tpu.matmul %37, %51, %cst_32 {dimension_numbers = #tpu.dot_dimension_numbers<[1], [0], [0], [1], [0, 0, 1, 1], [], []>} : vector<2x600xbf16>, vector<600x600xbf16>, vector<2x600xf32> -> vector<2x600xf32>
    %c1_33 = arith.constant 1 : index
    %c0_34 = arith.constant 0 : index
    %c0_35 = arith.constant 0 : index
    %53 = vector.load %arg4[%c1_33, %c0_34, %c0_35] : memref<3x1x600xf32, #tpu.memory_space<vmem>>, vector<1x1x600xf32>
    %54 = vector.shape_cast %53 : vector<1x1x600xf32> to vector<1x600xf32>
    %55 = vector.broadcast %54 : vector<1x600xf32> to vector<2x600xf32>
    %56 = arith.addf %52, %55 : vector<2x600xf32>
    %57 = math.tanh %56 : vector<2x600xf32>
    %c2_36 = arith.constant 2 : index
    %c0_37 = arith.constant 0 : index
    %c0_38 = arith.constant 0 : index
    %58 = vector.load %arg3[%c2_36, %c0_37, %c0_38] : memref<3x600x600xbf16, #tpu.memory_space<vmem>>, vector<1x600x600xbf16>
    %59 = vector.shape_cast %58 : vector<1x600x600xbf16> to vector<600x600xbf16>
    %cst_39 = arith.constant dense<0.000000e+00> : vector<2x600xf32>
    %60 = tpu.matmul %37, %59, %cst_39 {dimension_numbers = #tpu.dot_dimension_numbers<[1], [0], [0], [1], [0, 0, 1, 1], [], []>} : vector<2x600xbf16>, vector<600x600xbf16>, vector<2x600xf32> -> vector<2x600xf32>
    %c2_40 = arith.constant 2 : index
    %c0_41 = arith.constant 0 : index
    %c0_42 = arith.constant 0 : index
    %61 = vector.load %arg4[%c2_40, %c0_41, %c0_42] : memref<3x1x600xf32, #tpu.memory_space<vmem>>, vector<1x1x600xf32>
    %62 = vector.shape_cast %61 : vector<1x1x600xf32> to vector<1x600xf32>
    %63 = vector.broadcast %62 : vector<1x600xf32> to vector<2x600xf32>
    %64 = arith.addf %60, %63 : vector<2x600xf32>
    %65 = arith.negf %64 : vector<2x600xf32>
    %66 = math.exp %65 : vector<2x600xf32>
    %cst_43 = arith.constant 1.000000e+00 : f32
    %67 = vector.broadcast %cst_43 : f32 to vector<2x600xf32>
    %68 = arith.addf %67, %66 : vector<2x600xf32>
    %69 = arith.divf %67, %68 : vector<2x600xf32>
    %70 = arith.mulf %49, %57 : vector<2x600xf32>
    %71 = math.tanh %70 : vector<2x600xf32>
    %72 = arith.mulf %69, %71 : vector<2x600xf32>
    %73 = arith.truncf %72 : vector<2x600xf32> to vector<2x600xbf16>
    %c0_44 = arith.constant 0 : index
    %c0_45 = arith.constant 0 : index
    %c0_46 = arith.constant 0 : index
    %74 = vector.load %arg3[%c0_44, %c0_45, %c0_46] : memref<3x600x600xbf16, #tpu.memory_space<vmem>>, vector<1x600x600xbf16>
    %75 = vector.shape_cast %74 : vector<1x600x600xbf16> to vector<600x600xbf16>
    %cst_47 = arith.constant dense<0.000000e+00> : vector<2x600xf32>
    %76 = tpu.matmul %73, %75, %cst_47 {dimension_numbers = #tpu.dot_dimension_numbers<[1], [0], [0], [1], [0, 0, 1, 1], [], []>} : vector<2x600xbf16>, vector<600x600xbf16>, vector<2x600xf32> -> vector<2x600xf32>
    %c0_48 = arith.constant 0 : index
    %c0_49 = arith.constant 0 : index
    %c0_50 = arith.constant 0 : index
    %77 = vector.load %arg4[%c0_48, %c0_49, %c0_50] : memref<3x1x600xf32, #tpu.memory_space<vmem>>, vector<1x1x600xf32>
    %78 = vector.shape_cast %77 : vector<1x1x600xf32> to vector<1x600xf32>
    %79 = vector.broadcast %78 : vector<1x600xf32> to vector<2x600xf32>
    %80 = arith.addf %76, %79 : vector<2x600xf32>
    %81 = arith.negf %80 : vector<2x600xf32>
    %82 = math.exp %81 : vector<2x600xf32>
    %cst_51 = arith.constant 1.000000e+00 : f32
    %83 = vector.broadcast %cst_51 : f32 to vector<2x600xf32>
    %84 = arith.addf %83, %82 : vector<2x600xf32>
    %85 = arith.divf %83, %84 : vector<2x600xf32>
    %c1_52 = arith.constant 1 : index
    %c0_53 = arith.constant 0 : index
    %c0_54 = arith.constant 0 : index
    %86 = vector.load %arg3[%c1_52, %c0_53, %c0_54] : memref<3x600x600xbf16, #tpu.memory_space<vmem>>, vector<1x600x600xbf16>
    %87 = vector.shape_cast %86 : vector<1x600x600xbf16> to vector<600x600xbf16>
    %cst_55 = arith.constant dense<0.000000e+00> : vector<2x600xf32>
    %88 = tpu.matmul %73, %87, %cst_55 {dimension_numbers = #tpu.dot_dimension_numbers<[1], [0], [0], [1], [0, 0, 1, 1], [], []>} : vector<2x600xbf16>, vector<600x600xbf16>, vector<2x600xf32> -> vector<2x600xf32>
    %c1_56 = arith.constant 1 : index
    %c0_57 = arith.constant 0 : index
    %c0_58 = arith.constant 0 : index
    %89 = vector.load %arg4[%c1_56, %c0_57, %c0_58] : memref<3x1x600xf32, #tpu.memory_space<vmem>>, vector<1x1x600xf32>
    %90 = vector.shape_cast %89 : vector<1x1x600xf32> to vector<1x600xf32>
    %91 = vector.broadcast %90 : vector<1x600xf32> to vector<2x600xf32>
    %92 = arith.addf %88, %91 : vector<2x600xf32>
    %93 = math.tanh %92 : vector<2x600xf32>
    %c2_59 = arith.constant 2 : index
    %c0_60 = arith.constant 0 : index
    %c0_61 = arith.constant 0 : index
    %94 = vector.load %arg3[%c2_59, %c0_60, %c0_61] : memref<3x600x600xbf16, #tpu.memory_space<vmem>>, vector<1x600x600xbf16>
    %95 = vector.shape_cast %94 : vector<1x600x600xbf16> to vector<600x600xbf16>
    %cst_62 = arith.constant dense<0.000000e+00> : vector<2x600xf32>
    %96 = tpu.matmul %73, %95, %cst_62 {dimension_numbers = #tpu.dot_dimension_numbers<[1], [0], [0], [1], [0, 0, 1, 1], [], []>} : vector<2x600xbf16>, vector<600x600xbf16>, vector<2x600xf32> -> vector<2x600xf32>
    %c2_63 = arith.constant 2 : index
    %c0_64 = arith.constant 0 : index
    %c0_65 = arith.constant 0 : index
    %97 = vector.load %arg4[%c2_63, %c0_64, %c0_65] : memref<3x1x600xf32, #tpu.memory_space<vmem>>, vector<1x1x600xf32>
    %98 = vector.shape_cast %97 : vector<1x1x600xf32> to vector<1x600xf32>
    %99 = vector.broadcast %98 : vector<1x600xf32> to vector<2x600xf32>
    %100 = arith.addf %96, %99 : vector<2x600xf32>
    %101 = arith.negf %100 : vector<2x600xf32>
    %102 = math.exp %101 : vector<2x600xf32>
    %cst_66 = arith.constant 1.000000e+00 : f32
    %103 = vector.broadcast %cst_66 : f32 to vector<2x600xf32>
    %104 = arith.addf %103, %102 : vector<2x600xf32>
    %105 = arith.divf %103, %104 : vector<2x600xf32>
    %106 = arith.mulf %85, %93 : vector<2x600xf32>
    %107 = math.tanh %106 : vector<2x600xf32>
    %108 = arith.mulf %105, %107 : vector<2x600xf32>
    %109 = arith.truncf %108 : vector<2x600xf32> to vector<2x600xbf16>
    %c0_67 = arith.constant 0 : index
    %c0_68 = arith.constant 0 : index
    %110 = vector.load %arg5[%c0_67, %c0_68] : memref<600x128xbf16, #tpu.memory_space<vmem>>, vector<600x128xbf16>
    %cst_69 = arith.constant dense<0.000000e+00> : vector<2x128xf32>
    %111 = tpu.matmul %109, %110, %cst_69 {dimension_numbers = #tpu.dot_dimension_numbers<[1], [0], [0], [1], [0, 0, 1, 1], [], []>} : vector<2x600xbf16>, vector<600x128xbf16>, vector<2x128xf32> -> vector<2x128xf32>
    %c0_70 = arith.constant 0 : index
    %c0_71 = arith.constant 0 : index
    %112 = vector.load %arg6[%c0_70, %c0_71] : memref<1x128xf32, #tpu.memory_space<vmem>>, vector<1x128xf32>
    %113 = vector.broadcast %112 : vector<1x128xf32> to vector<2x128xf32>
    %114 = arith.addf %111, %113 : vector<2x128xf32>
    %c0_72 = arith.constant 0 : index
    %c0_73 = arith.constant 0 : index
    %115 = vector.load %arg7[%c0_72, %c0_73] : memref<2x128xf32, #tpu.memory_space<vmem>>, vector<2x128xf32>
    tpu.vector_store %arg7[%c0_72, %c0_73], %114 {strides = array<i32>} : memref<2x128xf32, #tpu.memory_space<vmem>>, vector<2x128xf32>,
    return
  }
}

</mosaic_0001>

<bundles_post_ra>
// kernel: tpu_custom_call.1
= control target key start
LH: loop header
LB: loop body
LE: loop exit
PB: predicated region body
PF: predicated region fallthrough
CT: control target
= control target key end

     0   :  { %12 = vsyncpa [#allocation3], 0  ;;  %s10956_s0 = inlined_call_operand.hbm [shape: f32[2,6], index: 0, kind: input, shape index: {}]   ;;  %s10957_s1 = inlined_call_operand.hbm [shape: bf16[3,6,600], index: 1, kind: input, shape index: {}]   ;;  %s10958_s2 = inlined_call_operand.hbm [shape: f32[3,1,600], index: 2, kind: input, shape index: {}]   ;;  %s10959_s3 = inlined_call_operand.hbm [shape: bf16[3,600,600], index: 3, kind: input, shape index: {}]   ;;  %s10960_s4 = inlined_call_operand.hbm [shape: f32[3,1,600], index: 4, kind: input, shape index: {}]   ;;  %s10961_s5 = inlined_call_operand.hbm [shape: bf16[600,128], index: 5, kind: input, shape index: {}]   ;;  %s10962_s6 = inlined_call_operand.hbm [shape: f32[1,128], index: 6, kind: input, shape index: {}]   ;;  %s10963_s7 = inlined_call_operand.hbm [shape: f32[2,128], index: 7, kind: output, shape index: {}]  }
   0x1   :  { %13 = vsyncpa [#allocation6], 0 }
   0x2   :  { %14 = vsyncpa [#allocation9], 0 }
   0x3   :  { %15 = vsyncpa [#allocation12], 0 }
   0x4   :  { %16 = vsyncpa [#allocation4], 0  ;;  %s10271_s24 = smov [#allocation5]  }
   0x5   :  { %s32_s25 = sshll.u32 %s10271_s24, 4  ;;  %s33_s25 = int_to_ptr.vmem [resolvable:$true] %s32_s25 }
   0x6   :  { %s10109_s26 = scalar_lea.vmem %s33_s25, 960  ;;  %p10114_p1 = scmp.lt.s32.totalorder %s33_s25, %s33_s25 }
   0x7   :  { %p10110_p0 = scmp.ne.s32.totalorder %s33_s25, %s10109_s26  ;;  %p10115_p2 = scmp.lt.s32.totalorder %s10109_s26, %s10109_s26 }
   0x9   :  { %p10116_p3 = por %p10115_p2, %p10114_p1 }
   0xb   :  { %p10117_p4 = pnand %p10116_p3, %p10110_p0 }
   0xd   :  { %10120 = shalt.err (!%p10117_p4)
}
   0xe   :  { %s10272_s27 = smov 320   ;;  %s10273_s28 = smov 20  }
   0xf   :  { %38 = dma.hbm_to_vmem [thread:$0]  %s10957_s1, 960, %s33_s25, [#allocation6], %s10272_s27, %s10272_s27, %s10273_s28  }
  0x10   :  { %s10274_s8 = smov [#allocation8]   ;;  %s10275_s10 = smov [#allocation11]  }
  0x11   :  { %s56_s9 = sshll.u32 %s10274_s8, 4  ;;  %s80_s11 = sshll.u32 %s10275_s10, 4  ;;  %s57_s9 = int_to_ptr.vmem [resolvable:$true] %s56_s9  ;;  %s81_s11 = int_to_ptr.vmem [resolvable:$true] %s80_s11 }
  0x12   :  { %s10129_s12 = scalar_lea.vmem %s57_s9, 72000  ;;  %p10134_p6 = scmp.lt.s32.totalorder %s57_s9, %s57_s9 }
  0x13   :  { %p10130_p5 = scmp.ne.s32.totalorder %s57_s9, %s10129_s12  ;;  %p10135_p7 = scmp.lt.s32.totalorder %s10129_s12, %s10129_s12 }
  0x15   :  { %p10136_p8 = por %p10135_p7, %p10134_p6 }
  0x17   :  { %p10137_p9 = pnand %p10136_p8, %p10130_p5 }
  0x19   :  { %10140 = shalt.err (!%p10137_p9)
}
  0x1a   :  { %62 = dma.hbm_to_vmem [thread:$0]  %s10959_s3, 72000, %s57_s9, [#allocation9], %s10272_s27, %s10272_s27, %s10273_s28  }
  0x1b   :  { %s10149_s15 = scalar_lea.vmem %s81_s11, 4800  ;;  %p10154_p11 = scmp.lt.s32.totalorder %s81_s11, %s81_s11 }
  0x1c   :  { %p10150_p10 = scmp.ne.s32.totalorder %s81_s11, %s10149_s15  ;;  %p10155_p12 = scmp.lt.s32.totalorder %s10149_s15, %s10149_s15 }
  0x1e   :  { %p10156_p13 = por %p10155_p12, %p10154_p11 }
  0x20   :  { %p10157_p0 = pnand %p10156_p13, %p10150_p10 }
  0x22   :  { %10160 = shalt.err (!%p10157_p0)
}
  0x23   :  { %s10276_s1 = smov 64   ;;  %s10277_s16 = smov 4  }
  0x24   :  { %86 = dma.hbm_to_vmem [thread:$0]  %s10961_s5, 4800, %s81_s11, [#allocation12], %s10276_s1, %s10276_s1, %s10277_s16  }
  0x25   :  { %s10278_s19 = smov [#allocation2]   ;;  %s10279_s21 = smov [#allocation7]  }
  0x26   :  { %s23_s20 = sshll.u32 %s10278_s19, 4  ;;  %s44_s22 = sshll.u32 %s10279_s21, 4  ;;  %s24_s20 = int_to_ptr.vmem [resolvable:$true] %s23_s20  ;;  %s45_s22 = int_to_ptr.vmem [resolvable:$true] %s44_s22 }
  0x27   :  { %s10169_s3 = scalar_lea.vmem %s24_s20, 32  ;;  %p10174_p2 = scmp.lt.s32.totalorder %s24_s20, %s24_s20 }
  0x28   :  { %p10170_p1 = scmp.ne.s32.totalorder %s24_s20, %s10169_s3  ;;  %p10175_p3 = scmp.lt.s32.totalorder %s10169_s3, %s10169_s3 }
  0x2a   :  { %p10176_p4 = por %p10175_p3, %p10174_p2 }
  0x2c   :  { %p10177_p5 = pnand %p10176_p4, %p10170_p1 }
  0x2e   :  { %10180 = shalt.err (!%p10177_p5)
}
  0x2f   :  { %26 = dma.hbm_to_vmem [thread:$0]  %s10956_s0, 32, %s24_s20, [#allocation3]  }
  0x30   :  { %s10189_s25 = scalar_lea.vmem %s45_s22, 240  ;;  %s10193_s5 = scalar_lea.vmem %s45_s22, 256 }
  0x31   :  { %p10190_p6 = scmp.ne.s32.totalorder %s45_s22, %s10189_s25  ;;  %p10194_p7 = scmp.lt.s32.totalorder %s45_s22, %s45_s22 }
  0x32   :  { %p10195_p8 = scmp.lt.s32.totalorder %s10193_s5, %s10189_s25 }
  0x34   :  { %p10196_p9 = por %p10195_p8, %p10194_p7 }
  0x36   :  { %p10197_p10 = pnand %p10196_p9, %p10190_p6 }
  0x38   :  { %10200 = shalt.err (!%p10197_p10)
}
  0x39   :  { %s10280_s26 = smov 80   ;;  %s10281_s27 = smov 5  }
  0x3a   :  { %50 = dma.hbm_to_vmem [thread:$0]  %s10958_s2, 240, %s45_s22, [#allocation6], %s10280_s26, %s10280_s26, %s10281_s27  }
  0x3b   :  { %s10282_s30 = smov [#allocation10]   ;;  %s10283_s9 = smov [#allocation13]  }
  0x3c   :  { %s68_s8 = sshll.u32 %s10282_s30, 4  ;;  %s93_s0 = sshll.u32 %s10283_s9, 4  ;;  %s69_s8 = int_to_ptr.vmem [resolvable:$true] %s68_s8  ;;  %s94_s0 = int_to_ptr.vmem [resolvable:$true] %s93_s0 }
  0x3d   :  { %s10209_s10 = scalar_lea.vmem %s69_s8, 240  ;;  %s10213_s11 = scalar_lea.vmem %s69_s8, 256 }
  0x3e   :  { %p10210_p11 = scmp.ne.s32.totalorder %s69_s8, %s10209_s10  ;;  %p10214_p12 = scmp.lt.s32.totalorder %s69_s8, %s69_s8 }
  0x3f   :  { %p10215_p13 = scmp.lt.s32.totalorder %s10213_s11, %s10209_s10 }
  0x41   :  { %p10216_p0 = por %p10215_p13, %p10214_p12 }
  0x43   :  { %p10217_p1 = pnand %p10216_p0, %p10210_p11 }
  0x45   :  { %10220 = shalt.err (!%p10217_p1)
}
  0x46   :  { %74 = dma.hbm_to_vmem [thread:$0]  %s10960_s4, 240, %s69_s8, [#allocation9], %s10280_s26, %s10280_s26, %s10281_s27  }
  0x47   :  { %s10229_s14 = scalar_lea.vmem %s94_s0, 16  ;;  %s10233_s2 = scalar_lea.vmem %s94_s0, 32 }
  0x48   :  { %p10230_p2 = scmp.ne.s32.totalorder %s94_s0, %s10229_s14  ;;  %p10234_p3 = scmp.lt.s32.totalorder %s94_s0, %s94_s0 }
  0x49   :  { %p10235_p4 = scmp.lt.s32.totalorder %s10233_s2, %s10229_s14 }
  0x4b   :  { %p10236_p5 = por %p10235_p4, %p10234_p3 }
  0x4d   :  { %p10237_p6 = pnand %p10236_p5, %p10230_p2 }
  0x4f   :  { %10240 = shalt.err (!%p10237_p6)
}
  0x50   :  { %96 = dma.hbm_to_vmem [thread:$0]  %s10962_s6, 16, %s94_s0, [#allocation12]  }
  0x51   :  { %10261 = dma.done.wait [#allocation3], 32  }
  0x52   :  { %10262 = vsyncadd [#allocation3], 4294967264 }
  0x53   :  { %10263 = dma.done.wait [#allocation6], 1200  }
  0x54   :  { %10264 = vsyncadd [#allocation6], 4294966096 }
  0x55   :  { %10265 = dma.done.wait [#allocation9], 72240  }
  0x56   :  { %10266 = vsyncadd [#allocation9], 4294895056 }
  0x57   :  { %10267 = dma.done.wait [#allocation12], 4816  }
  0x58   :  { %10268 = vsyncadd [#allocation12], 4294962480  ;;  %v10284_v0 = vmov 0   ;;  %vm168_vm0 = vcmask 1042432   ;;  %v121_v1 = vld [vmem:[#allocation5] sm:$0x77] }
  0x59   :  { %216 = vmatprep.mubr.bf16.mxu0 %v10284_v0  ;;  %428 = vmatprep.mubr.bf16.mxu1 %v10284_v0  ;;  %v119_v2 = vld [vmem:[#allocation2] sm:$0x3]  ;;  %v122_v3 = vld [vmem:[#allocation5 + $0x8] sm:$0x77]  ;;  %v7312_v4 = vcombine.high %v121_v1, %v121_v1  ;;  %v7311_v5 = vcombine.low %v121_v1, %v121_v1  ;;  %v337_v7 = vld [vmem:[#allocation5 + $0x14] sm:$0x77] }
  0x5a   :  { %v7314_v6 = vcombine.high %v122_v3, %v122_v3  ;;  %v7313_v8 = vcombine.low %v122_v3, %v122_v3  ;;  %v7327_v9 = vcombine.high %v337_v7, %v337_v7  ;;  %v7326_v10 = vcombine.low %v337_v7, %v337_v7  ;;  %v8528_v13 = vld [vmem:[#allocation5 + $0x24] ss:$0 sps:$4 sm:$0x77]   ;;  %v525_v15 = vld [vmem:[#allocation5 + $0x30] sm:$0x77]  ;;  %s10287_s4 = smov [#allocation14]  }
  0x5b   :  { %7316 = vmatprep.subr.msk.bf16.mxu0 %vm168_vm0, %v7312_v4  ;;  %v170_v11 = vsel %vm168_vm0, %v7311_v5, 0  ;;  %v120_v12 = vpack.c.bf16 %v119_v2, %v119_v2  ;;  %vm164_vm1 = vcmask 48128   ;;  %v10285_v17 = vmov 0.0   ;;  %v8527_v18 = vld [vmem:[#allocation5 + $0x10] ss:$0 sps:$4 sm:$0x77]  }
  0x5c   :  { %199 = vmatpush1.bf16.msra.mxu0 %v170_v11  ;;  %7331 = vmatprep.subr.msk.bf16.mxu1 %vm168_vm0, %v7327_v9  ;;  %v382_v14 = vsel %vm168_vm0, %v7326_v10, 0  ;;  %v176_v16 = vsel %vm168_vm0, %v7313_v8, 0  ;;  %v394_v19 = vsel %vm168_vm0, %v8528_v13, 0  ;;  %v7339_v20 = vcombine.high %v525_v15, %v525_v15  ;;  %v338_v21 = vld [vmem:[#allocation5 + $0x1c] sm:$0x77]  ;;  %s7299_s6 = sshll.u32 %s10287_s4, 4  ;;  %s7300_s6 = int_to_ptr.vmem [resolvable:$true] %s7299_s6 }
  0x5d   :  { %7318 = vmatprep.subr.msk.bf16.mxu0 %vm168_vm0, %v7314_v6  ;;  %411 = vmatpush1.bf16.msra.mxu1 %v382_v14  ;;  %vm10286_vm2 = vmmov 0   ;;  %v7338_v22 = vcombine.low %v525_v15, %v525_v15  ;;  %v182_v23 = vsel %vm168_vm0, %v8527_v18, 0  ;;  %v7329_v24 = vcombine.high %v338_v21, %v338_v21  ;;  %v524_v26 = vld [vmem:[#allocation5 + $0x28] sm:$0x77]  ;;  %v8536_v35 = vld [vmem:[#allocation8 + $0x398] ss:$20 sps:$4 sm:$0xff]   ;;  %p10246_p8 = scmp.lt.s32.totalorder %s7300_s6, %s7300_s6 }
  0x5e   :  { %8380 = vmatprep.subr.bf16.mxu1 %v10285_v17  ;;  %v7328_v27 = vcombine.low %v338_v21, %v338_v21  ;;  %v7337_v29 = vcombine.high %v524_v26, %v524_v26  ;;  %v7336_v30 = vcombine.low %v524_v26, %v524_v26  ;;  %v8535_v32 = vld [vmem:[#allocation5 + $0x38] ss:$0 sps:$4 sm:$0x77]   ;;  %v8538_v34 = vld [vmem:[#allocation8 + $0x39c] ss:$20 sps:$4 sm:$0xff]   ;;  %vm1986_vm3 = vcmask 1043456  }
  0x5f   :  { %7317 = vmatmul.mubr.msk.bf16.vlgmr.msra.gmra.mxu0 %vm164_vm1, %v120_v12  ;;  %v575_v25 = vsel %vm168_vm0, %v7338_v22, 0  ;;  %v581_v33 = vsel %vm168_vm0, %v8535_v32, 0  ;;  %v8541_v36 = vld [vmem:[#allocation8 + $0x374] ss:$20 sps:$4 sm:$0xff]   ;;  %v8539_v37 = vld [vmem:[#allocation8 + $0x370] ss:$20 sps:$4 sm:$0xff]  }
  0x60   :  { %240 = vmatpush1.bf16.msra.mxu0 %v176_v16  ;;  %257 = vmatprep.mubr.bf16.mxu0 %v10284_v0  ;;  %v388_v28 = vsel %vm168_vm0, %v7328_v27, 0  ;;  %v569_v31 = vsel %vm168_vm0, %v7336_v30, 0  ;;  %v8544_v38 = vld [vmem:[#allocation8 + $0x11c] ss:$20 sps:$4 sm:$0xff]   ;;  %v8547_v39 = vld [vmem:[#allocation8 + $0x34c] ss:$20 sps:$4 sm:$0xff]  }
  0x61   :  { %8374 = vmatprep.subr.bf16.mxu0 %v10285_v17  ;;  %7332 = vmatmul.mubr.msk.bf16.vlgmr.msra.gmra.mxu1 %vm164_vm1, %v120_v12  ;;  %v8542_v40 = vld [vmem:[#allocation8 + $0x118] ss:$20 sps:$4 sm:$0xff]   ;;  %v8545_v41 = vld [vmem:[#allocation8 + $0x348] ss:$20 sps:$4 sm:$0xff]   ;;  %v8548_v44 = vld [vmem:[#allocation8 + $0xf0] ss:$20 sps:$4 sm:$0xff]  }
  0x62   :  { %8381 = vmatpush3.bf16.msra.mxu1 %v394_v19  ;;  %8382 = vmatprep.mubr.msk.bf16.mxu1 %vm10286_vm2, %v10285_v17  ;;  %v8550_v42 = vld [vmem:[#allocation8 + $0xf4] ss:$20 sps:$4 sm:$0xff]   ;;  %v8553_v43 = vld [vmem:[#allocation8 + $0x324] ss:$20 sps:$4 sm:$0xff]   ;;  %v8556_v46 = vld [vmem:[#allocation8 + $0xcc] ss:$20 sps:$4 sm:$0xff]  }
  0x63   :  { %7343 = vmatprep.subr.msk.bf16.mxu1 %vm168_vm0, %v7339_v20  ;;  %v8551_v45 = vld [vmem:[#allocation8 + $0x320] ss:$20 sps:$4 sm:$0xff]   ;;  %v8559_v47 = vld [vmem:[#allocation8 + $0x2fc] ss:$20 sps:$4 sm:$0xff]   ;;  %v8557_v49 = vld [vmem:[#allocation8 + $0x2f8] ss:$20 sps:$4 sm:$0xff]  }
  0x64   :  { %v8554_v48 = vld [vmem:[#allocation8 + $0xc8] ss:$20 sps:$4 sm:$0xff]   ;;  %v8562_v50 = vld [vmem:[#allocation8 + $0xa4] ss:$20 sps:$4 sm:$0xff]   ;;  %v8560_v52 = vld [vmem:[#allocation8 + $0xa0] ss:$20 sps:$4 sm:$0xff]  }
  0x65   :  { %v8565_v51 = vld [vmem:[#allocation8 + $0x2d4] ss:$20 sps:$4 sm:$0xff]   ;;  %v8563_v53 = vld [vmem:[#allocation8 + $0x2d0] ss:$20 sps:$4 sm:$0xff]   ;;  %v8571_v55 = vld [vmem:[#allocation8 + $0x2ac] ss:$20 sps:$4 sm:$0xff]  }
  0x66   :  { %v8568_v54 = vld [vmem:[#allocation8 + $0x7c] ss:$20 sps:$4 sm:$0xff]   ;;  %v8566_v56 = vld [vmem:[#allocation8 + $0x78] ss:$20 sps:$4 sm:$0xff]   ;;  %v8574_v58 = vld [vmem:[#allocation8 + $0x54] ss:$20 sps:$4 sm:$0xff]  }
  0x67   :  { %7319 = vmatmul.mubr.msk.bf16.vlgmr.msra.gmra.mxu0 %vm164_vm1, %v120_v12  ;;  %v8569_v57 = vld [vmem:[#allocation8 + $0x2a8] ss:$20 sps:$4 sm:$0xff]   ;;  %v8577_v59 = vld [vmem:[#allocation8 + $0x284] ss:$20 sps:$4 sm:$0xff]   ;;  %v8575_v61 = vld [vmem:[#allocation8 + $0x280] ss:$20 sps:$4 sm:$0xff]  }
  0x68   :  { %8375 = vmatpush3.bf16.msra.mxu0 %v182_v23  ;;  %8376 = vmatprep.mubr.msk.bf16.mxu0 %vm10286_vm2, %v10285_v17  ;;  %v8572_v60 = vld [vmem:[#allocation8 + $0x50] ss:$20 sps:$4 sm:$0xff]   ;;  %v8580_v62 = vld [vmem:[#allocation8 + $0x2c] ss:$20 sps:$4 sm:$0xff]   ;;  %v8578_v1 = vld [vmem:[#allocation8 + $0x28] ss:$20 sps:$4 sm:$0xff]  }
  0x69   :  { %7333 = vmatprep.subr.msk.bf16.mxu0 %vm168_vm0, %v7329_v24  ;;  %8383 = vmatmul.mubr.msk.bf16.vlgmr.msra.gmra.mxu1 %vm164_vm1, %v120_v12  ;;  %v8583_v63 = vld [vmem:[#allocation8 + $0x4dc] ss:$20 sps:$4 sm:$0xff]   ;;  %v8581_v2 = vld [vmem:[#allocation8 + $0x4d8] ss:$20 sps:$4 sm:$0xff]   ;;  %v8589_v4 = vld [vmem:[#allocation8 + $0x4b4] ss:$20 sps:$4 sm:$0xff]  }
  0x6a   :  { %639 = vmatpush1.bf16.msra.mxu1 %v575_v25  ;;  %656 = vmatprep.mubr.bf16.mxu1 %v10284_v0  ;;  %v8586_v3 = vld [vmem:[#allocation8 + $0x4] ss:$20 sps:$4 sm:$0xff]   ;;  %v8584_v5 = vld [vmem:[#allocation8] ss:$20 sps:$4 sm:$0xff]   ;;  %v8592_v7 = vld [vmem:[#allocation8 + $0x25c] ss:$20 sps:$4 sm:$0xff]  }
  0x6b   :  { %2002 = vmatprep.subr.bf16.mxu1 %v8544_v38  ;;  %v8587_v6 = vld [vmem:[#allocation8 + $0x4b0] ss:$20 sps:$4 sm:$0xff]   ;;  %v8595_v8 = vld [vmem:[#allocation8 + $0x48c] ss:$20 sps:$4 sm:$0xff]   ;;  %v8593_v10 = vld [vmem:[#allocation8 + $0x488] ss:$20 sps:$4 sm:$0xff]  }
  0x6c   :  { %v8590_v9 = vld [vmem:[#allocation8 + $0x258] ss:$20 sps:$4 sm:$0xff]   ;;  %v8598_v11 = vld [vmem:[#allocation8 + $0x234] ss:$20 sps:$4 sm:$0xff]   ;;  %v8596_v13 = vld [vmem:[#allocation8 + $0x230] ss:$20 sps:$4 sm:$0xff]  }
  0x6d   :  { %v8599_v14 = vld [vmem:[#allocation8 + $0x460] ss:$20 sps:$4 sm:$0xff]   ;;  %v8607_v16 = vld [vmem:[#allocation8 + $0x43c] ss:$20 sps:$4 sm:$0xff]   ;;  %v8605_v19 = vld [vmem:[#allocation8 + $0x438] ss:$20 sps:$4 sm:$0xff]  }
  0x6e   :  { %v8604_v15 = vld [vmem:[#allocation8 + $0x20c] ss:$20 sps:$4 sm:$0xff]   ;;  %v8602_v18 = vld [vmem:[#allocation8 + $0x208] ss:$20 sps:$4 sm:$0xff]   ;;  %v8610_v20 = vld [vmem:[#allocation8 + $0x1e4] ss:$20 sps:$4 sm:$0xff]  }
  0x6f   :  { %8377 = vmatmul.mubr.msk.bf16.vlgmr.msra.gmra.mxu0 %vm164_vm1, %v120_v12  ;;  %v8613_v21 = vld [vmem:[#allocation8 + $0x414] ss:$20 sps:$4 sm:$0xff]   ;;  %v8611_v23 = vld [vmem:[#allocation8 + $0x410] ss:$20 sps:$4 sm:$0xff]   ;;  %v8619_v25 = vld [vmem:[#allocation8 + $0x3ec] ss:$20 sps:$4 sm:$0xff]  }
  0x70   :  { %452 = vmatpush1.bf16.msra.mxu0 %v388_v28  ;;  %469 = vmatprep.mubr.bf16.mxu0 %v10284_v0  ;;  %v8608_v22 = vld [vmem:[#allocation8 + $0x1e0] ss:$20 sps:$4 sm:$0xff]   ;;  %v8616_v24 = vld [vmem:[#allocation8 + $0x1bc] ss:$20 sps:$4 sm:$0xff]   ;;  %v8614_v26 = vld [vmem:[#allocation8 + $0x1b8] ss:$20 sps:$4 sm:$0xff]  }
  0x71   :  { %7341 = vmatprep.subr.msk.bf16.mxu0 %vm168_vm0, %v7337_v29  ;;  %7344 = vmatmul.mubr.msk.bf16.vlgmr.msra.gmra.mxu1 %vm164_vm1, %v120_v12  ;;  %v8617_v27 = vld [vmem:[#allocation8 + $0x3e8] ss:$20 sps:$4 sm:$0xff]   ;;  %v8625_v29 = vld [vmem:[#allocation8 + $0x3c4] ss:$20 sps:$4 sm:$0xff]   ;;  %v8628_v32 = vld [vmem:[#allocation8 + $0x16c] ss:$20 sps:$4 sm:$0xff]  }
  0x72   :  { %2003 = vmatpush1.bf16.msra.mxu1 %v8542_v40  ;;  %v8622_v28 = vld [vmem:[#allocation8 + $0x194] ss:$20 sps:$4 sm:$0xff]   ;;  %v8620_v30 = vld [vmem:[#allocation8 + $0x190] ss:$20 sps:$4 sm:$0xff]   ;;  %vm1982_vm4 = vcmask 719872   ;;  %s10241_s16 = scalar_lea.vmem %s7300_s6, 32 }
  0x73   :  { %2004 = vmatprep.subr.bf16.mxu1 %v8550_v42  ;;  %p10242_p7 = scmp.ne.s32.totalorder %s7300_s6, %s10241_s16  ;;  %p10247_p9 = scmp.lt.s32.totalorder %s10241_s16, %s10241_s16 }
  0x75   :  { %p10248_p10 = por %p10247_p9, %p10246_p8 }
  0x76   :  { %2005 = vmatpush1.bf16.msra.mxu1 %v8548_v44 }
  0x77   :  { %7334 = vmatmul.mubr.msk.bf16.vlgmr.msra.gmra.mxu0 %vm164_vm1, %v120_v12  ;;  %2006 = vmatprep.subr.bf16.mxu1 %v8556_v46  ;;  %p10249_p11 = pnand %p10248_p10, %p10242_p7 }
  0x78   :  { %598 = vmatpush1.bf16.msra.mxu0 %v569_v31  ;;  %615 = vmatprep.mubr.bf16.mxu0 %v10284_v0  ;;  %v8623_v31 = vld [vmem:[#allocation8 + $0x3c0] ss:$20 sps:$4 sm:$0xff]  }
  0x79   :  { %8386 = vmatprep.subr.bf16.mxu0 %v10285_v17 }
  0x7a   :  { %2007 = vmatpush1.bf16.msra.mxu1 %v8554_v48 }
  0x7b   :  { %2008 = vmatprep.subr.bf16.mxu1 %v8562_v50 }
  0x7e   :  { %2009 = vmatpush1.bf16.msra.mxu1 %v8560_v52 }
  0x7f   :  { %7342 = vmatmul.mubr.msk.bf16.vlgmr.msra.gmra.mxu0 %vm164_vm1, %v120_v12  ;;  %2010 = vmatprep.subr.bf16.mxu1 %v8568_v54 }
  0x80   :  { %8387 = vmatpush3.bf16.msra.mxu0 %v581_v33  ;;  %8388 = vmatprep.mubr.msk.bf16.mxu0 %vm10286_vm2, %v10285_v17  ;;  %v8631_v33 = vld [vmem:[#allocation8 + $0x124] ss:$20 sps:$4 sm:$0xff]  }
  0x81   :  { %2043 = vmatprep.subr.bf16.mxu0 %v8538_v34  ;;  %v8626_v34 = vld [vmem:[#allocation8 + $0x168] ss:$20 sps:$4 sm:$0xff]  }
  0x82   :  { %2011 = vmatpush1.bf16.msra.mxu1 %v8566_v56 }
  0x83   :  { %2012 = vmatprep.subr.bf16.mxu1 %v8574_v58 }
  0x86   :  { %2013 = vmatpush1.bf16.msra.mxu1 %v8572_v60 }
  0x87   :  { %8389 = vmatmul.mubr.msk.bf16.vlgmr.msra.gmra.mxu0 %vm164_vm1, %v120_v12  ;;  %2014 = vmatprep.subr.bf16.mxu1 %v8580_v62  ;;  %v8601_v12 = vld [vmem:[#allocation8 + $0x464] ss:$20 sps:$4 sm:$0xff]  }
  0x88   :  { %2044 = vmatpush1.bf16.msra.mxu0 %v8536_v35  ;;  %v8634_v35 = vld [vmem:[#allocation8 + $0x144] ss:$20 sps:$4 sm:$0xff]  }
  0x89   :  { %2045 = vmatprep.subr.bf16.mxu0 %v8541_v36  ;;  %v8632_v36 = vld [vmem:[#allocation8 + $0x140] ss:$20 sps:$4 sm:$0xff]  }
  0x8a   :  { %2015 = vmatpush1.bf16.msra.mxu1 %v8578_v1 }
  0x8b   :  { %2016 = vmatprep.subr.bf16.mxu1 %v8586_v3  ;;  %v10420_v3 = vld [vmem:[#allocation7 + $0xa] sm:$0x1f] }
  0x8c   :  { %2046 = vmatpush1.bf16.msra.mxu0 %v8539_v37  ;;  %v10388_v37 = vld [vmem:[#allocation8 + $0x5c8] sm:$0xff] }
  0x8d   :  { %2047 = vmatprep.subr.bf16.mxu0 %v8547_v39  ;;  %v10392_v38 = vcombine.high %v10388_v37, %v10388_v37  ;;  %v126_v39 = vlaneseq }
  0x8e   :  { %2017 = vmatpush1.bf16.msra.mxu1 %v8584_v5 }
  0x8f   :  { %2018 = vmatprep.subr.bf16.mxu1 %v8592_v7  ;;  %v127_v40 = vshrl.u32 %v126_v39, 7 }
  0x90   :  { %2048 = vmatpush1.bf16.msra.mxu0 %v8545_v41  ;;  %v10396_v41 = vld [vmem:[#allocation7] sm:$0x1f] }
  0x91   :  { %2049 = vmatprep.subr.bf16.mxu0 %v8553_v43  ;;  %v10398_v42 = vsub.s32 0, %v127_v40  ;;  %v10400_v44 = vsub.s32 1, %v127_v40  ;;  %v10406_v48 = vsub.s32 3, %v127_v40 }
  0x92   :  { %2019 = vmatpush2.bf16.msra.mxu1 %v8590_v9 }
  0x93   :  { %2020 = vmatprep.subr.bf16.mxu1 %v8598_v11  ;;  %v133_v50 = vrot.slane %v10396_v41, %v10400_v44  ;;  %v141_v56 = vrot.slane %v10396_v41, %v10406_v48 }
  0x94   :  { %2050 = vmatpush1.bf16.msra.mxu0 %v8551_v45  ;;  %v10402_v45 = vsub.s32 2, %v127_v40 }
  0x95   :  { %2051 = vmatprep.subr.bf16.mxu0 %v8559_v47 }
  0x96   :  { %2021 = vmatpush2.bf16.msra.mxu1 %v8596_v13  ;;  %v541_v11 = vrot.slane %v10420_v3, %v10402_v45 }
  0x97   :  { %2022 = vmatprep.subr.bf16.mxu1 %v8604_v15 }
  0x98   :  { %2052 = vmatpush1.bf16.msra.mxu0 %v8557_v49  ;;  %v129_v49 = vrot.slane %v10396_v41, %v10398_v42 }
  0x99   :  { %2053 = vmatprep.subr.bf16.mxu0 %v8565_v51 }
  0x9a   :  { %2023 = vmatpush2.bf16.msra.mxu1 %v8602_v18 }
  0x9b   :  { %2024 = vmatprep.subr.bf16.mxu1 %v8610_v20 }
  0x9c   :  { %2054 = vmatpush1.bf16.msra.mxu0 %v8563_v53  ;;  %v137_v53 = vrot.slane %v10396_v41, %v10402_v45 }
  0x9d   :  { %2055 = vmatprep.subr.bf16.mxu0 %v8571_v55 }
  0x9e   :  { %2025 = vmatpush2.bf16.msra.mxu1 %v8608_v22 }
  0x9f   :  { %2026 = vmatprep.subr.bf16.mxu1 %v8616_v24 }
  0xa0   :  { %2056 = vmatpush1.bf16.msra.mxu0 %v8569_v57 }
  0xa1   :  { %2057 = vmatprep.subr.bf16.mxu0 %v8577_v59 }
  0xa2   :  { %2027 = vmatpush2.bf16.msra.mxu1 %v8614_v26 }
  0xa3   :  { %2028 = vmatprep.subr.bf16.mxu1 %v8622_v28 }
  0xa4   :  { %2058 = vmatpush1.bf16.msra.mxu0 %v8575_v61 }
  0xa5   :  { %2059 = vmatprep.subr.bf16.mxu0 %v8583_v63 }
  0xa6   :  { %2029 = vmatpush2.bf16.msra.mxu1 %v8620_v30 }
  0xa7   :  { %2030 = vmatprep.subr.bf16.mxu1 %v8628_v32 }
  0xa8   :  { %2060 = vmatpush2.bf16.msra.mxu0 %v8581_v2 }
  0xa9   :  { %2061 = vmatprep.subr.bf16.mxu0 %v8589_v4 }
  0xaa   :  { %2031 = vmatpush2.bf16.msra.mxu1 %v8626_v34 }
  0xab   :  { %2032 = vmatprep.subr.bf16.mxu1 %v8634_v35 }
  0xac   :  { %2062 = vmatpush2.bf16.msra.mxu0 %v8587_v6 }
  0xad   :  { %2063 = vmatprep.subr.bf16.mxu0 %v8595_v8 }
  0xae   :  { %2033 = vmatpush2.bf16.msra.mxu1 %v8632_v36 }
  0xaf   :  { %7541 = vmatprep.subr.msk.bf16.mxu1 %vm1986_vm3, %v10392_v38 }
  0xb0   :  { %2064 = vmatpush2.bf16.msra.mxu0 %v8593_v10 }
  0xb1   :  { %2065 = vmatprep.subr.bf16.mxu0 %v8601_v12 }
  0xb4   :  { %2066 = vmatpush2.bf16.msra.mxu0 %v8599_v14  ;;  %v545_v14 = vrot.slane %v10420_v3, %v10406_v48 }
  0xb5   :  { %2067 = vmatprep.subr.bf16.mxu0 %v8607_v16 }
  0xb8   :  { %2068 = vmatpush2.bf16.msra.mxu0 %v8605_v19  ;;  %v10426_v19 = vld [vmem:[#allocation7 + $0x5] sm:$0x1f] }
  0xb9   :  { %2069 = vmatprep.subr.bf16.mxu0 %v8613_v21  ;;  %v354_v22 = vrot.slane %v10426_v19, %v10402_v45  ;;  %v346_v34 = vrot.slane %v10426_v19, %v10398_v42  ;;  %v350_v39 = vrot.slane %v10426_v19, %v10400_v44 }
  0xbc   :  { %2070 = vmatpush2.bf16.msra.mxu0 %v8611_v23 }
  0xbd   :  { %2071 = vmatprep.subr.bf16.mxu0 %v8619_v25 }
  0xc0   :  { %2072 = vmatpush2.bf16.msra.mxu0 %v8617_v27  ;;  %v358_v27 = vrot.slane %v10426_v19, %v10406_v48 }
  0xc1   :  { %2073 = vmatprep.subr.bf16.mxu0 %v8625_v29  ;;  %v10432_v29 = vsub.s32 4, %v127_v40 }
  0xc3   :  { %v145_v40 = vrot.slane %v10396_v41, %v10432_v29 }
  0xc4   :  { %2074 = vmatpush2.bf16.msra.mxu0 %v8623_v31 }
  0xc5   :  { %2125 = vmatprep.subr.bf16.mxu0 %v8631_v33 }
 0x11f   :  { %v218_v43 = vpop.f32.mrf.mxu0 }
 0x120   :  { %v219_v57 = vadd.f32 %v218_v43, %v129_v49 }
 0x121   :  { %v220_v46 = vpop.f32.mrf.mxu0  ;;  %v10404_v47 = vpop.f32.mrf.mxu1 }
 0x122   :  { %v221_v58 = vadd.f32 %v220_v46, %v133_v50  ;;  %v7321_v4 = vmul.f32 -1.442695, %v219_v57 }
 0x123   :  { %v222_v51 = vpop.f32.mrf.mxu0  ;;  %v10412_v52 = vpop.f32.mrf.mxu1 }
 0x124   :  { %v7322_v5 = vmul.f32 -1.442695, %v221_v58  ;;  %v433_v57 = vadd.f32 %v10412_v52, %v350_v39  ;;  %v537_v58 = vrot.slane %v10420_v3, %v10400_v44 }
 0x125   :  { %v223_v54 = vpop.f32.mrf.mxu0  ;;  %v434_v55 = vpop.f32.mrf.mxu1 }
 0x126   :  { %v431_v54 = vadd.f32 %v10404_v47, %v346_v34 }
 0x127   :  { %v259_v59 = vpop.f32.mrf.mxu0  ;;  %v435_v60 = vpop.f32.mrf.mxu1 }
 0x128   :  { %v260_v61 = vadd.f32 %v259_v59, %v137_v53 }
 0x129   :  { %v261_v62 = vpop.f32.mrf.mxu0  ;;  %v10418_v63 = vpop.f32.mrf.mxu1 }
 0x12a   :  { %v7323_v1 = vmul.f32 -1.442695, %v260_v61  ;;  %v262_v2 = vadd.f32 %v261_v62, %v141_v56  ;;  %v533_v56 = vrot.slane %v10420_v3, %v10398_v42 }
 0x12b   :  { %v263_v6 = vpop.f32.mrf.mxu0  ;;  %v8384_v7 = vpop.f32.mrf.mxu1 }
 0x12c   :  { %9366 = vpow2.f32 %v7323_v1  ;;  %v7324_v8 = vmul.f32 -1.442695, %v262_v2 }
 0x12d   :  { %v264_v9 = vpop.f32.mrf.mxu0  ;;  %v515_v10 = vpop.f32.mrf.mxu1 }
 0x12e   :  { %9368 = vpow2.f32 %v7324_v8 }
 0x12f   :  { %9370 = vpow2.f32 %v7321_v4  ;;  %v300_v12 = vpop.f32.mrf.mxu0  ;;  %v8385_v13 = vpop.f32.mrf.mxu1 }
 0x130   :  { %9372 = vpow2.f32 %v7322_v5  ;;  %v301_v59 = vadd.f32 %v300_v12, %v145_v40 }
 0x131   :  { %v8378_v15 = vpop.f32.mrf.mxu0  ;;  %v658_v16 = vpop.f32.mrf.mxu1 }
 0x132   :  { %v659_v18 = vadd.f32 %v658_v16, %v541_v11  ;;  %v7325_v2 = vmul.f32 -1.442695, %v301_v59  ;;  %v8639_v59 = vld [vmem:[#allocation8 + $0xd0] ss:$20 sps:$4 sm:$0xff]  }
 0x133   :  { %v303_v20 = vpop.f32.mrf.mxu0  ;;  %v660_v21 = vpop.f32.mrf.mxu1 }
 0x134   :  { %v7348_v23 = vmul.f32 -1.442695, %v659_v18  ;;  %v661_v24 = vadd.f32 %v660_v21, %v545_v14 }
 0x135   :  { %v8379_v25 = vpop.f32.mrf.mxu0  ;;  %v662_v26 = vpop.f32.mrf.mxu1 }
 0x136   :  { %v7349_v28 = vmul.f32 -1.442695, %v661_v24  ;;  %9374 = vpow2.f32 %v7348_v23  ;;  %v549_v25 = vrot.slane %v10420_v3, %v10432_v29 }
 0x137   :  { %v471_v30 = vpop.f32.mrf.mxu0  ;;  %v663_v31 = vpop.f32.mrf.mxu1 }
 0x138   :  { %v472_v32 = vadd.f32 %v471_v30, %v354_v22  ;;  %9376 = vpow2.f32 %v7349_v28 }
 0x139   :  { %v9367_v33 = vpop.eup %9366  ;;  %v473_v35 = vpop.f32.mrf.mxu0 }
 0x13a   :  { %v323_v36 = vadd.f32 1.0, %v9367_v33  ;;  %v474_v43 = vadd.f32 %v473_v35, %v358_v27  ;;  %9378 = vtanh.f32 %v472_v32  ;;  %v362_v33 = vrot.slane %v10426_v19, %v10432_v29 }
 0x13b   :  { %v9369_v46 = vpop.eup %9368  ;;  %v475_v49 = vpop.f32.mrf.mxu0 }
 0x13c   :  { %v9371_v50 = vpop.eup %9370  ;;  %9380 = vrcp.f32 %v323_v36  ;;  %v324_v51 = vadd.f32 1.0, %v9369_v46  ;;  %v513_v40 = vadd.f32 %v10418_v63, %v362_v33  ;;  %v8635_v63 = vld [vmem:[#allocation8 + $0xf8] ss:$20 sps:$4 sm:$0xff]  }
 0x13d   :  { %v9373_v53 = vpop.eup %9372  ;;  %9382 = vtanh.f32 %v474_v43  ;;  %v476_v55 = vpop.f32.mrf.mxu0  ;;  %v321_v41 = vadd.f32 1.0, %v9371_v50 }
 0x13e   :  { %9384 = vrcp.f32 %v324_v51  ;;  %v322_v61 = vadd.f32 1.0, %v9373_v53  ;;  %v8629_v55 = vld [vmem:[#allocation8 + $0x120] ss:$20 sps:$4 sm:$0xff]  }
 0x13f   :  { %v617_v60 = vpop.f32.mrf.mxu0  ;;  %9386 = vtanh.f32 %v431_v54 }
 0x140   :  { %v618_v62 = vadd.f32 %v617_v60, %v533_v56  ;;  %9388 = vtanh.f32 %v433_v57  ;;  %v8637_v57 = vld [vmem:[#allocation8 + $0xfc] ss:$20 sps:$4 sm:$0xff]  }
 0x141   :  { %v619_v1 = vpop.f32.mrf.mxu0  ;;  %9390 = vrcp.f32 %v321_v41 }
 0x142   :  { %v620_v47 = vadd.f32 %v619_v1, %v537_v58  ;;  %9392 = vrcp.f32 %v322_v61  ;;  %v7346_v52 = vmul.f32 -1.442695, %v618_v62  ;;  %v8641_v58 = vld [vmem:[#allocation8 + $0xd4] ss:$20 sps:$4 sm:$0xff]  }
 0x143   :  { %v621_v4 = vpop.f32.mrf.mxu0  ;;  %v9375_v5 = vpop.eup %9374  ;;  %9394 = vpow2.f32 %v7325_v2  ;;  %v8648_v2 = vld [vmem:[#allocation8 + $0xac] ss:$20 sps:$4 sm:$0xff]  }
 0x144   :  { %v722_v7 = vadd.f32 1.0, %v9375_v5  ;;  %v7347_v9 = vmul.f32 -1.442695, %v620_v47  ;;  %v7536_v47 = vcombine.low %v10388_v37, %v10388_v37  ;;  %v8643_v37 = vld [vmem:[#allocation8 + $0x5a0] ss:$20 sps:$4 sm:$0xff]  }
 0x145   :  { %v9377_v6 = vpop.eup %9376  ;;  %v622_v8 = vpop.f32.mrf.mxu0 }
 0x146   :  { %v723_v10 = vadd.f32 1.0, %v9377_v6  ;;  %9396 = vrcp.f32 %v722_v7  ;;  %v8646_v6 = vld [vmem:[#allocation8 + $0xa8] ss:$20 sps:$4 sm:$0xff]  }
 0x147   :  { %v699_v11 = vpop.f32.mrf.mxu0  ;;  %v9379_v12 = vpop.eup %9378  ;;  %9398 = vpow2.f32 %v7346_v52 }
 0x148   :  { %9400 = vpow2.f32 %v7347_v9  ;;  %v700_v30 = vadd.f32 %v699_v11, %v549_v25  ;;  %v10464_v11 = vsel %vm1986_vm3, %v7536_v47, 0  ;;  %v8664_v25 = vld [vmem:[#allocation8 + $0x30] ss:$20 sps:$4 sm:$0xff]   ;;  %v8700_v47 = vld [vmem:[#allocation8 + $0x300] ss:$20 sps:$4 sm:$0xff]  }
 0x149   :  { %v9381_v13 = vpop.eup %9380  ;;  %v8390_v14 = vpop.f32.mrf.mxu0  ;;  %9402 = vrcp.f32 %v723_v10 }
 0x14a   :  { %v9383_v15 = vpop.eup %9382  ;;  %v737_v16 = vmul.f32 %v9381_v13, %v9379_v12  ;;  %v7350_v43 = vmul.f32 -1.442695, %v700_v30  ;;  %v8645_v12 = vld [vmem:[#allocation8 + $0x5a4] ss:$20 sps:$4 sm:$0xff]   ;;  %v8652_v14 = vld [vmem:[#allocation8 + $0x80] ss:$20 sps:$4 sm:$0xff]  }
 0x14b   :  { %v9385_v18 = vpop.eup %9384  ;;  %v702_v20 = vpop.f32.mrf.mxu0  ;;  %v8654_v13 = vld [vmem:[#allocation8 + $0x84] ss:$20 sps:$4 sm:$0xff]   ;;  %v8670_v30 = vld [vmem:[#allocation8 + $0x8] ss:$20 sps:$4 sm:$0xff]  }
 0x14c   :  { %9404 = vtanh.f32 %v737_v16  ;;  %v738_v21 = vmul.f32 %v9385_v18, %v9383_v15  ;;  %v9387_v23 = vpop.eup %9386  ;;  %v8651_v16 = vld [vmem:[#allocation8 + $0x57c] ss:$20 sps:$4 sm:$0xff]   ;;  %v8649_v20 = vld [vmem:[#allocation8 + $0x578] ss:$20 sps:$4 sm:$0xff]  }
 0x14d   :  { %v8391_v22 = vpop.f32.mrf.mxu0  ;;  %v9389_v24 = vpop.eup %9388  ;;  %v8660_v18 = vld [vmem:[#allocation8 + $0x5c] ss:$20 sps:$4 sm:$0xff]  }
 0x14e   :  { %9406 = vtanh.f32 %v738_v21  ;;  %v9391_v26 = vpop.eup %9390  ;;  %v8658_v21 = vld [vmem:[#allocation8 + $0x58] ss:$20 sps:$4 sm:$0xff]   ;;  %v8657_v22 = vld [vmem:[#allocation8 + $0x554] ss:$20 sps:$4 sm:$0xff]  }
 0x14f   :  { %v9393_v27 = vpop.eup %9392  ;;  %v735_v28 = vmul.f32 %v9391_v26, %v9387_v23  ;;  %v8666_v23 = vld [vmem:[#allocation8 + $0x34] ss:$20 sps:$4 sm:$0xff]   ;;  %v8663_v26 = vld [vmem:[#allocation8 + $0x52c] ss:$20 sps:$4 sm:$0xff]  }
 0x150   :  { %v9395_v31 = vpop.eup %9394  ;;  %v736_v32 = vmul.f32 %v9393_v27, %v9389_v24  ;;  %v8655_v24 = vld [vmem:[#allocation8 + $0x550] ss:$20 sps:$4 sm:$0xff]   ;;  %v8672_v27 = vld [vmem:[#allocation8 + $0xc] ss:$20 sps:$4 sm:$0xff]  }
 0x151   :  { %9408 = vtanh.f32 %v735_v28  ;;  %v325_v50 = vadd.f32 1.0, %v9395_v31  ;;  %v8661_v28 = vld [vmem:[#allocation8 + $0x528] ss:$20 sps:$4 sm:$0xff]   ;;  %v8669_v31 = vld [vmem:[#allocation8 + $0x504] ss:$20 sps:$4 sm:$0xff]  }
 0x152   :  { %9410 = vtanh.f32 %v736_v32  ;;  %v8675_v32 = vld [vmem:[#allocation8 + $0x264] ss:$20 sps:$4 sm:$0xff]  }
 0x153   :  { %v9397_v34 = vpop.eup %9396 }
 0x154   :  { %v9399_v35 = vpop.eup %9398 }
 0x155   :  { %v9401_v36 = vpop.eup %9400  ;;  %v720_v39 = vadd.f32 1.0, %v9399_v35 }
 0x156   :  { %v9403_v46 = vpop.eup %9402  ;;  %v721_v3 = vadd.f32 1.0, %v9401_v36  ;;  %v8673_v36 = vld [vmem:[#allocation8 + $0x260] ss:$20 sps:$4 sm:$0xff]  }
 0x157   :  { %9412 = vrcp.f32 %v720_v39  ;;  %v8678_v39 = vld [vmem:[#allocation8 + $0x3a4] ss:$20 sps:$4 sm:$0xff]  }
 0x158   :  { %9414 = vrcp.f32 %v721_v3  ;;  %v8679_v3 = vld [vmem:[#allocation8 + $0x238] ss:$20 sps:$4 sm:$0xff]  }
 0x159   :  { %v9405_v49 = vpop.eup %9404  ;;  %9416 = vpow2.f32 %v7350_v43 }
 0x15a   :  { %v747_v53 = vmul.f32 %v9405_v49, %v9397_v34  ;;  %9418 = vtanh.f32 %v513_v40  ;;  %v8667_v34 = vld [vmem:[#allocation8 + $0x500] ss:$20 sps:$4 sm:$0xff]   ;;  %v8684_v49 = vld [vmem:[#allocation8 + $0x37c] ss:$20 sps:$4 sm:$0xff]  }
 0x15b   :  { %v9407_v51 = vpop.eup %9406  ;;  %9420 = vrcp.f32 %v325_v50  ;;  %v8676_v40 = vld [vmem:[#allocation8 + $0x3a0] ss:$20 sps:$4 sm:$0xff]  }
 0x15c   :  { %v748_v19 = vmul.f32 %v9407_v51, %v9403_v46  ;;  %v10453_v56 = vpack.c.bf16 %v747_v53, %v747_v53  ;;  %v8681_v46 = vld [vmem:[#allocation8 + $0x23c] ss:$20 sps:$4 sm:$0xff]   ;;  %v8687_v51 = vld [vmem:[#allocation8 + $0x214] ss:$20 sps:$4 sm:$0xff]   ;;  %v8682_v53 = vld [vmem:[#allocation8 + $0x378] ss:$20 sps:$4 sm:$0xff]  }
 0x15e   :  { %v10451_v54 = vpack.c.bf16 %v748_v19, %v748_v19  ;;  %v9409_v41 = vpop.eup %9408  ;;  %v8685_v19 = vld [vmem:[#allocation8 + $0x210] ss:$20 sps:$4 sm:$0xff]  }
 0x15f   :  { %v9411_v60 = vpop.eup %9410 }
 0x160   :  { %2075 = vmatprep.mubr.bf16.mxu0 %v10451_v54 }
 0x161   :  { %2076 = vmatmul.mubr.bf16.vlgmr.msra.gmra.mxu0 %v10453_v56 }
 0x162   :  { %2126 = vmatpush1.bf16.msra.mxu0 %v8629_v55  ;;  %v8690_v55 = vld [vmem:[#allocation8 + $0x354] ss:$20 sps:$4 sm:$0xff]  }
 0x163   :  { %2127 = vmatprep.subr.bf16.mxu0 %v8637_v57  ;;  %v8693_v57 = vld [vmem:[#allocation8 + $0x1ec] ss:$20 sps:$4 sm:$0xff]  }
 0x164   :  { %v9413_v61 = vpop.eup %9412 }
 0x165   :  { %v9415_v62 = vpop.eup %9414  ;;  %v745_v1 = vmul.f32 %v9413_v61, %v9409_v41  ;;  %v8696_v41 = vld [vmem:[#allocation8 + $0x32c] ss:$20 sps:$4 sm:$0xff]  }
 0x166   :  { %2128 = vmatpush1.bf16.msra.mxu0 %v8635_v63  ;;  %v9417_v4 = vpop.eup %9416  ;;  %v746_v5 = vmul.f32 %v9415_v62, %v9411_v60  ;;  %v8688_v63 = vld [vmem:[#allocation8 + $0x350] ss:$20 sps:$4 sm:$0xff]   ;;  %v8694_v60 = vld [vmem:[#allocation8 + $0x328] ss:$20 sps:$4 sm:$0xff]   ;;  %v8697_v61 = vld [vmem:[#allocation8 + $0x1c0] ss:$20 sps:$4 sm:$0xff]  }
 0x167   :  { %2129 = vmatprep.subr.bf16.mxu0 %v8641_v58  ;;  %v9419_v7 = vpop.eup %9418  ;;  %v10461_v9 = vpack.c.bf16 %v745_v1, %v745_v1  ;;  %v724_v10 = vadd.f32 1.0, %v9417_v4  ;;  %v8691_v58 = vld [vmem:[#allocation8 + $0x1e8] ss:$20 sps:$4 sm:$0xff]   ;;  %v8702_v62 = vld [vmem:[#allocation8 + $0x304] ss:$20 sps:$4 sm:$0xff]  }
 0x168   :  { %v9421_v52 = vpop.eup %9420  ;;  %v10459_v8 = vpack.c.bf16 %v746_v5, %v746_v5  ;;  %v8705_v1 = vld [vmem:[#allocation8 + $0x19c] ss:$20 sps:$4 sm:$0xff]   ;;  %v8711_v5 = vld [vmem:[#allocation8 + $0x174] ss:$20 sps:$4 sm:$0xff]  }
 0x169   :  { %v739_v15 = vmul.f32 %v9421_v52, %v9419_v7  ;;  %9422 = vrcp.f32 %v724_v10  ;;  %v8708_v4 = vld [vmem:[#allocation8 + $0x2dc] ss:$20 sps:$4 sm:$0xff]   ;;  %v8714_v52 = vld [vmem:[#allocation8 + $0x2b4] ss:$20 sps:$4 sm:$0xff]   ;;  %v8717_v10 = vld [vmem:[#allocation8 + $0x14c] ss:$20 sps:$4 sm:$0xff]  }
 0x16a   :  { %2130 = vmatpush1.bf16.msra.mxu0 %v8639_v59  ;;  %2034 = vmatprep.mubr.bf16.mxu1 %v10459_v8  ;;  %v8699_v59 = vld [vmem:[#allocation8 + $0x1c4] ss:$20 sps:$4 sm:$0xff]  }
 0x16b   :  { %2131 = vmatprep.subr.bf16.mxu0 %v8648_v2  ;;  %2157 = vmatprep.mubr.bf16.mxu0 %v10459_v8  ;;  %9424 = vtanh.f32 %v739_v15  ;;  %v8703_v2 = vld [vmem:[#allocation8 + $0x198] ss:$20 sps:$4 sm:$0xff]   ;;  %v8709_v7 = vld [vmem:[#allocation8 + $0x170] ss:$20 sps:$4 sm:$0xff]  }
 0x16c   :  { %2035 = vmatmul.mubr.bf16.vlgmr.msra.gmra.mxu1 %v10461_v9 }
 0x16d   :  { %2089 = vmatpush1.bf16.msra.mxu1 %v10464_v11  ;;  %2116 = vmatprep.mubr.bf16.mxu1 %v10284_v0 }
 0x16e   :  { %2132 = vmatpush1.bf16.msra.mxu0 %v8646_v6  ;;  %2090 = vmatprep.subr.bf16.mxu1 %v8645_v12  ;;  %v8706_v6 = vld [vmem:[#allocation8 + $0x2d8] ss:$20 sps:$4 sm:$0xff]   ;;  %v978_v12 = vld [vmem:[#allocation8 + $0x5d0] sm:$0xff] }
 0x16f   :  { %2133 = vmatprep.subr.bf16.mxu0 %v8654_v13  ;;  %v8712_v13 = vld [vmem:[#allocation8 + $0x2b0] ss:$20 sps:$4 sm:$0xff]   ;;  %v7538_v15 = vcombine.low %v978_v12, %v978_v12 }
 0x171   :  { %2091 = vmatpush1.bf16.msra.mxu1 %v8643_v37  ;;  %v8715_v37 = vld [vmem:[#allocation8 + $0x148] ss:$20 sps:$4 sm:$0xff]  }
 0x172   :  { %2134 = vmatpush1.bf16.msra.mxu0 %v8652_v14  ;;  %2092 = vmatprep.subr.bf16.mxu1 %v8651_v16  ;;  %v8720_v14 = vld [vmem:[#allocation8 + $0x28c] ss:$20 sps:$4 sm:$0xff]   ;;  %v10476_v16 = vcombine.high %v978_v12, %v978_v12 }
 0x173   :  { %2135 = vmatprep.subr.bf16.mxu0 %v8660_v18  ;;  %v8718_v18 = vld [vmem:[#allocation8 + $0x288] ss:$20 sps:$4 sm:$0xff]   ;;  %v8776_v12 = vld [vmem:[#allocation8 + $0xd8] ss:$20 sps:$4 sm:$0xff]  }
 0x175   :  { %2093 = vmatpush1.bf16.msra.mxu1 %v8649_v20  ;;  %v8723_v20 = vld [vmem:[#allocation8 + $0x4e4] ss:$20 sps:$4 sm:$0xff]  }
 0x176   :  { %2136 = vmatpush1.bf16.msra.mxu0 %v8658_v21  ;;  %2094 = vmatprep.subr.bf16.mxu1 %v8657_v22  ;;  %v9423_v33 = vpop.eup %9422  ;;  %v10479_v21 = vsel %vm1986_vm3, %v7538_v15, 0  ;;  %v8731_v22 = vld [vmem:[#allocation8 + $0x5ac] ss:$20 sps:$4 sm:$0xff]   ;;  %v8780_v15 = vld [vmem:[#allocation8 + $0xb0] ss:$20 sps:$4 sm:$0xff]  }
 0x177   :  { %2137 = vmatprep.subr.bf16.mxu0 %v8666_v23  ;;  %v8721_v23 = vld [vmem:[#allocation8 + $0x4e0] ss:$20 sps:$4 sm:$0xff]  }
 0x178   :  { %v9425_v35 = vpop.eup %9424 }
 0x179   :  { %2095 = vmatpush1.bf16.msra.mxu1 %v8655_v24  ;;  %v749_v43 = vmul.f32 %v9425_v35, %v9423_v33  ;;  %v8728_v24 = vld [vmem:[#allocation8 + $0x4bc] ss:$20 sps:$4 sm:$0xff]   ;;  %v8740_v33 = vld [vmem:[#allocation8 + $0x46c] ss:$20 sps:$4 sm:$0xff]   ;;  %v8749_v35 = vld [vmem:[#allocation8 + $0x534] ss:$20 sps:$4 sm:$0xff]  }
 0x17a   :  { %2138 = vmatpush1.bf16.msra.mxu0 %v8664_v25  ;;  %2096 = vmatprep.subr.bf16.mxu1 %v8663_v26  ;;  %v8729_v25 = vld [vmem:[#allocation8 + $0x5a8] ss:$20 sps:$4 sm:$0xff]   ;;  %v8737_v26 = vld [vmem:[#allocation8 + $0x584] ss:$20 sps:$4 sm:$0xff]  }
 0x17b   :  { %2139 = vmatprep.subr.bf16.mxu0 %v8672_v27  ;;  %v10471_v50 = vpack.c.bf16 %v749_v43, %v749_v43  ;;  %v8726_v27 = vld [vmem:[#allocation8 + $0x4b8] ss:$20 sps:$4 sm:$0xff]   ;;  %v8747_v43 = vld [vmem:[#allocation8 + $0x530] ss:$20 sps:$4 sm:$0xff]  }
 0x17d   :  { %2097 = vmatpush1.bf16.msra.mxu1 %v8661_v28  ;;  %v8734_v28 = vld [vmem:[#allocation8 + $0x494] ss:$20 sps:$4 sm:$0xff]  }
 0x17e   :  { %2140 = vmatpush1.bf16.msra.mxu0 %v8670_v30  ;;  %2098 = vmatprep.subr.bf16.mxu1 %v8669_v31  ;;  %v8735_v30 = vld [vmem:[#allocation8 + $0x580] ss:$20 sps:$4 sm:$0xff]   ;;  %v8743_v31 = vld [vmem:[#allocation8 + $0x55c] ss:$20 sps:$4 sm:$0xff]  }
 0x17f   :  { %2141 = vmatprep.subr.bf16.mxu0 %v8675_v32  ;;  %v8732_v32 = vld [vmem:[#allocation8 + $0x490] ss:$20 sps:$4 sm:$0xff]  }
 0x181   :  { %2099 = vmatpush1.bf16.msra.mxu1 %v8667_v34  ;;  %v8741_v34 = vld [vmem:[#allocation8 + $0x558] ss:$20 sps:$4 sm:$0xff]  }
 0x182   :  { %2142 = vmatpush2.bf16.msra.mxu0 %v8673_v36  ;;  %2166 = vmatprep.subr.bf16.mxu1 %v8678_v39  ;;  %v8738_v36 = vld [vmem:[#allocation8 + $0x468] ss:$20 sps:$4 sm:$0xff]   ;;  %v8746_v39 = vld [vmem:[#allocation8 + $0x444] ss:$20 sps:$4 sm:$0xff]  }
 0x183   :  { %2143 = vmatprep.subr.bf16.mxu0 %v8681_v46  ;;  %v8755_v46 = vld [vmem:[#allocation8 + $0x50c] ss:$20 sps:$4 sm:$0xff]  }
 0x184   :  { %7542 = vmatmul.mubr.msk.bf16.vlgmr.msra.gmra.mxu1 %vm1982_vm4, %v10471_v50 }
 0x185   :  { %2167 = vmatpush1.bf16.msra.mxu1 %v8676_v40  ;;  %2198 = vmatprep.mubr.bf16.mxu1 %v10451_v54  ;;  %v8744_v40 = vld [vmem:[#allocation8 + $0x440] ss:$20 sps:$4 sm:$0xff]  }
 0x186   :  { %2168 = vmatprep.subr.bf16.mxu1 %v8684_v49  ;;  %2144 = vmatpush2.bf16.msra.mxu0 %v8679_v3  ;;  %v8752_v3 = vld [vmem:[#allocation8 + $0x41c] ss:$20 sps:$4 sm:$0xff]  }
 0x187   :  { %2145 = vmatprep.subr.bf16.mxu0 %v8687_v51  ;;  %v8753_v49 = vld [vmem:[#allocation8 + $0x508] ss:$20 sps:$4 sm:$0xff]  }
 0x188   :  { %v8759_v51 = vld [vmem:[#allocation8 + $0x4e8] ss:$20 sps:$4 sm:$0xff]  }
 0x189   :  { %2169 = vmatpush1.bf16.msra.mxu1 %v8682_v53  ;;  %v8750_v53 = vld [vmem:[#allocation8 + $0x418] ss:$20 sps:$4 sm:$0xff]  }
 0x18a   :  { %2170 = vmatprep.subr.bf16.mxu1 %v8690_v55  ;;  %2146 = vmatpush2.bf16.msra.mxu0 %v8685_v19  ;;  %v8758_v19 = vld [vmem:[#allocation8 + $0x3f4] ss:$20 sps:$4 sm:$0xff]  }
 0x18b   :  { %2147 = vmatprep.subr.bf16.mxu0 %v8693_v57  ;;  %v8760_v55 = vld [vmem:[#allocation8 + $0x3a8] ss:$20 sps:$4 sm:$0xff]   ;;  %v8764_v57 = vld [vmem:[#allocation8 + $0x4c0] ss:$20 sps:$4 sm:$0xff]  }
 0x18d   :  { %2171 = vmatpush1.bf16.msra.mxu1 %v8688_v63  ;;  %v8756_v63 = vld [vmem:[#allocation8 + $0x3f0] ss:$20 sps:$4 sm:$0xff]  }
 0x18e   :  { %2172 = vmatprep.subr.bf16.mxu1 %v8696_v41  ;;  %2148 = vmatpush2.bf16.msra.mxu0 %v8691_v58  ;;  %v8763_v58 = vld [vmem:[#allocation8 + $0x3cc] ss:$20 sps:$4 sm:$0xff]  }
 0x18f   :  { %2149 = vmatprep.subr.bf16.mxu0 %v8699_v59  ;;  %v8765_v41 = vld [vmem:[#allocation8 + $0x380] ss:$20 sps:$4 sm:$0xff]   ;;  %v8767_v59 = vld [vmem:[#allocation8 + $0x498] ss:$20 sps:$4 sm:$0xff]  }
 0x191   :  { %2173 = vmatpush1.bf16.msra.mxu1 %v8694_v60  ;;  %v8761_v60 = vld [vmem:[#allocation8 + $0x3c8] ss:$20 sps:$4 sm:$0xff]  }
 0x192   :  { %2174 = vmatprep.subr.bf16.mxu1 %v8702_v62  ;;  %2150 = vmatpush2.bf16.msra.mxu0 %v8697_v61  ;;  %v8766_v61 = vld [vmem:[#allocation8 + $0x268] ss:$20 sps:$4 sm:$0xff]   ;;  %v8769_v62 = vld [vmem:[#allocation8 + $0x358] ss:$20 sps:$4 sm:$0xff]  }
 0x193   :  { %2151 = vmatprep.subr.bf16.mxu0 %v8705_v1  ;;  %v8771_v1 = vld [vmem:[#allocation8 + $0x470] ss:$20 sps:$4 sm:$0xff]  }
 0x195   :  { %2175 = vmatpush1.bf16.msra.mxu1 %v8700_v47  ;;  %v8768_v47 = vld [vmem:[#allocation8 + $0x128] ss:$20 sps:$4 sm:$0xff]  }
 0x196   :  { %2176 = vmatprep.subr.bf16.mxu1 %v8708_v4  ;;  %2152 = vmatpush2.bf16.msra.mxu0 %v8703_v2  ;;  %v8770_v2 = vld [vmem:[#allocation8 + $0x240] ss:$20 sps:$4 sm:$0xff]   ;;  %v8773_v4 = vld [vmem:[#allocation8 + $0x330] ss:$20 sps:$4 sm:$0xff]  }
 0x197   :  { %2153 = vmatprep.subr.bf16.mxu0 %v8711_v5  ;;  %v8775_v5 = vld [vmem:[#allocation8 + $0x448] ss:$20 sps:$4 sm:$0xff]  }
 0x199   :  { %2177 = vmatpush1.bf16.msra.mxu1 %v8706_v6  ;;  %v8772_v6 = vld [vmem:[#allocation8 + $0x100] ss:$20 sps:$4 sm:$0xff]  }
 0x19a   :  { %2178 = vmatprep.subr.bf16.mxu1 %v8714_v52  ;;  %2154 = vmatpush2.bf16.msra.mxu0 %v8709_v7  ;;  %v8774_v7 = vld [vmem:[#allocation8 + $0x218] ss:$20 sps:$4 sm:$0xff]   ;;  %v8777_v52 = vld [vmem:[#allocation8 + $0x308] ss:$20 sps:$4 sm:$0xff]  }
 0x19b   :  { %2155 = vmatprep.subr.bf16.mxu0 %v8717_v10  ;;  %v8779_v10 = vld [vmem:[#allocation8 + $0x420] ss:$20 sps:$4 sm:$0xff]  }
 0x19d   :  { %2179 = vmatpush1.bf16.msra.mxu1 %v8712_v13  ;;  %v8778_v13 = vld [vmem:[#allocation8 + $0x1f0] ss:$20 sps:$4 sm:$0xff]  }
 0x19e   :  { %2180 = vmatprep.subr.bf16.mxu1 %v8720_v14  ;;  %2156 = vmatpush2.bf16.msra.mxu0 %v8715_v37  ;;  %v8781_v37 = vld [vmem:[#allocation8 + $0x2e0] ss:$20 sps:$4 sm:$0xff]   ;;  %v8783_v14 = vld [vmem:[#allocation8 + $0x3f8] ss:$20 sps:$4 sm:$0xff]  }
 0x19f   :  { %7543 = vmatprep.subr.msk.bf16.mxu0 %vm1986_vm3, %v10476_v16 }
 0x1a1   :  { %2181 = vmatpush1.bf16.msra.mxu1 %v8718_v18  ;;  %2158 = vmatmul.mubr.bf16.vlgmr.msra.gmra.mxu0 %v10461_v9  ;;  %v8782_v18 = vld [vmem:[#allocation8 + $0x1c8] ss:$20 sps:$4 sm:$0xff]  }
 0x1a2   :  { %2182 = vmatprep.subr.bf16.mxu1 %v8723_v20  ;;  %2212 = vmatpush1.bf16.msra.mxu0 %v10479_v21  ;;  %v8785_v20 = vld [vmem:[#allocation8 + $0x2b8] ss:$20 sps:$4 sm:$0xff]  }
 0x1a3   :  { %2213 = vmatprep.subr.bf16.mxu0 %v8731_v22  ;;  %2239 = vmatprep.mubr.bf16.mxu0 %v10284_v0  ;;  %v8787_v22 = vld [vmem:[#allocation8 + $0x3d0] ss:$20 sps:$4 sm:$0xff]  }
 0x1a5   :  { %2183 = vmatpush2.bf16.msra.mxu1 %v8721_v23  ;;  %v8784_v23 = vld [vmem:[#allocation8 + $0x88] ss:$20 sps:$4 sm:$0xff]  }
 0x1a6   :  { %2184 = vmatprep.subr.bf16.mxu1 %v8728_v24  ;;  %2214 = vmatpush1.bf16.msra.mxu0 %v8729_v25  ;;  %v8786_v24 = vld [vmem:[#allocation8 + $0x1a0] ss:$20 sps:$4 sm:$0xff]   ;;  %v8789_v25 = vld [vmem:[#allocation8 + $0x290] ss:$20 sps:$4 sm:$0xff]  }
 0x1a7   :  { %2215 = vmatprep.subr.bf16.mxu0 %v8737_v26  ;;  %v8793_v26 = vld [vmem:[#allocation8 + $0x6f8] ss:$20 sps:$4 sm:$0xff]  }
 0x1a9   :  { %2185 = vmatpush2.bf16.msra.mxu1 %v8726_v27  ;;  %v8788_v27 = vld [vmem:[#allocation8 + $0x60] ss:$20 sps:$4 sm:$0xff]  }
 0x1aa   :  { %2186 = vmatprep.subr.bf16.mxu1 %v8734_v28  ;;  %2216 = vmatpush1.bf16.msra.mxu0 %v8735_v30  ;;  %v8790_v28 = vld [vmem:[#allocation8 + $0x178] ss:$20 sps:$4 sm:$0xff]   ;;  %v8791_v30 = vld [vmem:[#allocation8 + $0x6f4] ss:$20 sps:$4 sm:$0xff]  }
 0x1ab   :  { %2217 = vmatprep.subr.bf16.mxu0 %v8743_v31  ;;  %v8798_v31 = vld [vmem:[#allocation8 + $0x6d0] ss:$20 sps:$4 sm:$0xff]  }
 0x1ad   :  { %2187 = vmatpush2.bf16.msra.mxu1 %v8732_v32  ;;  %v8794_v32 = vld [vmem:[#allocation8 + $0x38] ss:$20 sps:$4 sm:$0xff]  }
 0x1ae   :  { %2188 = vmatprep.subr.bf16.mxu1 %v8740_v33  ;;  %2218 = vmatpush1.bf16.msra.mxu0 %v8741_v34  ;;  %v8795_v33 = vld [vmem:[#allocation8 + $0x150] ss:$20 sps:$4 sm:$0xff]   ;;  %v8796_v34 = vld [vmem:[#allocation8 + $0x6cc] ss:$20 sps:$4 sm:$0xff]  }
 0x1af   :  { %2219 = vmatprep.subr.bf16.mxu0 %v8749_v35  ;;  %v8802_v35 = vld [vmem:[#allocation8 + $0x6a8] ss:$20 sps:$4 sm:$0xff]  }
 0x1b1   :  { %2189 = vmatpush2.bf16.msra.mxu1 %v8738_v36  ;;  %v8799_v36 = vld [vmem:[#allocation8 + $0x10] ss:$20 sps:$4 sm:$0xff]  }
 0x1b2   :  { %2190 = vmatprep.subr.bf16.mxu1 %v8746_v39  ;;  %2220 = vmatpush1.bf16.msra.mxu0 %v8747_v43  ;;  %v8800_v39 = vld [vmem:[#allocation8 + $0x6a4] ss:$20 sps:$4 sm:$0xff]  }
 0x1b3   :  { %2221 = vmatprep.subr.bf16.mxu0 %v8755_v46  ;;  %v8803_v43 = vld [vmem:[#allocation8 + $0x5d8] ss:$0 sps:$4 sm:$0xff]   ;;  %v8806_v46 = vld [vmem:[#allocation8 + $0x680] ss:$20 sps:$4 sm:$0xff]  }
 0x1b5   :  { %2191 = vmatpush2.bf16.msra.mxu1 %v8744_v40  ;;  %v10495_v40 = vsel %vm1986_vm3, %v8803_v43, 0  ;;  %v8871_v43 = vld [vmem:[#allocation8 + $0x860] ss:$20 sps:$4 sm:$0xff]  }
 0x1b6   :  { %2192 = vmatprep.subr.bf16.mxu1 %v8752_v3  ;;  %2222 = vmatpush1.bf16.msra.mxu0 %v8753_v49  ;;  %v8804_v3 = vld [vmem:[#allocation8 + $0x67c] ss:$20 sps:$4 sm:$0xff]   ;;  %v8810_v49 = vld [vmem:[#allocation8 + $0x658] ss:$20 sps:$4 sm:$0xff]  }
 0x1b7   :  { %8039 = vmatprep.subr.bf16.mxu0 %v8759_v51  ;;  %v8807_v51 = vld [vmem:[#allocation8 + $0x5b0] ss:$20 sps:$4 sm:$0xff]  }
 0x1b9   :  { %2193 = vmatpush2.bf16.msra.mxu1 %v8750_v53  ;;  %7544 = vmatmul.mubr.msk.bf16.vlgmr.msra.gmra.mxu0 %vm1982_vm4, %v10471_v50  ;;  %v8808_v53 = vld [vmem:[#allocation8 + $0x654] ss:$20 sps:$4 sm:$0xff]  }
 0x1ba   :  { %2194 = vmatprep.subr.bf16.mxu1 %v8758_v19  ;;  %8040 = vmatpush3.bf16.msra.mxu0 %v8760_v55  ;;  %v8814_v19 = vld [vmem:[#allocation8 + $0x630] ss:$20 sps:$4 sm:$0xff]   ;;  %v8811_v55 = vld [vmem:[#allocation8 + $0x588] ss:$20 sps:$4 sm:$0xff]  }
 0x1bb   :  { %2320 = vmatprep.mubr.bf16.mxu0 %v10451_v54  ;;  %8041 = vmatprep.subr.bf16.mxu0 %v8764_v57  ;;  %v8812_v57 = vld [vmem:[#allocation8 + $0x62c] ss:$20 sps:$4 sm:$0xff]  }
 0x1bd   :  { %2195 = vmatpush2.bf16.msra.mxu1 %v8756_v63  ;;  %v8818_v63 = vld [vmem:[#allocation8 + $0x608] ss:$20 sps:$4 sm:$0xff]  }
 0x1be   :  { %2196 = vmatprep.subr.bf16.mxu1 %v8763_v58  ;;  %8042 = vmatpush3.bf16.msra.mxu0 %v8765_v41  ;;  %v8815_v58 = vld [vmem:[#allocation8 + $0x560] ss:$20 sps:$4 sm:$0xff]   ;;  %v8816_v41 = vld [vmem:[#allocation8 + $0x604] ss:$20 sps:$4 sm:$0xff]  }
 0x1bf   :  { %8043 = vmatprep.subr.bf16.mxu0 %v8767_v59  ;;  %v8822_v59 = vld [vmem:[#allocation8 + $0x5e0] ss:$20 sps:$4 sm:$0xff]  }
 0x1c1   :  { %2197 = vmatpush2.bf16.msra.mxu1 %v8761_v60  ;;  %v8819_v60 = vld [vmem:[#allocation8 + $0x538] ss:$20 sps:$4 sm:$0xff]  }
 0x1c2   :  { %8017 = vmatprep.subr.bf16.mxu1 %v8766_v61  ;;  %8044 = vmatpush3.bf16.msra.mxu0 %v8769_v62  ;;  %v8820_v61 = vld [vmem:[#allocation8 + $0x5dc] ss:$20 sps:$4 sm:$0xff]   ;;  %v8826_v62 = vld [vmem:[#allocation8 + $0x838] ss:$20 sps:$4 sm:$0xff]  }
 0x1c3   :  { %8045 = vmatprep.subr.bf16.mxu0 %v8771_v1  ;;  %v8823_v1 = vld [vmem:[#allocation8 + $0x510] ss:$20 sps:$4 sm:$0xff]  }
 0x1c4   :  { %2199 = vmatmul.mubr.bf16.vlgmr.msra.gmra.mxu1 %v10453_v56 }
 0x1c5   :  { %8018 = vmatpush3.bf16.msra.mxu1 %v8768_v47  ;;  %2280 = vmatprep.mubr.bf16.mxu1 %v10459_v8  ;;  %v8824_v47 = vld [vmem:[#allocation8 + $0x834] ss:$20 sps:$4 sm:$0xff]  }
 0x1c6   :  { %8019 = vmatprep.subr.bf16.mxu1 %v8770_v2  ;;  %8046 = vmatpush3.bf16.msra.mxu0 %v8773_v4  ;;  %v8829_v2 = vld [vmem:[#allocation8 + $0x978] ss:$20 sps:$4 sm:$0xff]   ;;  %v8832_v4 = vld [vmem:[#allocation8 + $0x810] ss:$20 sps:$4 sm:$0xff]  }
 0x1c7   :  { %8047 = vmatprep.subr.bf16.mxu0 %v8775_v5  ;;  %v8827_v5 = vld [vmem:[#allocation8 + $0x974] ss:$20 sps:$4 sm:$0xff]  }
 0x1c9   :  { %8020 = vmatpush3.bf16.msra.mxu1 %v8772_v6  ;;  %v8830_v6 = vld [vmem:[#allocation8 + $0x80c] ss:$20 sps:$4 sm:$0xff]  }
 0x1ca   :  { %8021 = vmatprep.subr.bf16.mxu1 %v8774_v7  ;;  %8048 = vmatpush3.bf16.msra.mxu0 %v8777_v52  ;;  %v8835_v7 = vld [vmem:[#allocation8 + $0x950] ss:$20 sps:$4 sm:$0xff]   ;;  %v8838_v52 = vld [vmem:[#allocation8 + $0x7e8] ss:$20 sps:$4 sm:$0xff]  }
 0x1cb   :  { %8049 = vmatprep.subr.bf16.mxu0 %v8779_v10  ;;  %v8833_v10 = vld [vmem:[#allocation8 + $0x94c] ss:$20 sps:$4 sm:$0xff]  }
 0x1cd   :  { %8022 = vmatpush3.bf16.msra.mxu1 %v8776_v12  ;;  %v8836_v12 = vld [vmem:[#allocation8 + $0x7e4] ss:$20 sps:$4 sm:$0xff]  }
 0x1ce   :  { %8023 = vmatprep.subr.bf16.mxu1 %v8778_v13  ;;  %8050 = vmatpush3.bf16.msra.mxu0 %v8781_v37  ;;  %v8841_v13 = vld [vmem:[#allocation8 + $0x928] ss:$20 sps:$4 sm:$0xff]   ;;  %v8844_v37 = vld [vmem:[#allocation8 + $0x7c0] ss:$20 sps:$4 sm:$0xff]  }
 0x1cf   :  { %8051 = vmatprep.subr.bf16.mxu0 %v8783_v14  ;;  %v8839_v14 = vld [vmem:[#allocation8 + $0x924] ss:$20 sps:$4 sm:$0xff]  }
 0x1d1   :  { %8024 = vmatpush3.bf16.msra.mxu1 %v8780_v15  ;;  %v8842_v15 = vld [vmem:[#allocation8 + $0x7bc] ss:$20 sps:$4 sm:$0xff]  }
 0x1d2   :  { %8025 = vmatprep.subr.bf16.mxu1 %v8782_v18  ;;  %8052 = vmatpush3.bf16.msra.mxu0 %v8785_v20  ;;  %v8847_v18 = vld [vmem:[#allocation8 + $0x900] ss:$20 sps:$4 sm:$0xff]   ;;  %v8850_v20 = vld [vmem:[#allocation8 + $0x798] ss:$20 sps:$4 sm:$0xff]  }
 0x1d3   :  { %8053 = vmatprep.subr.bf16.mxu0 %v8787_v22  ;;  %v8845_v22 = vld [vmem:[#allocation8 + $0x8fc] ss:$20 sps:$4 sm:$0xff]  }
 0x1d5   :  { %8026 = vmatpush3.bf16.msra.mxu1 %v8784_v23  ;;  %v8848_v23 = vld [vmem:[#allocation8 + $0x794] ss:$20 sps:$4 sm:$0xff]  }
 0x1d6   :  { %8027 = vmatprep.subr.bf16.mxu1 %v8786_v24  ;;  %8054 = vmatpush3.bf16.msra.mxu0 %v8789_v25  ;;  %v8853_v24 = vld [vmem:[#allocation8 + $0x8d8] ss:$20 sps:$4 sm:$0xff]   ;;  %v8856_v25 = vld [vmem:[#allocation8 + $0x770] ss:$20 sps:$4 sm:$0xff]  }
 0x1d7   :  { %3642 = vmatprep.subr.bf16.mxu0 %v8793_v26  ;;  %v8851_v26 = vld [vmem:[#allocation8 + $0x8d4] ss:$20 sps:$4 sm:$0xff]  }
 0x1d9   :  { %8028 = vmatpush3.bf16.msra.mxu1 %v8788_v27  ;;  %2321 = vmatmul.mubr.bf16.vlgmr.msra.gmra.mxu0 %v10453_v56  ;;  %v8854_v27 = vld [vmem:[#allocation8 + $0x76c] ss:$20 sps:$4 sm:$0xff]  }
 0x1da   :  { %8029 = vmatprep.subr.bf16.mxu1 %v8790_v28  ;;  %3643 = vmatpush1.bf16.msra.mxu0 %v8791_v30  ;;  %v8859_v28 = vld [vmem:[#allocation8 + $0x8b0] ss:$20 sps:$4 sm:$0xff]   ;;  %v8862_v30 = vld [vmem:[#allocation8 + $0x748] ss:$20 sps:$4 sm:$0xff]  }
 0x1db   :  { %3674 = vmatprep.mubr.bf16.mxu0 %v10459_v8  ;;  %3644 = vmatprep.subr.bf16.mxu0 %v8798_v31  ;;  %v8857_v31 = vld [vmem:[#allocation8 + $0x8ac] ss:$20 sps:$4 sm:$0xff]  }
 0x1dd   :  { %8030 = vmatpush3.bf16.msra.mxu1 %v8794_v32  ;;  %v8860_v32 = vld [vmem:[#allocation8 + $0x744] ss:$20 sps:$4 sm:$0xff]  }
 0x1de   :  { %8031 = vmatprep.subr.bf16.mxu1 %v8795_v33  ;;  %3645 = vmatpush1.bf16.msra.mxu0 %v8796_v34  ;;  %v8865_v33 = vld [vmem:[#allocation8 + $0x888] ss:$20 sps:$4 sm:$0xff]   ;;  %v8868_v34 = vld [vmem:[#allocation8 + $0x720] ss:$20 sps:$4 sm:$0xff]  }
 0x1df   :  { %3646 = vmatprep.subr.bf16.mxu0 %v8802_v35  ;;  %v2621_v35 = vld [vmem:[#allocation8 + $0xba4] sm:$0xff] }
 0x1e1   :  { %8032 = vmatpush3.bf16.msra.mxu1 %v8799_v36  ;;  %v8863_v36 = vld [vmem:[#allocation8 + $0x884] ss:$20 sps:$4 sm:$0xff]  }
 0x1e2   :  { %8392 = vmatprep.subr.bf16.mxu1 %v10285_v17  ;;  %3647 = vmatpush1.bf16.msra.mxu0 %v8800_v39  ;;  %v8866_v39 = vld [vmem:[#allocation8 + $0x71c] ss:$20 sps:$4 sm:$0xff]  }
 0x1e3   :  { %3648 = vmatprep.subr.bf16.mxu0 %v8806_v46  ;;  %v10509_v46 = vcombine.high %v2621_v35, %v2621_v35 }
 0x1e4   :  { %2281 = vmatmul.mubr.bf16.vlgmr.msra.gmra.mxu1 %v10461_v9 }
 0x1e5   :  { %8393 = vmatpush3.bf16.msra.mxu1 %v10495_v40  ;;  %8404 = vmatprep.mubr.msk.bf16.mxu1 %vm10286_vm2, %v10285_v17 }
 0x1e6   :  { %8394 = vmatprep.subr.bf16.mxu1 %v10285_v17  ;;  %3649 = vmatpush1.bf16.msra.mxu0 %v8804_v3  ;;  %v7736_v3 = vcombine.low %v2621_v35, %v2621_v35  ;;  %v8907_v35 = vld [vmem:[#allocation8 + $0x9c4] ss:$20 sps:$4 sm:$0xff]  }
 0x1e7   :  { %3650 = vmatprep.subr.bf16.mxu0 %v8810_v49  ;;  %v8869_v49 = vld [vmem:[#allocation8 + $0x85c] ss:$20 sps:$4 sm:$0xff]  }
 0x1e9   :  { %8395 = vmatpush3.bf16.msra.mxu1 %v8807_v51  ;;  %v8874_v51 = vld [vmem:[#allocation8 + $0xab8] ss:$20 sps:$4 sm:$0xff]  }
 0x1ea   :  { %8396 = vmatprep.subr.bf16.mxu1 %v10285_v17  ;;  %3651 = vmatpush1.bf16.msra.mxu0 %v8808_v53  ;;  %v10514_v53 = vsel %vm1986_vm3, %v7736_v3, 0  ;;  %v8916_v3 = vld [vmem:[#allocation8 + $0x954] ss:$20 sps:$4 sm:$0xff]  }
 0x1eb   :  { %3652 = vmatprep.subr.bf16.mxu0 %v8814_v19  ;;  %v8882_v19 = vld [vmem:[#allocation8 + $0xb80] ss:$20 sps:$4 sm:$0xff]  }
 0x1ed   :  { %8397 = vmatpush3.bf16.msra.mxu1 %v8811_v55  ;;  %v8872_v55 = vld [vmem:[#allocation8 + $0xab4] ss:$20 sps:$4 sm:$0xff]  }
 0x1ee   :  { %8398 = vmatprep.subr.bf16.mxu1 %v10285_v17  ;;  %3653 = vmatpush1.bf16.msra.mxu0 %v8812_v57  ;;  %v8879_v57 = vld [vmem:[#allocation8 + $0xa90] ss:$20 sps:$4 sm:$0xff]  }
 0x1ef   :  { %3654 = vmatprep.subr.bf16.mxu0 %v8818_v63  ;;  %v8880_v63 = vld [vmem:[#allocation8 + $0xb7c] ss:$20 sps:$4 sm:$0xff]  }
 0x1f1   :  { %8399 = vmatpush3.bf16.msra.mxu1 %v8815_v58  ;;  %v8888_v58 = vld [vmem:[#allocation8 + $0xb58] ss:$20 sps:$4 sm:$0xff]  }
 0x1f2   :  { %8400 = vmatprep.subr.bf16.mxu1 %v10285_v17  ;;  %3655 = vmatpush1.bf16.msra.mxu0 %v8816_v41  ;;  %v8877_v41 = vld [vmem:[#allocation8 + $0xa8c] ss:$20 sps:$4 sm:$0xff]  }
 0x1f3   :  { %3656 = vmatprep.subr.bf16.mxu0 %v8822_v59  ;;  %v8885_v59 = vld [vmem:[#allocation8 + $0xa68] ss:$20 sps:$4 sm:$0xff]  }
 0x1f5   :  { %8401 = vmatpush3.bf16.msra.mxu1 %v8819_v60  ;;  %v8886_v60 = vld [vmem:[#allocation8 + $0xb54] ss:$20 sps:$4 sm:$0xff]  }
 0x1f6   :  { %8402 = vmatprep.subr.bf16.mxu1 %v10285_v17  ;;  %3657 = vmatpush1.bf16.msra.mxu0 %v8820_v61  ;;  %v8894_v61 = vld [vmem:[#allocation8 + $0xb30] ss:$20 sps:$4 sm:$0xff]  }
 0x1f7   :  { %3658 = vmatprep.subr.bf16.mxu0 %v8826_v62 }
 0x1f9   :  { %8403 = vmatpush3.bf16.msra.mxu1 %v8823_v1  ;;  %v8883_v1 = vld [vmem:[#allocation8 + $0xa64] ss:$20 sps:$4 sm:$0xff]  }
 0x1fa   :  { %3683 = vmatprep.subr.bf16.mxu1 %v8829_v2  ;;  %3659 = vmatpush2.bf16.msra.mxu0 %v8824_v47  ;;  %v8891_v2 = vld [vmem:[#allocation8 + $0xa40] ss:$20 sps:$4 sm:$0xff]  }
 0x1fb   :  { %3660 = vmatprep.subr.bf16.mxu0 %v8832_v4  ;;  %v8892_v4 = vld [vmem:[#allocation8 + $0xb2c] ss:$20 sps:$4 sm:$0xff]  }
 0x1fc   :  { %8405 = vmatmul.mubr.msk.bf16.vlgmr.msra.gmra.mxu1 %vm1982_vm4, %v10471_v50 }
 0x1fd   :  { %3684 = vmatpush1.bf16.msra.mxu1 %v8827_v5  ;;  %3715 = vmatprep.mubr.bf16.mxu1 %v10451_v54  ;;  %v8900_v5 = vld [vmem:[#allocation8 + $0xb08] ss:$20 sps:$4 sm:$0xff]  }
 0x1fe   :  { %3685 = vmatprep.subr.bf16.mxu1 %v8835_v7  ;;  %3661 = vmatpush2.bf16.msra.mxu0 %v8830_v6  ;;  %v8889_v7 = vld [vmem:[#allocation8 + $0xa3c] ss:$20 sps:$4 sm:$0xff]  }
 0x1ff   :  { %3662 = vmatprep.subr.bf16.mxu0 %v8838_v52 }
 0x201   :  { %3686 = vmatpush1.bf16.msra.mxu1 %v8833_v10  ;;  %v8897_v10 = vld [vmem:[#allocation8 + $0xa18] ss:$20 sps:$4 sm:$0xff]  }
 0x202   :  { %3687 = vmatprep.subr.bf16.mxu1 %v8841_v13  ;;  %3663 = vmatpush2.bf16.msra.mxu0 %v8836_v12  ;;  %v8898_v12 = vld [vmem:[#allocation8 + $0xb04] ss:$20 sps:$4 sm:$0xff]  }
 0x203   :  { %3664 = vmatprep.subr.bf16.mxu0 %v8844_v37  ;;  %v10519_v13 = vld [vmem:[#allocation10] sm:$0x1f] }
 0x204   :  { %v8906_v37 = vld [vmem:[#allocation8 + $0xae0] ss:$20 sps:$4 sm:$0xff]  }
 0x205   :  { %3688 = vmatpush1.bf16.msra.mxu1 %v8839_v14  ;;  %v8895_v14 = vld [vmem:[#allocation8 + $0xa14] ss:$20 sps:$4 sm:$0xff]  }
 0x206   :  { %3689 = vmatprep.subr.bf16.mxu1 %v8847_v18  ;;  %3665 = vmatpush2.bf16.msra.mxu0 %v8842_v15  ;;  %v10523_v15 = vrot.slane %v10519_v13, %v10398_v42  ;;  %v8903_v18 = vld [vmem:[#allocation8 + $0x9f0] ss:$20 sps:$4 sm:$0xff]  }
 0x207   :  { %3666 = vmatprep.subr.bf16.mxu0 %v8850_v20  ;;  %v8904_v20 = vld [vmem:[#allocation8 + $0xadc] ss:$20 sps:$4 sm:$0xff]  }
 0x209   :  { %3690 = vmatpush1.bf16.msra.mxu1 %v8845_v22  ;;  %v10527_v22 = vrot.slane %v10519_v13, %v10400_v44 }
 0x20a   :  { %3691 = vmatprep.subr.bf16.mxu1 %v8853_v24  ;;  %3667 = vmatpush2.bf16.msra.mxu0 %v8848_v23  ;;  %v8912_v23 = vld [vmem:[#allocation8 + $0x980] ss:$20 sps:$4 sm:$0xff]  }
 0x20b   :  { %3668 = vmatprep.subr.bf16.mxu0 %v8856_v25 }
 0x20d   :  { %3692 = vmatpush1.bf16.msra.mxu1 %v8851_v26  ;;  %v8901_v26 = vld [vmem:[#allocation8 + $0x9ec] ss:$20 sps:$4 sm:$0xff]  }
 0x20e   :  { %3693 = vmatprep.subr.bf16.mxu1 %v8859_v28  ;;  %3669 = vmatpush2.bf16.msra.mxu0 %v8854_v27  ;;  %v8909_v28 = vld [vmem:[#allocation8 + $0x9c8] ss:$20 sps:$4 sm:$0xff]  }
 0x20f   :  { %3670 = vmatprep.subr.bf16.mxu0 %v8862_v30  ;;  %v8910_v30 = vld [vmem:[#allocation8 + $0x97c] ss:$20 sps:$4 sm:$0xff]  }
 0x211   :  { %3694 = vmatpush1.bf16.msra.mxu1 %v8857_v31 }
 0x212   :  { %3695 = vmatprep.subr.bf16.mxu1 %v8865_v33  ;;  %3671 = vmatpush2.bf16.msra.mxu0 %v8860_v32  ;;  %v8918_v32 = vld [vmem:[#allocation8 + $0x958] ss:$20 sps:$4 sm:$0xff]  }
 0x213   :  { %3672 = vmatprep.subr.bf16.mxu0 %v8868_v34 }
 0x215   :  { %3696 = vmatpush1.bf16.msra.mxu1 %v8863_v36 }
 0x216   :  { %3697 = vmatprep.subr.bf16.mxu1 %v8871_v43  ;;  %3673 = vmatpush2.bf16.msra.mxu0 %v8866_v39  ;;  %v8915_v43 = vld [vmem:[#allocation8 + $0x9a0] ss:$20 sps:$4 sm:$0xff]  }
 0x217   :  { %7741 = vmatprep.subr.msk.bf16.mxu0 %vm1986_vm3, %v10509_v46 }
 0x219   :  { %3698 = vmatpush1.bf16.msra.mxu1 %v8869_v49  ;;  %3675 = vmatmul.mubr.bf16.vlgmr.msra.gmra.mxu0 %v10461_v9  ;;  %v8924_v49 = vld [vmem:[#allocation8 + $0x930] ss:$20 sps:$4 sm:$0xff]  }
 0x21a   :  { %3699 = vmatprep.subr.bf16.mxu1 %v8874_v51  ;;  %3729 = vmatpush1.bf16.msra.mxu0 %v10514_v53  ;;  %v8913_v51 = vld [vmem:[#allocation8 + $0x99c] ss:$20 sps:$4 sm:$0xff]  }
 0x21b   :  { %3730 = vmatprep.subr.bf16.mxu0 %v8882_v19  ;;  %3756 = vmatprep.mubr.bf16.mxu0 %v10284_v0  ;;  %v8921_v19 = vld [vmem:[#allocation8 + $0x700] ss:$20 sps:$4 sm:$0xff]  }
 0x21d   :  { %3700 = vmatpush2.bf16.msra.mxu1 %v8872_v55  ;;  %v8922_v55 = vld [vmem:[#allocation8 + $0x92c] ss:$20 sps:$4 sm:$0xff]  }
 0x21e   :  { %3701 = vmatprep.subr.bf16.mxu1 %v8879_v57  ;;  %3731 = vmatpush1.bf16.msra.mxu0 %v8880_v63  ;;  %v8930_v57 = vld [vmem:[#allocation8 + $0x908] ss:$20 sps:$4 sm:$0xff]  }
 0x21f   :  { %3732 = vmatprep.subr.bf16.mxu0 %v8888_v58  ;;  %v8919_v63 = vld [vmem:[#allocation8 + $0x6fc] ss:$20 sps:$4 sm:$0xff]   ;;  %v8927_v58 = vld [vmem:[#allocation8 + $0x6d8] ss:$20 sps:$4 sm:$0xff]  }
 0x221   :  { %v2077_v62 = vpop.f32.mrf.mxu0  ;;  %3702 = vmatpush2.bf16.msra.mxu1 %v8877_v41  ;;  %v8928_v41 = vld [vmem:[#allocation8 + $0x904] ss:$20 sps:$4 sm:$0xff]  }
 0x222   :  { %3703 = vmatprep.subr.bf16.mxu1 %v8885_v59  ;;  %3733 = vmatpush1.bf16.msra.mxu0 %v8886_v60  ;;  %v8936_v59 = vld [vmem:[#allocation8 + $0x8e0] ss:$20 sps:$4 sm:$0xff]  }
 0x223   :  { %v2079_v47 = vpop.f32.mrf.mxu0  ;;  %3734 = vmatprep.subr.bf16.mxu0 %v8894_v61  ;;  %v8925_v60 = vld [vmem:[#allocation8 + $0x6d4] ss:$20 sps:$4 sm:$0xff]   ;;  %v8933_v61 = vld [vmem:[#allocation8 + $0x6b0] ss:$20 sps:$4 sm:$0xff]  }
 0x225   :  { %v2081_v6 = vpop.f32.mrf.mxu0  ;;  %3704 = vmatpush2.bf16.msra.mxu1 %v8883_v1  ;;  %v8942_v1 = vld [vmem:[#allocation8 + $0x8b8] ss:$20 sps:$4 sm:$0xff]  }
 0x226   :  { %3705 = vmatprep.subr.bf16.mxu1 %v8891_v2  ;;  %3735 = vmatpush1.bf16.msra.mxu0 %v8892_v4  ;;  %v8939_v2 = vld [vmem:[#allocation8 + $0x688] ss:$20 sps:$4 sm:$0xff]  }
 0x227   :  { %v2082_v52 = vpop.f32.mrf.mxu0  ;;  %3736 = vmatprep.subr.bf16.mxu0 %v8900_v5  ;;  %v8940_v4 = vld [vmem:[#allocation8 + $0x8b4] ss:$20 sps:$4 sm:$0xff]   ;;  %v8948_v5 = vld [vmem:[#allocation8 + $0x890] ss:$20 sps:$4 sm:$0xff]  }
 0x228   :  { %v8937_v52 = vld [vmem:[#allocation8 + $0x684] ss:$20 sps:$4 sm:$0xff]  }
 0x229   :  { %3706 = vmatpush2.bf16.msra.mxu1 %v8889_v7 }
 0x22a   :  { %3707 = vmatprep.subr.bf16.mxu1 %v8897_v10  ;;  %3737 = vmatpush1.bf16.msra.mxu0 %v8898_v12  ;;  %v8945_v12 = vld [vmem:[#allocation8 + $0x660] ss:$20 sps:$4 sm:$0xff]  }
 0x22b   :  { %3738 = vmatprep.subr.bf16.mxu0 %v8906_v37  ;;  %v8946_v37 = vld [vmem:[#allocation8 + $0x88c] ss:$20 sps:$4 sm:$0xff]  }
 0x22c   :  { %v2036_v24 = vpop.f32.mrf.mxu1 }
 0x22d   :  { %v2037_v25 = vadd.f32 %v2036_v24, %v10523_v15  ;;  %3708 = vmatpush2.bf16.msra.mxu1 %v8895_v14 }
 0x22e   :  { %v2038_v27 = vpop.f32.mrf.mxu1  ;;  %3709 = vmatprep.subr.bf16.mxu1 %v8903_v18  ;;  %3739 = vmatpush1.bf16.msra.mxu0 %v8904_v20  ;;  %v8954_v18 = vld [vmem:[#allocation8 + $0x868] ss:$20 sps:$4 sm:$0xff]  }
 0x22f   :  { %v2039_v31 = vadd.f32 %v2038_v27, %v10527_v22  ;;  %3806 = vmatprep.subr.bf16.mxu0 %v8912_v23  ;;  %v2078_v33 = vadd.f32 %v2077_v62, %v2037_v25  ;;  %v8934_v62 = vld [vmem:[#allocation8 + $0x8dc] ss:$20 sps:$4 sm:$0xff]   ;;  %v8951_v25 = vld [vmem:[#allocation8 + $0x638] ss:$20 sps:$4 sm:$0xff]   ;;  %v8960_v27 = vld [vmem:[#allocation8 + $0xac0] ss:$20 sps:$4 sm:$0xff]  }
 0x230   :  { %v2040_v34 = vpop.f32.mrf.mxu1  ;;  %v8943_v23 = vld [vmem:[#allocation8 + $0x65c] ss:$20 sps:$4 sm:$0xff]  }
 0x231   :  { %3710 = vmatpush2.bf16.msra.mxu1 %v8901_v26  ;;  %7742 = vmatmul.mubr.msk.bf16.vlgmr.msra.gmra.mxu0 %vm1982_vm4, %v10471_v50  ;;  %v2080_v36 = vadd.f32 %v2079_v47, %v2039_v31  ;;  %v8931_v47 = vld [vmem:[#allocation8 + $0x6ac] ss:$20 sps:$4 sm:$0xff]   ;;  %v8952_v26 = vld [vmem:[#allocation8 + $0x864] ss:$20 sps:$4 sm:$0xff]   ;;  %v8958_v31 = vld [vmem:[#allocation8 + $0xabc] ss:$20 sps:$4 sm:$0xff]  }
 0x232   :  { %v2041_v39 = vpop.f32.mrf.mxu1  ;;  %3711 = vmatprep.subr.bf16.mxu1 %v8909_v28  ;;  %3807 = vmatpush1.bf16.msra.mxu0 %v8910_v30  ;;  %v8949_v28 = vld [vmem:[#allocation8 + $0x634] ss:$20 sps:$4 sm:$0xff]   ;;  %v8957_v30 = vld [vmem:[#allocation8 + $0x610] ss:$20 sps:$4 sm:$0xff]  }
 0x233   :  { %3838 = vmatprep.mubr.bf16.mxu0 %v10451_v54  ;;  %3808 = vmatprep.subr.bf16.mxu0 %v8918_v32  ;;  %v8966_v32 = vld [vmem:[#allocation8 + $0xa98] ss:$20 sps:$4 sm:$0xff]   ;;  %v8963_v34 = vld [vmem:[#allocation8 + $0x5e8] ss:$20 sps:$4 sm:$0xff]  }
 0x234   :  { %v8961_v39 = vld [vmem:[#allocation8 + $0x5e4] ss:$20 sps:$4 sm:$0xff]  }
 0x235   :  { %3712 = vmatpush2.bf16.msra.mxu1 %v8907_v35  ;;  %v8964_v35 = vld [vmem:[#allocation8 + $0xa94] ss:$20 sps:$4 sm:$0xff]  }
 0x236   :  { %3713 = vmatprep.subr.bf16.mxu1 %v8915_v43  ;;  %3809 = vmatpush1.bf16.msra.mxu0 %v8916_v3  ;;  %v8969_v43 = vld [vmem:[#allocation8 + $0x840] ss:$20 sps:$4 sm:$0xff]  }
 0x237   :  { %3810 = vmatprep.subr.bf16.mxu0 %v8924_v49  ;;  %v8970_v3 = vld [vmem:[#allocation8 + $0xa6c] ss:$20 sps:$4 sm:$0xff]   ;;  %v8978_v49 = vld [vmem:[#allocation8 + $0xa48] ss:$20 sps:$4 sm:$0xff]  }
 0x239   :  { %3714 = vmatpush2.bf16.msra.mxu1 %v8913_v51  ;;  %v8967_v51 = vld [vmem:[#allocation8 + $0x83c] ss:$20 sps:$4 sm:$0xff]  }
 0x23a   :  { %3765 = vmatprep.subr.bf16.mxu1 %v8921_v19  ;;  %3811 = vmatpush1.bf16.msra.mxu0 %v8922_v55  ;;  %v8975_v19 = vld [vmem:[#allocation8 + $0x818] ss:$20 sps:$4 sm:$0xff]  }
 0x23b   :  { %3812 = vmatprep.subr.bf16.mxu0 %v8930_v57  ;;  %v8976_v55 = vld [vmem:[#allocation8 + $0xa44] ss:$20 sps:$4 sm:$0xff]   ;;  %v8984_v57 = vld [vmem:[#allocation8 + $0xa20] ss:$20 sps:$4 sm:$0xff]  }
 0x23c   :  { %3716 = vmatmul.mubr.bf16.vlgmr.msra.gmra.mxu1 %v10453_v56 }
 0x23d   :  { %3766 = vmatpush1.bf16.msra.mxu1 %v8919_v63  ;;  %3797 = vmatprep.mubr.bf16.mxu1 %v10459_v8  ;;  %v8973_v63 = vld [vmem:[#allocation8 + $0x814] ss:$20 sps:$4 sm:$0xff]  }
 0x23e   :  { %3767 = vmatprep.subr.bf16.mxu1 %v8927_v58  ;;  %3813 = vmatpush1.bf16.msra.mxu0 %v8928_v41  ;;  %v8981_v58 = vld [vmem:[#allocation8 + $0x7f0] ss:$20 sps:$4 sm:$0xff]  }
 0x23f   :  { %3814 = vmatprep.subr.bf16.mxu0 %v8936_v59  ;;  %v8982_v41 = vld [vmem:[#allocation8 + $0xa1c] ss:$20 sps:$4 sm:$0xff]   ;;  %v8990_v59 = vld [vmem:[#allocation8 + $0x9f8] ss:$20 sps:$4 sm:$0xff]  }
 0x241   :  { %3768 = vmatpush1.bf16.msra.mxu1 %v8925_v60 }
 0x242   :  { %3769 = vmatprep.subr.bf16.mxu1 %v8933_v61  ;;  %3815 = vmatpush1.bf16.msra.mxu0 %v8934_v62  ;;  %v8979_v61 = vld [vmem:[#allocation8 + $0x7ec] ss:$20 sps:$4 sm:$0xff]   ;;  %v8987_v62 = vld [vmem:[#allocation8 + $0x7c8] ss:$20 sps:$4 sm:$0xff]  }
 0x243   :  { %3816 = vmatprep.subr.bf16.mxu0 %v8942_v1  ;;  %v8988_v1 = vld [vmem:[#allocation8 + $0x9f4] ss:$20 sps:$4 sm:$0xff]  }
 0x244   :  { %v2118_v6 = vpop.f32.mrf.mxu1 }
 0x245   :  { %v10536_v7 = vadd.f32 %v2118_v6, %v2078_v33  ;;  %3770 = vmatpush1.bf16.msra.mxu1 %v8931_v47  ;;  %v8955_v33 = vld [vmem:[#allocation8 + $0x60c] ss:$20 sps:$4 sm:$0xff]  }
 0x246   :  { %v2120_v10 = vpop.f32.mrf.mxu1  ;;  %3771 = vmatprep.subr.bf16.mxu1 %v8939_v2  ;;  %3817 = vmatpush1.bf16.msra.mxu0 %v8940_v4  ;;  %v8996_v2 = vld [vmem:[#allocation8 + $0x9d0] ss:$20 sps:$4 sm:$0xff]   ;;  %v8993_v6 = vld [vmem:[#allocation8 + $0x7a0] ss:$20 sps:$4 sm:$0xff]  }
 0x247   :  { %v10538_v14 = vadd.f32 %v2120_v10, %v2080_v36  ;;  %3818 = vmatprep.subr.bf16.mxu0 %v8948_v5  ;;  %v8972_v36 = vld [vmem:[#allocation8 + $0xa70] ss:$20 sps:$4 sm:$0xff]  }
 0x248   :  { %v2122_v20 = vpop.f32.mrf.mxu1  ;;  %v8985_v5 = vld [vmem:[#allocation8 + $0x7c4] ss:$20 sps:$4 sm:$0xff]  }
 0x249   :  { %3772 = vmatpush1.bf16.msra.mxu1 %v8937_v52  ;;  %v8994_v52 = vld [vmem:[#allocation8 + $0x9cc] ss:$20 sps:$4 sm:$0xff]   ;;  %v9000_v20 = vld [vmem:[#allocation8 + $0x9a4] ss:$20 sps:$4 sm:$0xff]  }
 0x24a   :  { %v2123_v24 = vpop.f32.mrf.mxu1  ;;  %3773 = vmatprep.subr.bf16.mxu1 %v8945_v12  ;;  %3819 = vmatpush1.bf16.msra.mxu0 %v8946_v37  ;;  %v9002_v12 = vld [vmem:[#allocation8 + $0x9a8] ss:$20 sps:$4 sm:$0xff]  }
 0x24b   :  { %3820 = vmatprep.subr.bf16.mxu0 %v8954_v18  ;;  %v8991_v37 = vld [vmem:[#allocation8 + $0x79c] ss:$20 sps:$4 sm:$0xff]   ;;  %v8999_v18 = vld [vmem:[#allocation8 + $0x778] ss:$20 sps:$4 sm:$0xff]   ;;  %v8997_v24 = vld [vmem:[#allocation8 + $0x774] ss:$20 sps:$4 sm:$0xff]  }
 0x24d   :  { %3774 = vmatpush1.bf16.msra.mxu1 %v8943_v23  ;;  %v9006_v23 = vld [vmem:[#allocation8 + $0x844] ss:$20 sps:$4 sm:$0xff]  }
 0x24e   :  { %3775 = vmatprep.subr.bf16.mxu1 %v8951_v25  ;;  %3821 = vmatpush1.bf16.msra.mxu0 %v8952_v26  ;;  %v9005_v25 = vld [vmem:[#allocation8 + $0x750] ss:$20 sps:$4 sm:$0xff]  }
 0x24f   :  { %3822 = vmatprep.subr.bf16.mxu0 %v8960_v27  ;;  %v9007_v26 = vld [vmem:[#allocation8 + $0x704] ss:$20 sps:$4 sm:$0xff]   ;;  %v9011_v27 = vld [vmem:[#allocation8 + $0x81c] ss:$20 sps:$4 sm:$0xff]  }
 0x251   :  { %3776 = vmatpush1.bf16.msra.mxu1 %v8949_v28  ;;  %v9003_v28 = vld [vmem:[#allocation8 + $0x74c] ss:$20 sps:$4 sm:$0xff]  }
 0x252   :  { %3777 = vmatprep.subr.bf16.mxu1 %v8957_v30  ;;  %3823 = vmatpush2.bf16.msra.mxu0 %v8958_v31  ;;  %v9010_v30 = vld [vmem:[#allocation8 + $0x728] ss:$20 sps:$4 sm:$0xff]  }
 0x253   :  { %3824 = vmatprep.subr.bf16.mxu0 %v8966_v32  ;;  %v9012_v31 = vld [vmem:[#allocation8 + $0x6dc] ss:$20 sps:$4 sm:$0xff]  }
 0x254   :  { %v2622_v32 = vld [vmem:[#allocation8 + $0xbac] sm:$0xff] }
 0x255   :  { %3778 = vmatpush1.bf16.msra.mxu1 %v8955_v33  ;;  %v9014_v33 = vld [vmem:[#allocation8 + $0x7f4] ss:$20 sps:$4 sm:$0xff]  }
 0x256   :  { %3779 = vmatprep.subr.bf16.mxu1 %v8963_v34  ;;  %3825 = vmatpush2.bf16.msra.mxu0 %v8964_v35  ;;  %v9008_v34 = vld [vmem:[#allocation8 + $0x724] ss:$20 sps:$4 sm:$0xff]   ;;  %v10546_v35 = vcombine.high %v2622_v32, %v2622_v32 }
 0x257   :  { %3826 = vmatprep.subr.bf16.mxu0 %v8972_v36  ;;  %v7738_v36 = vcombine.low %v2622_v32, %v2622_v32 }
 0x259   :  { %3780 = vmatpush1.bf16.msra.mxu1 %v8961_v39  ;;  %v9016_v39 = vld [vmem:[#allocation8 + $0x6b4] ss:$20 sps:$4 sm:$0xff]  }
 0x25a   :  { %3781 = vmatprep.subr.bf16.mxu1 %v8969_v43  ;;  %3827 = vmatpush2.bf16.msra.mxu0 %v8970_v3  ;;  %v9020_v43 = vld [vmem:[#allocation8 + $0x7cc] ss:$20 sps:$4 sm:$0xff]  }
 0x25b   :  { %3828 = vmatprep.subr.bf16.mxu0 %v8978_v49  ;;  %v10551_v49 = vsel %vm1986_vm3, %v7738_v36, 0  ;;  %v9037_v36 = vld [vmem:[#allocation8 + $0xae4] ss:$20 sps:$4 sm:$0xff]  }
 0x25d   :  { %3782 = vmatpush2.bf16.msra.mxu1 %v8967_v51  ;;  %v9019_v51 = vld [vmem:[#allocation8 + $0xb88] ss:$20 sps:$4 sm:$0xff]  }
 0x25e   :  { %3783 = vmatprep.subr.bf16.mxu1 %v8975_v19  ;;  %3829 = vmatpush2.bf16.msra.mxu0 %v8976_v55  ;;  %v9021_v19 = vld [vmem:[#allocation8 + $0x68c] ss:$20 sps:$4 sm:$0xff]  }
 0x25f   :  { %3830 = vmatprep.subr.bf16.mxu0 %v8984_v57  ;;  %v9025_v57 = vld [vmem:[#allocation8 + $0x7a4] ss:$20 sps:$4 sm:$0xff]  }
 0x261   :  { %3784 = vmatpush2.bf16.msra.mxu1 %v8973_v63  ;;  %v10540_v60 = vpop.f32.mrf.mxu0 }
 0x262   :  { %3785 = vmatprep.subr.bf16.mxu1 %v8981_v58  ;;  %3831 = vmatpush2.bf16.msra.mxu0 %v8982_v41  ;;  %v9017_v58 = vld [vmem:[#allocation8 + $0xb84] ss:$20 sps:$4 sm:$0xff]   ;;  %v9024_v41 = vld [vmem:[#allocation8 + $0xb60] ss:$20 sps:$4 sm:$0xff]  }
 0x263   :  { %v10542_v47 = vpop.f32.mrf.mxu0  ;;  %3832 = vmatprep.subr.bf16.mxu0 %v8990_v59  ;;  %v9026_v59 = vld [vmem:[#allocation8 + $0x664] ss:$20 sps:$4 sm:$0xff]  }
 0x265   :  { %3786 = vmatpush2.bf16.msra.mxu1 %v8979_v61  ;;  %v2163_v4 = vpop.f32.mrf.mxu0  ;;  %v10558_v61 = vrot.slane %v10519_v13, %v10402_v45 }
 0x266   :  { %3787 = vmatprep.subr.bf16.mxu1 %v8987_v62  ;;  %3833 = vmatpush2.bf16.msra.mxu0 %v8988_v1  ;;  %v9030_v1 = vld [vmem:[#allocation8 + $0x77c] ss:$20 sps:$4 sm:$0xff]  }
 0x267   :  { %v2164_v10 = vpop.f32.mrf.mxu0  ;;  %3834 = vmatprep.subr.bf16.mxu0 %v8996_v2  ;;  %v10562_v2 = vrot.slane %v10519_v13, %v10406_v48  ;;  %v9022_v4 = vld [vmem:[#allocation8 + $0xb5c] ss:$20 sps:$4 sm:$0xff]  }
 0x268   :  { %v9035_v10 = vld [vmem:[#allocation8 + $0x754] ss:$20 sps:$4 sm:$0xff]  }
 0x269   :  { %3788 = vmatpush2.bf16.msra.mxu1 %v8985_v5  ;;  %v9029_v5 = vld [vmem:[#allocation8 + $0xb38] ss:$20 sps:$4 sm:$0xff]  }
 0x26a   :  { %3789 = vmatprep.subr.bf16.mxu1 %v8993_v6  ;;  %3835 = vmatpush2.bf16.msra.mxu0 %v8994_v52  ;;  %v9031_v6 = vld [vmem:[#allocation8 + $0x63c] ss:$20 sps:$4 sm:$0xff]   ;;  %v2160_v52 = vadd.f32 %v10540_v60, %v10558_v61 }
 0x26b   :  { %3836 = vmatprep.subr.bf16.mxu0 %v9002_v12 }
 0x26d   :  { %3790 = vmatpush2.bf16.msra.mxu1 %v8991_v37  ;;  %v2162_v37 = vadd.f32 %v10542_v47, %v10562_v2  ;;  %v9039_v47 = vld [vmem:[#allocation8 + $0xae8] ss:$20 sps:$4 sm:$0xff]  }
 0x26e   :  { %3791 = vmatprep.subr.bf16.mxu1 %v8999_v18  ;;  %3837 = vmatpush2.bf16.msra.mxu0 %v9000_v20  ;;  %v9027_v20 = vld [vmem:[#allocation8 + $0xb34] ss:$20 sps:$4 sm:$0xff]  }
 0x26f   :  { %8068 = vmatprep.subr.bf16.mxu0 %v9006_v23 }
 0x271   :  { %3792 = vmatpush2.bf16.msra.mxu1 %v8997_v24  ;;  %3839 = vmatmul.mubr.bf16.vlgmr.msra.gmra.mxu0 %v10453_v56  ;;  %v9034_v24 = vld [vmem:[#allocation8 + $0xb10] ss:$20 sps:$4 sm:$0xff]  }
 0x272   :  { %3793 = vmatprep.subr.bf16.mxu1 %v9005_v25  ;;  %8069 = vmatpush3.bf16.msra.mxu0 %v9007_v26  ;;  %v9036_v25 = vld [vmem:[#allocation8 + $0x614] ss:$20 sps:$4 sm:$0xff]  }
 0x273   :  { %3920 = vmatprep.mubr.bf16.mxu0 %v10459_v8  ;;  %8070 = vmatprep.subr.bf16.mxu0 %v9011_v27 }
 0x275   :  { %3794 = vmatpush2.bf16.msra.mxu1 %v9003_v28  ;;  %v9040_v28 = vld [vmem:[#allocation8 + $0x72c] ss:$20 sps:$4 sm:$0xff]  }
 0x276   :  { %3795 = vmatprep.subr.bf16.mxu1 %v9010_v30  ;;  %8071 = vmatpush3.bf16.msra.mxu0 %v9012_v31  ;;  %v9032_v31 = vld [vmem:[#allocation8 + $0xb0c] ss:$20 sps:$4 sm:$0xff]  }
 0x277   :  { %8072 = vmatprep.subr.bf16.mxu0 %v9014_v33  ;;  %v9041_v33 = vld [vmem:[#allocation8 + $0x5ec] ss:$20 sps:$4 sm:$0xff]  }
 0x279   :  { %3796 = vmatpush2.bf16.msra.mxu1 %v9008_v34  ;;  %v2241_v3 = vpop.f32.mrf.mxu0  ;;  %v9044_v34 = vld [vmem:[#allocation8 + $0xbb4] ss:$0 sps:$4 sm:$0xff]  }
 0x27a   :  { %7743 = vmatprep.subr.msk.bf16.mxu1 %vm1986_vm3, %v10546_v35  ;;  %8073 = vmatpush3.bf16.msra.mxu0 %v9016_v39  ;;  %v9042_v39 = vld [vmem:[#allocation8 + $0xac4] ss:$20 sps:$4 sm:$0xff]  }
 0x27b   :  { %v2243_v55 = vpop.f32.mrf.mxu0  ;;  %8074 = vmatprep.subr.bf16.mxu0 %v9020_v43  ;;  %v10574_v43 = vsel %vm1986_vm3, %v9044_v34, 0 }
 0x27c   :  { %3798 = vmatmul.mubr.bf16.vlgmr.msra.gmra.mxu1 %v10461_v9 }
 0x27d   :  { %3852 = vmatpush1.bf16.msra.mxu1 %v10551_v49  ;;  %v2245_v63 = vpop.f32.mrf.mxu0  ;;  %3879 = vmatprep.mubr.bf16.mxu1 %v10284_v0 }
 0x27e   :  { %3853 = vmatprep.subr.bf16.mxu1 %v9019_v51  ;;  %8075 = vmatpush3.bf16.msra.mxu0 %v9021_v19  ;;  %v9045_v51 = vld [vmem:[#allocation8 + $0xa9c] ss:$20 sps:$4 sm:$0xff]   ;;  %v9047_v19 = vld [vmem:[#allocation8 + $0xb8c] ss:$20 sps:$4 sm:$0xff]   ;;  %v9050_v63 = vld [vmem:[#allocation8 + $0xb64] ss:$20 sps:$4 sm:$0xff]  }
 0x27f   :  { %v2246_v62 = vpop.f32.mrf.mxu0  ;;  %8076 = vmatprep.subr.bf16.mxu0 %v9025_v57  ;;  %v9048_v57 = vld [vmem:[#allocation8 + $0xa74] ss:$20 sps:$4 sm:$0xff]  }
 0x280   :  { %v9053_v62 = vld [vmem:[#allocation8 + $0xb3c] ss:$20 sps:$4 sm:$0xff]  }
 0x281   :  { %3854 = vmatpush1.bf16.msra.mxu1 %v9017_v58 }
 0x282   :  { %3855 = vmatprep.subr.bf16.mxu1 %v9024_v41  ;;  %8077 = vmatpush3.bf16.msra.mxu0 %v9026_v59  ;;  %v9049_v41 = vld [vmem:[#allocation8 + $0x934] ss:$20 sps:$4 sm:$0xff]   ;;  %v9051_v59 = vld [vmem:[#allocation8 + $0xa4c] ss:$20 sps:$4 sm:$0xff]  }
 0x283   :  { %8078 = vmatprep.subr.bf16.mxu0 %v9030_v1 }
 0x284   :  { %v2200_v12 = vpop.f32.mrf.mxu1 }
 0x285   :  { %v2201_v18 = vadd.f32 %v2200_v12, %v2160_v52  ;;  %3856 = vmatpush1.bf16.msra.mxu1 %v9022_v4  ;;  %v9054_v52 = vld [vmem:[#allocation8 + $0xa24] ss:$20 sps:$4 sm:$0xff]  }
 0x286   :  { %v2202_v23 = vpop.f32.mrf.mxu1  ;;  %3857 = vmatprep.subr.bf16.mxu1 %v9029_v5  ;;  %8079 = vmatpush3.bf16.msra.mxu0 %v9031_v6  ;;  %v9052_v6 = vld [vmem:[#allocation8 + $0x90c] ss:$20 sps:$4 sm:$0xff]  }
 0x287   :  { %v10568_v26 = vadd.f32 %v2241_v3, %v2201_v18  ;;  %v2203_v27 = vadd.f32 %v2202_v23, %v2162_v37  ;;  %8080 = vmatprep.subr.bf16.mxu0 %v9035_v10  ;;  %v9043_v3 = vld [vmem:[#allocation8 + $0x984] ss:$20 sps:$4 sm:$0xff]   ;;  %v9056_v10 = vld [vmem:[#allocation8 + $0xb14] ss:$20 sps:$4 sm:$0xff]   ;;  %v9057_v18 = vld [vmem:[#allocation8 + $0x9fc] ss:$20 sps:$4 sm:$0xff]  }
 0x288   :  { %v2204_v60 = vpop.f32.mrf.mxu1  ;;  %v9055_v37 = vld [vmem:[#allocation8 + $0x8e4] ss:$20 sps:$4 sm:$0xff]   ;;  %v9063_v23 = vld [vmem:[#allocation8 + $0xf54] ss:$20 sps:$4 sm:$0xff]  }
 0x289   :  { %v10570_v30 = vadd.f32 %v2243_v55, %v2203_v27  ;;  %3858 = vmatpush1.bf16.msra.mxu1 %v9027_v20  ;;  %v9046_v55 = vld [vmem:[#allocation8 + $0x95c] ss:$20 sps:$4 sm:$0xff]   ;;  %v9059_v20 = vld [vmem:[#allocation8 + $0xaec] ss:$20 sps:$4 sm:$0xff]   ;;  %v9060_v60 = vld [vmem:[#allocation8 + $0x9d4] ss:$20 sps:$4 sm:$0xff]  }
 0x28a   :  { %v2205_v32 = vpop.f32.mrf.mxu1  ;;  %3859 = vmatprep.subr.bf16.mxu1 %v9034_v24  ;;  %8081 = vmatpush3.bf16.msra.mxu0 %v9036_v25  ;;  %v10590_v25 = vrot.slane %v10519_v13, %v10432_v29  ;;  %v9058_v27 = vld [vmem:[#allocation8 + $0x8bc] ss:$20 sps:$4 sm:$0xff]   ;;  %v9065_v13 = vld [vmem:[#allocation8 + $0x9ac] ss:$20 sps:$4 sm:$0xff]  }
 0x28b   :  { %8082 = vmatprep.subr.bf16.mxu0 %v9040_v28 }
 0x28d   :  { %3860 = vmatpush1.bf16.msra.mxu1 %v9032_v31  ;;  %v9061_v31 = vld [vmem:[#allocation8 + $0xf50] ss:$20 sps:$4 sm:$0xff]  }
 0x28e   :  { %3861 = vmatprep.subr.bf16.mxu1 %v9039_v47  ;;  %8083 = vmatpush3.bf16.msra.mxu0 %v9041_v33  ;;  %v9068_v47 = vld [vmem:[#allocation8 + $0xf2c] ss:$20 sps:$4 sm:$0xff]  }
 0x28f   :  { %8408 = vmatprep.subr.bf16.mxu0 %v10285_v17 }
 0x291   :  { %3862 = vmatpush1.bf16.msra.mxu1 %v9037_v36  ;;  %3921 = vmatmul.mubr.bf16.vlgmr.msra.gmra.mxu0 %v10461_v9  ;;  %v9064_v36 = vld [vmem:[#allocation8 + $0x894] ss:$20 sps:$4 sm:$0xff]  }
 0x292   :  { %8090 = vmatprep.subr.bf16.mxu1 %v9042_v39  ;;  %8409 = vmatpush3.bf16.msra.mxu0 %v10574_v43 }
 0x293   :  { %8410 = vmatprep.subr.bf16.mxu0 %v10285_v17  ;;  %8420 = vmatprep.mubr.msk.bf16.mxu0 %vm10286_vm2, %v10285_v17 }
 0x294   :  { %7744 = vmatmul.mubr.msk.bf16.vlgmr.msra.gmra.mxu1 %vm1982_vm4, %v10471_v50 }
 0x295   :  { %8091 = vmatpush3.bf16.msra.mxu1 %v9043_v3  ;;  %3960 = vmatprep.mubr.bf16.mxu1 %v10451_v54  ;;  %v9066_v3 = vld [vmem:[#allocation8 + $0xf28] ss:$20 sps:$4 sm:$0xff]  }
 0x296   :  { %8092 = vmatprep.subr.bf16.mxu1 %v9045_v51  ;;  %8411 = vmatpush3.bf16.msra.mxu0 %v9047_v19  ;;  %v9075_v51 = vld [vmem:[#allocation8 + $0xf04] ss:$20 sps:$4 sm:$0xff]  }
 0x297   :  { %8412 = vmatprep.subr.bf16.mxu0 %v10285_v17 }
 0x299   :  { %8093 = vmatpush3.bf16.msra.mxu1 %v9046_v55  ;;  %v8055_v58 = vpop.f32.mrf.mxu0  ;;  %v9069_v55 = vld [vmem:[#allocation8 + $0x86c] ss:$20 sps:$4 sm:$0xff]  }
 0x29a   :  { %8094 = vmatprep.subr.bf16.mxu1 %v9048_v57  ;;  %8413 = vmatpush3.bf16.msra.mxu0 %v9050_v63  ;;  %v9072_v57 = vld [vmem:[#allocation8 + $0xcd4] ss:$20 sps:$4 sm:$0xff]  }
 0x29b   :  { %v8056_v1 = vpop.f32.mrf.mxu0  ;;  %8414 = vmatprep.subr.bf16.mxu0 %v10285_v17  ;;  %v9073_v63 = vld [vmem:[#allocation8 + $0xf00] ss:$20 sps:$4 sm:$0xff]  }
 0x29c   :  { %v8057_v4 = vadd.f32 %v8056_v1, %v8055_v58  ;;  %v9081_v58 = vld [vmem:[#allocation8 + $0xedc] ss:$20 sps:$4 sm:$0xff]   ;;  %v9087_v1 = vld [vmem:[#allocation8 + $0xeb4] ss:$20 sps:$4 sm:$0xff]  }
 0x29d   :  { %8095 = vmatpush3.bf16.msra.mxu1 %v9049_v41  ;;  %v8058_v5 = vpop.f32.mrf.mxu0  ;;  %v9070_v41 = vld [vmem:[#allocation8 + $0xcd0] ss:$20 sps:$4 sm:$0xff]  }
 0x29e   :  { %8096 = vmatprep.subr.bf16.mxu1 %v9051_v59  ;;  %8415 = vmatpush3.bf16.msra.mxu0 %v9053_v62  ;;  %v9078_v59 = vld [vmem:[#allocation8 + $0xcac] ss:$20 sps:$4 sm:$0xff]   ;;  %v9084_v5 = vld [vmem:[#allocation8 + $0xc84] ss:$20 sps:$4 sm:$0xff]  }
 0x29f   :  { %v8059_v12 = vpop.f32.mrf.mxu0  ;;  %8416 = vmatprep.subr.bf16.mxu0 %v10285_v17  ;;  %v9079_v62 = vld [vmem:[#allocation8 + $0xed8] ss:$20 sps:$4 sm:$0xff]  }
 0x2a0   :  { %v9090_v12 = vld [vmem:[#allocation8 + $0xc5c] ss:$20 sps:$4 sm:$0xff]  }
 0x2a1   :  { %8097 = vmatpush3.bf16.msra.mxu1 %v9052_v6  ;;  %v9085_v6 = vld [vmem:[#allocation8 + $0xeb0] ss:$20 sps:$4 sm:$0xff]  }
 0x2a2   :  { %8098 = vmatprep.subr.bf16.mxu1 %v9054_v52  ;;  %8417 = vmatpush3.bf16.msra.mxu0 %v9056_v10  ;;  %v9093_v52 = vld [vmem:[#allocation8 + $0xe8c] ss:$20 sps:$4 sm:$0xff]  }
 0x2a3   :  { %8418 = vmatprep.subr.bf16.mxu0 %v10285_v17  ;;  %v9082_v10 = vld [vmem:[#allocation8 + $0xc80] ss:$20 sps:$4 sm:$0xff]  }
 0x2a4   :  { %v8033_v24 = vpop.f32.mrf.mxu1 }
 0x2a5   :  { %8099 = vmatpush3.bf16.msra.mxu1 %v9055_v37  ;;  %v9091_v37 = vld [vmem:[#allocation8 + $0xe88] ss:$20 sps:$4 sm:$0xff]  }
 0x2a6   :  { %v8034_v28 = vpop.f32.mrf.mxu1  ;;  %8100 = vmatprep.subr.bf16.mxu1 %v9057_v18  ;;  %8419 = vmatpush3.bf16.msra.mxu0 %v9059_v20  ;;  %v9099_v18 = vld [vmem:[#allocation8 + $0xe64] ss:$20 sps:$4 sm:$0xff]  }
 0x2a7   :  { %v8035_v32 = vadd.f32 %v8034_v28, %v8033_v24  ;;  %5298 = vmatprep.subr.bf16.mxu0 %v9063_v23  ;;  %v9088_v24 = vld [vmem:[#allocation8 + $0xc58] ss:$20 sps:$4 sm:$0xff]   ;;  %v9096_v28 = vld [vmem:[#allocation8 + $0xc34] ss:$20 sps:$4 sm:$0xff]  }
 0x2a8   :  { %v8036_v33 = vpop.f32.mrf.mxu1 }
 0x2a9   :  { %v2283_v34 = vadd.f32 %v8035_v32, %v10590_v25  ;;  %8101 = vmatpush3.bf16.msra.mxu1 %v9058_v27  ;;  %8421 = vmatmul.mubr.msk.bf16.vlgmr.msra.gmra.mxu0 %vm1982_vm4, %v10471_v50 }
 0x2aa   :  { %v8037_v39 = vpop.f32.mrf.mxu1  ;;  %8102 = vmatprep.subr.bf16.mxu1 %v9060_v60  ;;  %5299 = vmatpush1.bf16.msra.mxu0 %v9061_v31  ;;  %v9097_v60 = vld [vmem:[#allocation8 + $0xe60] ss:$20 sps:$4 sm:$0xff]   ;;  %v9105_v31 = vld [vmem:[#allocation8 + $0xe3c] ss:$20 sps:$4 sm:$0xff]  }
 0x2ab   :  { %5330 = vmatprep.mubr.bf16.mxu0 %v10451_v54  ;;  %5300 = vmatprep.subr.bf16.mxu0 %v9068_v47  ;;  %v2323_v19 = vadd.f32 %v8057_v4, %v2283_v34  ;;  %v9076_v4 = vld [vmem:[#allocation8 + $0xca8] ss:$20 sps:$4 sm:$0xff]   ;;  %v9094_v47 = vld [vmem:[#allocation8 + $0xc30] ss:$20 sps:$4 sm:$0xff]   ;;  %v9102_v34 = vld [vmem:[#allocation8 + $0xc0c] ss:$20 sps:$4 sm:$0xff]  }
 0x2ac   :  { %v9111_v39 = vld [vmem:[#allocation8 + $0x1094] ss:$20 sps:$4 sm:$0xff]  }
 0x2ad   :  { %8103 = vmatpush3.bf16.msra.mxu1 %v9064_v36  ;;  %v9103_v36 = vld [vmem:[#allocation8 + $0xe38] ss:$20 sps:$4 sm:$0xff]  }
 0x2ae   :  { %8104 = vmatprep.subr.bf16.mxu1 %v9065_v13  ;;  %5301 = vmatpush1.bf16.msra.mxu0 %v9066_v3  ;;  %v9100_v13 = vld [vmem:[#allocation8 + $0xc08] ss:$20 sps:$4 sm:$0xff]   ;;  %v9108_v3 = vld [vmem:[#allocation8 + $0xbe4] ss:$20 sps:$4 sm:$0xff]  }
 0x2af   :  { %5302 = vmatprep.subr.bf16.mxu0 %v9075_v51  ;;  %v9109_v51 = vld [vmem:[#allocation8 + $0x1090] ss:$20 sps:$4 sm:$0xff]  }
 0x2b1   :  { %8105 = vmatpush3.bf16.msra.mxu1 %v9069_v55  ;;  %v9106_v55 = vld [vmem:[#allocation8 + $0xbe0] ss:$20 sps:$4 sm:$0xff]  }
 0x2b2   :  { %5257 = vmatprep.subr.bf16.mxu1 %v9072_v57  ;;  %5303 = vmatpush1.bf16.msra.mxu0 %v9073_v63  ;;  %v9114_v57 = vld [vmem:[#allocation8 + $0xbbc] ss:$20 sps:$4 sm:$0xff]  }
 0x2b3   :  { %5304 = vmatprep.subr.bf16.mxu0 %v9081_v58  ;;  %v9115_v63 = vld [vmem:[#allocation8 + $0x1068] ss:$20 sps:$4 sm:$0xff]   ;;  %v9123_v58 = vld [vmem:[#allocation8 + $0x1044] ss:$20 sps:$4 sm:$0xff]  }
 0x2b4   :  { %3961 = vmatmul.mubr.bf16.vlgmr.msra.gmra.mxu1 %v10453_v56 }
 0x2b5   :  { %5258 = vmatpush1.bf16.msra.mxu1 %v9070_v41  ;;  %5289 = vmatprep.mubr.bf16.mxu1 %v10459_v8  ;;  %v9112_v41 = vld [vmem:[#allocation8 + $0xbb8] ss:$20 sps:$4 sm:$0xff]  }
 0x2b6   :  { %5259 = vmatprep.subr.bf16.mxu1 %v9078_v59  ;;  %5305 = vmatpush1.bf16.msra.mxu0 %v9079_v62  ;;  %v9120_v59 = vld [vmem:[#allocation8 + $0xe14] ss:$20 sps:$4 sm:$0xff]  }
 0x2b7   :  { %5306 = vmatprep.subr.bf16.mxu0 %v9087_v1  ;;  %v9121_v62 = vld [vmem:[#allocation8 + $0x1040] ss:$20 sps:$4 sm:$0xff]   ;;  %v9129_v1 = vld [vmem:[#allocation8 + $0x101c] ss:$20 sps:$4 sm:$0xff]  }
 0x2b9   :  { %5260 = vmatpush1.bf16.msra.mxu1 %v9076_v4  ;;  %v9118_v4 = vld [vmem:[#allocation8 + $0xe10] ss:$20 sps:$4 sm:$0xff]  }
 0x2ba   :  { %5261 = vmatprep.subr.bf16.mxu1 %v9084_v5  ;;  %5307 = vmatpush1.bf16.msra.mxu0 %v9085_v6  ;;  %v9126_v5 = vld [vmem:[#allocation8 + $0xdec] ss:$20 sps:$4 sm:$0xff]  }
 0x2bb   :  { %5308 = vmatprep.subr.bf16.mxu0 %v9093_v52  ;;  %v9127_v6 = vld [vmem:[#allocation8 + $0x1018] ss:$20 sps:$4 sm:$0xff]   ;;  %v9135_v52 = vld [vmem:[#allocation8 + $0xff4] ss:$20 sps:$4 sm:$0xff]  }
 0x2bc   :  { %v2362_v20 = vpop.f32.mrf.mxu1 }
 0x2bd   :  { %v10598_v23 = vadd.f32 %v2362_v20, %v2323_v19  ;;  %5262 = vmatpush1.bf16.msra.mxu1 %v9082_v10  ;;  %v9117_v19 = vld [vmem:[#allocation8 + $0x106c] ss:$20 sps:$4 sm:$0xff]   ;;  %v9124_v10 = vld [vmem:[#allocation8 + $0xde8] ss:$20 sps:$4 sm:$0xff]  }
 0x2be   :  { %v8406_v27 = vpop.f32.mrf.mxu1  ;;  %5263 = vmatprep.subr.bf16.mxu1 %v9090_v12  ;;  %5309 = vmatpush1.bf16.msra.mxu0 %v9091_v37  ;;  %v9132_v12 = vld [vmem:[#allocation8 + $0xdc4] ss:$20 sps:$4 sm:$0xff]  }
 0x2bf   :  { %5310 = vmatprep.subr.bf16.mxu0 %v9099_v18  ;;  %v9133_v37 = vld [vmem:[#allocation8 + $0xff0] ss:$20 sps:$4 sm:$0xff]   ;;  %v9141_v18 = vld [vmem:[#allocation8 + $0xfcc] ss:$20 sps:$4 sm:$0xff]  }
 0x2c0   :  { %v2365_v32 = vpop.f32.mrf.mxu1  ;;  %v9138_v27 = vld [vmem:[#allocation8 + $0xd9c] ss:$20 sps:$4 sm:$0xff]  }
 0x2c1   :  { %5264 = vmatpush1.bf16.msra.mxu1 %v9088_v24  ;;  %v9130_v24 = vld [vmem:[#allocation8 + $0xdc0] ss:$20 sps:$4 sm:$0xff]  }
 0x2c2   :  { %v8407_v33 = vpop.f32.mrf.mxu1  ;;  %5265 = vmatprep.subr.bf16.mxu1 %v9096_v28  ;;  %5311 = vmatpush1.bf16.msra.mxu0 %v9097_v60  ;;  %v9139_v28 = vld [vmem:[#allocation8 + $0xfc8] ss:$20 sps:$4 sm:$0xff]  }
 0x2c3   :  { %5312 = vmatprep.subr.bf16.mxu0 %v9105_v31  ;;  %v9147_v31 = vld [vmem:[#allocation8 + $0xfa4] ss:$20 sps:$4 sm:$0xff]   ;;  %v9144_v33 = vld [vmem:[#allocation8 + $0xd74] ss:$20 sps:$4 sm:$0xff]  }
 0x2c5   :  { %5266 = vmatpush1.bf16.msra.mxu1 %v9094_v47  ;;  %v9136_v47 = vld [vmem:[#allocation8 + $0xd98] ss:$20 sps:$4 sm:$0xff]  }
 0x2c6   :  { %5267 = vmatprep.subr.bf16.mxu1 %v9102_v34  ;;  %5313 = vmatpush1.bf16.msra.mxu0 %v9103_v36  ;;  %v9145_v34 = vld [vmem:[#allocation8 + $0xfa0] ss:$20 sps:$4 sm:$0xff]  }
 0x2c7   :  { %5314 = vmatprep.subr.bf16.mxu0 %v9111_v39  ;;  %v9153_v39 = vld [vmem:[#allocation8 + $0xf7c] ss:$20 sps:$4 sm:$0xff]  }
 0x2c9   :  { %5268 = vmatpush1.bf16.msra.mxu1 %v9100_v13  ;;  %v9142_v13 = vld [vmem:[#allocation8 + $0xd70] ss:$20 sps:$4 sm:$0xff]  }
 0x2ca   :  { %5269 = vmatprep.subr.bf16.mxu1 %v9108_v3  ;;  %5315 = vmatpush2.bf16.msra.mxu0 %v9109_v51  ;;  %v9150_v3 = vld [vmem:[#allocation8 + $0xd4c] ss:$20 sps:$4 sm:$0xff]  }
 0x2cb   :  { %5316 = vmatprep.subr.bf16.mxu0 %v9117_v19  ;;  %v9151_v51 = vld [vmem:[#allocation8 + $0xf78] ss:$20 sps:$4 sm:$0xff]   ;;  %v9159_v19 = vld [vmem:[#allocation8 + $0xcdc] ss:$20 sps:$4 sm:$0xff]  }
 0x2cd   :  { %5270 = vmatpush1.bf16.msra.mxu1 %v9106_v55  ;;  %v9148_v55 = vld [vmem:[#allocation8 + $0xd48] ss:$20 sps:$4 sm:$0xff]  }
 0x2ce   :  { %5271 = vmatprep.subr.bf16.mxu1 %v9114_v57  ;;  %5317 = vmatpush2.bf16.msra.mxu0 %v9115_v63  ;;  %v9156_v57 = vld [vmem:[#allocation8 + $0xd24] ss:$20 sps:$4 sm:$0xff]  }
 0x2cf   :  { %5318 = vmatprep.subr.bf16.mxu0 %v9123_v58  ;;  %v9157_v63 = vld [vmem:[#allocation8 + $0xcd8] ss:$20 sps:$4 sm:$0xff]   ;;  %v9165_v58 = vld [vmem:[#allocation8 + $0xcb4] ss:$20 sps:$4 sm:$0xff]  }
 0x2d1   :  { %5272 = vmatpush1.bf16.msra.mxu1 %v9112_v41  ;;  %v7546_v41 = vmul.f32 -1.442695, %v10536_v7 }
 0x2d2   :  { %5273 = vmatprep.subr.bf16.mxu1 %v9120_v59  ;;  %5319 = vmatpush2.bf16.msra.mxu0 %v9121_v62  ;;  %v9154_v59 = vld [vmem:[#allocation8 + $0xd20] ss:$20 sps:$4 sm:$0xff]   ;;  %v7547_v62 = vmul.f32 -1.442695, %v10538_v14  ;;  %v9176_v14 = vld [vmem:[#allocation8 + $0xc64] ss:$20 sps:$4 sm:$0xff]  }
 0x2d3   :  { %5320 = vmatprep.subr.bf16.mxu0 %v9129_v1  ;;  %v9162_v1 = vld [vmem:[#allocation8 + $0xcfc] ss:$20 sps:$4 sm:$0xff]   ;;  %9426 = vpow2.f32 %v7546_v41 }
 0x2d4   :  { %9428 = vpow2.f32 %v7547_v62 }
 0x2d5   :  { %5274 = vmatpush2.bf16.msra.mxu1 %v9118_v4  ;;  %v9163_v4 = vld [vmem:[#allocation8 + $0xcb0] ss:$20 sps:$4 sm:$0xff]  }
 0x2d6   :  { %5275 = vmatprep.subr.bf16.mxu1 %v9126_v5  ;;  %5321 = vmatpush2.bf16.msra.mxu0 %v9127_v6  ;;  %v4236_v5 = vld [vmem:[#allocation8 + $0x1180] sm:$0xff] }
 0x2d7   :  { %5322 = vmatprep.subr.bf16.mxu0 %v9135_v52  ;;  %v9169_v6 = vld [vmem:[#allocation8 + $0xc8c] ss:$20 sps:$4 sm:$0xff]   ;;  %v10608_v7 = vcombine.high %v4236_v5, %v4236_v5 }
 0x2d8   :  { %v9160_v52 = vld [vmem:[#allocation8 + $0xcf8] ss:$20 sps:$4 sm:$0xff]  }
 0x2d9   :  { %5276 = vmatpush2.bf16.msra.mxu1 %v9124_v10  ;;  %v10600_v20 = vpop.f32.mrf.mxu0  ;;  %v9167_v10 = vld [vmem:[#allocation8 + $0xc88] ss:$20 sps:$4 sm:$0xff]  }
 0x2da   :  { %5277 = vmatprep.subr.bf16.mxu1 %v9132_v12  ;;  %5323 = vmatpush2.bf16.msra.mxu0 %v9133_v37  ;;  %v7931_v12 = vcombine.low %v4236_v5, %v4236_v5 }
 0x2db   :  { %v10602_v60 = vpop.f32.mrf.mxu0  ;;  %5324 = vmatprep.subr.bf16.mxu0 %v9141_v18 }
 0x2dc   :  { %v10613_v18 = vsel %vm1986_vm3, %v7931_v12, 0  ;;  %v9191_v12 = vld [vmem:[#allocation8 + $0x10e4] ss:$20 sps:$4 sm:$0xff]  }
 0x2dd   :  { %5278 = vmatpush2.bf16.msra.mxu1 %v9130_v24  ;;  %v3680_v32 = vpop.f32.mrf.mxu0  ;;  %v9173_v24 = vld [vmem:[#allocation8 + $0x115c] ss:$20 sps:$4 sm:$0xff]  }
 0x2de   :  { %5279 = vmatprep.subr.bf16.mxu1 %v9138_v27  ;;  %5325 = vmatpush2.bf16.msra.mxu0 %v9139_v28  ;;  %v9174_v27 = vld [vmem:[#allocation8 + $0xc60] ss:$20 sps:$4 sm:$0xff]   ;;  %v10615_v32 = vld [vmem:[#allocation10 + $0x5] sm:$0x1f] }
 0x2df   :  { %v3681_v36 = vpop.f32.mrf.mxu0  ;;  %5326 = vmatprep.subr.bf16.mxu0 %v9147_v31  ;;  %v9182_v31 = vld [vmem:[#allocation8 + $0xc3c] ss:$20 sps:$4 sm:$0xff]  }
 0x2e0   :  { %v9180_v36 = vld [vmem:[#allocation8 + $0xc38] ss:$20 sps:$4 sm:$0xff]  }
 0x2e1   :  { %5280 = vmatpush2.bf16.msra.mxu1 %v9136_v47 }
 0x2e2   :  { %5281 = vmatprep.subr.bf16.mxu1 %v9144_v33  ;;  %5327 = vmatpush2.bf16.msra.mxu0 %v9145_v34  ;;  %v9171_v33 = vld [vmem:[#allocation8 + $0x1158] ss:$20 sps:$4 sm:$0xff]   ;;  %v9179_v34 = vld [vmem:[#allocation8 + $0x1134] ss:$20 sps:$4 sm:$0xff]  }
 0x2e3   :  { %5328 = vmatprep.subr.bf16.mxu0 %v9153_v39  ;;  %v10622_v39 = vrot.slane %v10615_v32, %v10398_v42 }
 0x2e5   :  { %5282 = vmatpush2.bf16.msra.mxu1 %v9142_v13  ;;  %v3677_v41 = vadd.f32 %v10600_v20, %v10622_v39  ;;  %v9200_v20 = vld [vmem:[#allocation8 + $0xbc4] ss:$20 sps:$4 sm:$0xff]  }
 0x2e6   :  { %5283 = vmatprep.subr.bf16.mxu1 %v9150_v3  ;;  %5329 = vmatpush2.bf16.msra.mxu0 %v9151_v51  ;;  %v9188_v3 = vld [vmem:[#allocation8 + $0xc14] ss:$20 sps:$4 sm:$0xff]   ;;  %v9427_v51 = vpop.eup %9426 }
 0x2e7   :  { %5380 = vmatprep.subr.bf16.mxu0 %v9159_v19  ;;  %v10626_v19 = vrot.slane %v10615_v32, %v10400_v44  ;;  %v2383_v62 = vadd.f32 1.0, %v9427_v51  ;;  %v9206_v51 = vld [vmem:[#allocation8 + $0xf5c] ss:$20 sps:$4 sm:$0xff]  }
 0x2e9   :  { %5284 = vmatpush2.bf16.msra.mxu1 %v9148_v55  ;;  %5331 = vmatmul.mubr.bf16.vlgmr.msra.gmra.mxu0 %v10453_v56  ;;  %v9177_v55 = vld [vmem:[#allocation8 + $0x1130] ss:$20 sps:$4 sm:$0xff]   ;;  %9430 = vrcp.f32 %v2383_v62 }
 0x2ea   :  { %5285 = vmatprep.subr.bf16.mxu1 %v9156_v57  ;;  %5381 = vmatpush1.bf16.msra.mxu0 %v9157_v63  ;;  %v9185_v57 = vld [vmem:[#allocation8 + $0x110c] ss:$20 sps:$4 sm:$0xff]   ;;  %v9186_v63 = vld [vmem:[#allocation8 + $0xc10] ss:$20 sps:$4 sm:$0xff]  }
 0x2eb   :  { %5412 = vmatprep.mubr.bf16.mxu0 %v10459_v8  ;;  %5382 = vmatprep.subr.bf16.mxu0 %v9165_v58  ;;  %v9429_v58 = vpop.eup %9428 }
 0x2ed   :  { %5286 = vmatpush2.bf16.msra.mxu1 %v9154_v59  ;;  %v9194_v59 = vld [vmem:[#allocation8 + $0xbec] ss:$20 sps:$4 sm:$0xff]  }
 0x2ee   :  { %5287 = vmatprep.subr.bf16.mxu1 %v9162_v1  ;;  %5383 = vmatpush1.bf16.msra.mxu0 %v9163_v4  ;;  %v3679_v4 = vadd.f32 %v10602_v60, %v10626_v19 }
 0x2ef   :  { %5384 = vmatprep.subr.bf16.mxu0 %v9169_v6  ;;  %v9183_v6 = vld [vmem:[#allocation8 + $0x1108] ss:$20 sps:$4 sm:$0xff]  }
 0x2f1   :  { %5288 = vmatpush2.bf16.msra.mxu1 %v9160_v52  ;;  %v3758_v37 = vpop.f32.mrf.mxu0  ;;  %v2384_v52 = vadd.f32 1.0, %v9429_v58  ;;  %v9215_v58 = vld [vmem:[#allocation8 + $0xdcc] ss:$20 sps:$4 sm:$0xff]  }
 0x2f2   :  { %7936 = vmatprep.subr.msk.bf16.mxu1 %vm1986_vm3, %v10608_v7  ;;  %5385 = vmatpush1.bf16.msra.mxu0 %v9167_v10 }
 0x2f3   :  { %v3760_v28 = vpop.f32.mrf.mxu0  ;;  %5386 = vmatprep.subr.bf16.mxu0 %v9176_v14  ;;  %v9192_v14 = vld [vmem:[#allocation8 + $0xbe8] ss:$20 sps:$4 sm:$0xff]  }
 0x2f4   :  { %5290 = vmatmul.mubr.bf16.vlgmr.msra.gmra.mxu1 %v10461_v9 }
 0x2f5   :  { %5344 = vmatpush1.bf16.msra.mxu1 %v10613_v18  ;;  %v3762_v47 = vpop.f32.mrf.mxu0  ;;  %5371 = vmatprep.mubr.bf16.mxu1 %v10284_v0 }
 0x2f6   :  { %5345 = vmatprep.subr.bf16.mxu1 %v9173_v24  ;;  %5387 = vmatpush1.bf16.msra.mxu0 %v9174_v27 }
 0x2f7   :  { %v3763_v13 = vpop.f32.mrf.mxu0  ;;  %5388 = vmatprep.subr.bf16.mxu0 %v9182_v31 }
 0x2f8   :  { %v9203_v13 = vld [vmem:[#allocation8 + $0xe1c] ss:$20 sps:$4 sm:$0xff]  }
 0x2f9   :  { %5346 = vmatpush1.bf16.msra.mxu1 %v9171_v33  ;;  %v9189_v33 = vld [vmem:[#allocation8 + $0x10e0] ss:$20 sps:$4 sm:$0xff]  }
 0x2fa   :  { %5347 = vmatprep.subr.bf16.mxu1 %v9179_v34  ;;  %5389 = vmatpush1.bf16.msra.mxu0 %v9180_v36  ;;  %v9197_v34 = vld [vmem:[#allocation8 + $0x10bc] ss:$20 sps:$4 sm:$0xff]   ;;  %v9198_v36 = vld [vmem:[#allocation8 + $0xbc0] ss:$20 sps:$4 sm:$0xff]  }
 0x2fb   :  { %5390 = vmatprep.subr.bf16.mxu0 %v9188_v3  ;;  %v9201_v3 = vld [vmem:[#allocation8 + $0xe18] ss:$20 sps:$4 sm:$0xff]  }
 0x2fc   :  { %v3717_v1 = vpop.f32.mrf.mxu1 }
 0x2fd   :  { %v3718_v5 = vadd.f32 %v3717_v1, %v3677_v41  ;;  %5348 = vmatpush1.bf16.msra.mxu1 %v9177_v55  ;;  %v9209_v55 = vld [vmem:[#allocation8 + $0xdf4] ss:$20 sps:$4 sm:$0xff]   ;;  %v9431_v41 = vpop.eup %9430 }
 0x2fe   :  { %v3719_v10 = vpop.f32.mrf.mxu1  ;;  %5349 = vmatprep.subr.bf16.mxu1 %v9185_v57  ;;  %5391 = vmatpush1.bf16.msra.mxu0 %v9186_v63  ;;  %v9207_v57 = vld [vmem:[#allocation8 + $0xdf0] ss:$20 sps:$4 sm:$0xff]   ;;  %v9212_v63 = vld [vmem:[#allocation8 + $0xf34] ss:$20 sps:$4 sm:$0xff]  }
 0x2ff   :  { %v3759_v24 = vadd.f32 %v3758_v37, %v3718_v5  ;;  %v3720_v27 = vadd.f32 %v3719_v10, %v3679_v4  ;;  %5392 = vmatprep.subr.bf16.mxu0 %v9194_v59  ;;  %v9195_v37 = vld [vmem:[#allocation8 + $0x10b8] ss:$20 sps:$4 sm:$0xff]   ;;  %v9210_v59 = vld [vmem:[#allocation8 + $0xf30] ss:$20 sps:$4 sm:$0xff]   ;;  %v9213_v1 = vld [vmem:[#allocation8 + $0xdc8] ss:$20 sps:$4 sm:$0xff]  }
 0x300   :  { %v3721_v31 = vpop.f32.mrf.mxu1  ;;  %v9218_v4 = vld [vmem:[#allocation8 + $0xf0c] ss:$20 sps:$4 sm:$0xff]  }
 0x301   :  { %9432 = vtanh.f32 %v3759_v24  ;;  %v3761_v47 = vadd.f32 %v3760_v28, %v3720_v27  ;;  %5350 = vmatpush1.bf16.msra.mxu1 %v9183_v6  ;;  %v9204_v28 = vld [vmem:[#allocation8 + $0xf58] ss:$20 sps:$4 sm:$0xff]   ;;  %v9219_v24 = vld [vmem:[#allocation8 + $0xda0] ss:$20 sps:$4 sm:$0xff]  }
 0x302   :  { %9434 = vrcp.f32 %v2384_v52  ;;  %v3722_v60 = vpop.f32.mrf.mxu1  ;;  %5351 = vmatprep.subr.bf16.mxu1 %v9191_v12  ;;  %5393 = vmatpush1.bf16.msra.mxu0 %v9192_v14  ;;  %v9221_v52 = vld [vmem:[#allocation8 + $0xda4] ss:$20 sps:$4 sm:$0xff]   ;;  %v9216_v14 = vld [vmem:[#allocation8 + $0xf08] ss:$20 sps:$4 sm:$0xff]   ;;  %v9222_v31 = vld [vmem:[#allocation8 + $0xee0] ss:$20 sps:$4 sm:$0xff]  }
 0x303   :  { %9436 = vtanh.f32 %v3761_v47  ;;  %5394 = vmatprep.subr.bf16.mxu0 %v9200_v20  ;;  %v9224_v27 = vld [vmem:[#allocation8 + $0xee4] ss:$20 sps:$4 sm:$0xff]   ;;  %v9227_v20 = vld [vmem:[#allocation8 + $0xd7c] ss:$20 sps:$4 sm:$0xff]   ;;  %v9233_v60 = vld [vmem:[#allocation8 + $0xd54] ss:$20 sps:$4 sm:$0xff]  }
 0x304   :  { %v9225_v47 = vld [vmem:[#allocation8 + $0xd78] ss:$20 sps:$4 sm:$0xff]  }
 0x305   :  { %5352 = vmatpush1.bf16.msra.mxu1 %v9189_v33  ;;  %v9230_v33 = vld [vmem:[#allocation8 + $0xebc] ss:$20 sps:$4 sm:$0xff]  }
 0x306   :  { %5353 = vmatprep.subr.bf16.mxu1 %v9197_v34  ;;  %5395 = vmatpush1.bf16.msra.mxu0 %v9198_v36  ;;  %v9228_v34 = vld [vmem:[#allocation8 + $0xeb8] ss:$20 sps:$4 sm:$0xff]   ;;  %v9231_v36 = vld [vmem:[#allocation8 + $0xd50] ss:$20 sps:$4 sm:$0xff]  }
 0x307   :  { %5396 = vmatprep.subr.bf16.mxu0 %v9203_v13  ;;  %v9236_v13 = vld [vmem:[#allocation8 + $0xe94] ss:$20 sps:$4 sm:$0xff]  }
 0x309   :  { %5354 = vmatpush1.bf16.msra.mxu1 %v9195_v37  ;;  %v9239_v37 = vld [vmem:[#allocation8 + $0xd2c] ss:$20 sps:$4 sm:$0xff]  }
 0x30a   :  { %5421 = vmatprep.subr.bf16.mxu1 %v9206_v51  ;;  %5397 = vmatpush2.bf16.msra.mxu0 %v9201_v3  ;;  %v9234_v3 = vld [vmem:[#allocation8 + $0xe90] ss:$20 sps:$4 sm:$0xff]   ;;  %v9237_v51 = vld [vmem:[#allocation8 + $0xd28] ss:$20 sps:$4 sm:$0xff]  }
 0x30b   :  { %5398 = vmatprep.subr.bf16.mxu0 %v9209_v55  ;;  %v9242_v55 = vld [vmem:[#allocation8 + $0xe6c] ss:$20 sps:$4 sm:$0xff]  }
 0x30c   :  { %7937 = vmatmul.mubr.msk.bf16.vlgmr.msra.gmra.mxu1 %vm1982_vm4, %v10471_v50 }
 0x30d   :  { %5422 = vmatpush1.bf16.msra.mxu1 %v9204_v28  ;;  %5453 = vmatprep.mubr.bf16.mxu1 %v10451_v54  ;;  %v9245_v28 = vld [vmem:[#allocation8 + $0xd04] ss:$20 sps:$4 sm:$0xff]  }
 0x30e   :  { %v9433_v62 = vpop.eup %9432  ;;  %5423 = vmatprep.subr.bf16.mxu1 %v9212_v63  ;;  %5399 = vmatpush2.bf16.msra.mxu0 %v9207_v57  ;;  %v4237_v57 = vld [vmem:[#allocation8 + $0x1188] sm:$0xff] }
 0x30f   :  { %v9435_v5 = vpop.eup %9434  ;;  %v10635_v6 = vmul.f32 %v9433_v62, %v9431_v41  ;;  %5400 = vmatprep.subr.bf16.mxu0 %v9215_v58  ;;  %v9240_v63 = vld [vmem:[#allocation8 + $0xe68] ss:$20 sps:$4 sm:$0xff]   ;;  %v9243_v58 = vld [vmem:[#allocation8 + $0xd00] ss:$20 sps:$4 sm:$0xff]   ;;  %v9248_v41 = vld [vmem:[#allocation8 + $0xe44] ss:$20 sps:$4 sm:$0xff]   ;;  %v7933_v62 = vcombine.low %v4237_v57, %v4237_v57 }
 0x310   :  { %v9437_v10 = vpop.eup %9436 }
 0x311   :  { %v10637_v12 = vmul.f32 %v9437_v10, %v9435_v5  ;;  %5424 = vmatpush1.bf16.msra.mxu1 %v9210_v59  ;;  %v10639_v59 = vcombine.high %v4237_v57, %v4237_v57  ;;  %v10644_v5 = vsel %vm1986_vm3, %v7933_v62, 0  ;;  %v9249_v10 = vld [vmem:[#allocation8 + $0x1098] ss:$20 sps:$4 sm:$0xff]   ;;  %v9275_v57 = vld [vmem:[#allocation8 + $0x10e8] ss:$20 sps:$4 sm:$0xff]  }
 0x312   :  { %5425 = vmatprep.subr.bf16.mxu1 %v9218_v4  ;;  %5401 = vmatpush2.bf16.msra.mxu0 %v9213_v1  ;;  %v9246_v1 = vld [vmem:[#allocation8 + $0xe40] ss:$20 sps:$4 sm:$0xff]   ;;  %v9251_v4 = vld [vmem:[#allocation8 + $0x109c] ss:$20 sps:$4 sm:$0xff]   ;;  %v9272_v62 = vld [vmem:[#allocation8 + $0xff8] ss:$20 sps:$4 sm:$0xff]  }
 0x313   :  { %5402 = vmatprep.subr.bf16.mxu0 %v9221_v52  ;;  %v9259_v52 = vld [vmem:[#allocation8 + $0x1164] ss:$20 sps:$4 sm:$0xff]  }
 0x315   :  { %5426 = vmatpush1.bf16.msra.mxu1 %v9216_v14  ;;  %v9256_v14 = vld [vmem:[#allocation8 + $0x1074] ss:$20 sps:$4 sm:$0xff]  }
 0x316   :  { %5427 = vmatprep.subr.bf16.mxu1 %v9224_v27  ;;  %5403 = vmatpush2.bf16.msra.mxu0 %v9219_v24  ;;  %v9257_v24 = vld [vmem:[#allocation8 + $0x1160] ss:$20 sps:$4 sm:$0xff]   ;;  %v9265_v27 = vld [vmem:[#allocation8 + $0x113c] ss:$20 sps:$4 sm:$0xff]  }
 0x317   :  { %5404 = vmatprep.subr.bf16.mxu0 %v9227_v20  ;;  %v9254_v20 = vld [vmem:[#allocation8 + $0x1070] ss:$20 sps:$4 sm:$0xff]  }
 0x319   :  { %5428 = vmatpush1.bf16.msra.mxu1 %v9222_v31  ;;  %v9262_v31 = vld [vmem:[#allocation8 + $0x104c] ss:$20 sps:$4 sm:$0xff]  }
 0x31a   :  { %5429 = vmatprep.subr.bf16.mxu1 %v9230_v33  ;;  %5405 = vmatpush2.bf16.msra.mxu0 %v9225_v47  ;;  %v9263_v47 = vld [vmem:[#allocation8 + $0x1138] ss:$20 sps:$4 sm:$0xff]   ;;  %v9271_v33 = vld [vmem:[#allocation8 + $0x1114] ss:$20 sps:$4 sm:$0xff]  }
 0x31b   :  { %5406 = vmatprep.subr.bf16.mxu0 %v9233_v60 }
 0x31d   :  { %5430 = vmatpush1.bf16.msra.mxu1 %v9228_v34  ;;  %v9260_v34 = vld [vmem:[#allocation8 + $0x1048] ss:$20 sps:$4 sm:$0xff]  }
 0x31e   :  { %5431 = vmatprep.subr.bf16.mxu1 %v9236_v13  ;;  %5407 = vmatpush2.bf16.msra.mxu0 %v9231_v36  ;;  %v9268_v36 = vld [vmem:[#allocation8 + $0x1024] ss:$20 sps:$4 sm:$0xff]  }
 0x31f   :  { %5408 = vmatprep.subr.bf16.mxu0 %v9239_v37  ;;  %v9269_v13 = vld [vmem:[#allocation8 + $0x1110] ss:$20 sps:$4 sm:$0xff]  }
 0x321   :  { %5432 = vmatpush1.bf16.msra.mxu1 %v9234_v3  ;;  %v9277_v3 = vld [vmem:[#allocation8 + $0x10ec] ss:$20 sps:$4 sm:$0xff]  }
 0x322   :  { %5433 = vmatprep.subr.bf16.mxu1 %v9242_v55  ;;  %5409 = vmatpush2.bf16.msra.mxu0 %v9237_v51  ;;  %v9266_v55 = vld [vmem:[#allocation8 + $0x1020] ss:$20 sps:$4 sm:$0xff]  }
 0x323   :  { %5410 = vmatprep.subr.bf16.mxu0 %v9245_v28  ;;  %v9274_v28 = vld [vmem:[#allocation8 + $0xffc] ss:$20 sps:$4 sm:$0xff]  }
 0x325   :  { %5434 = vmatpush1.bf16.msra.mxu1 %v9240_v63 }
 0x326   :  { %5435 = vmatprep.subr.bf16.mxu1 %v9248_v41  ;;  %5411 = vmatpush2.bf16.msra.mxu0 %v9243_v58  ;;  %v9283_v58 = vld [vmem:[#allocation8 + $0x10c4] ss:$20 sps:$4 sm:$0xff]   ;;  %v10651_v41 = vrot.slane %v10615_v32, %v10402_v45 }
 0x327   :  { %7938 = vmatprep.subr.msk.bf16.mxu0 %vm1986_vm3, %v10639_v59 }
 0x329   :  { %5436 = vmatpush1.bf16.msra.mxu1 %v9246_v1  ;;  %5413 = vmatmul.mubr.bf16.vlgmr.msra.gmra.mxu0 %v10461_v9  ;;  %v9280_v1 = vld [vmem:[#allocation8 + $0xfd4] ss:$20 sps:$4 sm:$0xff]  }
 0x32a   :  { %5437 = vmatprep.subr.bf16.mxu1 %v9251_v4  ;;  %5467 = vmatpush1.bf16.msra.mxu0 %v10644_v5  ;;  %v9281_v4 = vld [vmem:[#allocation8 + $0x10c0] ss:$20 sps:$4 sm:$0xff]  }
 0x32b   :  { %5468 = vmatprep.subr.bf16.mxu0 %v9259_v52  ;;  %5494 = vmatprep.mubr.bf16.mxu0 %v10284_v0  ;;  %v10655_v52 = vrot.slane %v10615_v32, %v10406_v48 }
 0x32d   :  { %5438 = vmatpush2.bf16.msra.mxu1 %v9249_v10  ;;  %v9287_v10 = vld [vmem:[#allocation8 + $0x10a0] ss:$20 sps:$4 sm:$0xff]  }
 0x32e   :  { %5439 = vmatprep.subr.bf16.mxu1 %v9256_v14  ;;  %5469 = vmatpush1.bf16.msra.mxu0 %v9257_v24 }
 0x32f   :  { %5470 = vmatprep.subr.bf16.mxu0 %v9265_v27  ;;  %v9278_v27 = vld [vmem:[#allocation8 + $0xfd0] ss:$20 sps:$4 sm:$0xff]  }
 0x331   :  { %5440 = vmatpush2.bf16.msra.mxu1 %v9254_v20  ;;  %v3840_v60 = vpop.f32.mrf.mxu0  ;;  %v7548_v20 = vmul.f32 -1.442695, %v10568_v26 }
 0x332   :  { %5441 = vmatprep.subr.bf16.mxu1 %v9262_v31  ;;  %5471 = vmatpush1.bf16.msra.mxu0 %v9263_v47  ;;  %v9286_v47 = vld [vmem:[#allocation8 + $0xfac] ss:$20 sps:$4 sm:$0xff]  }
 0x333   :  { %v3842_v37 = vpop.f32.mrf.mxu0  ;;  %5472 = vmatprep.subr.bf16.mxu0 %v9271_v33  ;;  %v9288_v33 = vld [vmem:[#allocation8 + $0xf60] ss:$20 sps:$4 sm:$0xff]   ;;  %9438 = vpow2.f32 %v7548_v20 }
 0x335   :  { %5442 = vmatpush2.bf16.msra.mxu1 %v9260_v34  ;;  %v3844_v51 = vpop.f32.mrf.mxu0 }
 0x336   :  { %5443 = vmatprep.subr.bf16.mxu1 %v9268_v36  ;;  %5473 = vmatpush1.bf16.msra.mxu0 %v9269_v13  ;;  %v9292_v36 = vld [vmem:[#allocation8 + $0x1078] ss:$20 sps:$4 sm:$0xff]  }
 0x337   :  { %v3845_v63 = vpop.f32.mrf.mxu0  ;;  %5474 = vmatprep.subr.bf16.mxu0 %v9277_v3  ;;  %v7549_v3 = vmul.f32 -1.442695, %v10570_v30  ;;  %v9289_v30 = vld [vmem:[#allocation8 + $0xf80] ss:$20 sps:$4 sm:$0xff]  }
 0x338   :  { %v9293_v63 = vld [vmem:[#allocation8 + $0xf38] ss:$20 sps:$4 sm:$0xff]  }
 0x339   :  { %5444 = vmatpush2.bf16.msra.mxu1 %v9266_v55  ;;  %v9284_v55 = vld [vmem:[#allocation8 + $0xfa8] ss:$20 sps:$4 sm:$0xff]   ;;  %9440 = vpow2.f32 %v7549_v3 }
 0x33a   :  { %5445 = vmatprep.subr.bf16.mxu1 %v9274_v28  ;;  %5475 = vmatpush1.bf16.msra.mxu0 %v9275_v57  ;;  %v9291_v57 = vld [vmem:[#allocation8 + $0xf84] ss:$20 sps:$4 sm:$0xff]   ;;  %v9306_v3 = vld [vmem:[#allocation8 + $0xda8] ss:$20 sps:$4 sm:$0xff]  }
 0x33b   :  { %5476 = vmatprep.subr.bf16.mxu0 %v9283_v58  ;;  %v9294_v58 = vld [vmem:[#allocation8 + $0xe20] ss:$20 sps:$4 sm:$0xff]  }
 0x33c   :  { %v3799_v14 = vpop.f32.mrf.mxu1 }
 0x33d   :  { %v3800_v24 = vadd.f32 %v3799_v14, %v10651_v41  ;;  %5446 = vmatpush2.bf16.msra.mxu1 %v9272_v62  ;;  %v9297_v62 = vld [vmem:[#allocation8 + $0xf10] ss:$20 sps:$4 sm:$0xff]   ;;  %v9303_v14 = vld [vmem:[#allocation8 + $0x1000] ss:$20 sps:$4 sm:$0xff]  }
 0x33e   :  { %v3801_v31 = vpop.f32.mrf.mxu1  ;;  %5447 = vmatprep.subr.bf16.mxu1 %v9280_v1  ;;  %5477 = vmatpush1.bf16.msra.mxu0 %v9281_v4  ;;  %v9296_v1 = vld [vmem:[#allocation8 + $0xce0] ss:$20 sps:$4 sm:$0xff]   ;;  %v9298_v4 = vld [vmem:[#allocation8 + $0xdf8] ss:$20 sps:$4 sm:$0xff]  }
 0x33f   :  { %v3802_v34 = vadd.f32 %v3801_v31, %v10655_v52  ;;  %8141 = vmatprep.subr.bf16.mxu0 %v9287_v10  ;;  %v3841_v13 = vadd.f32 %v3840_v60, %v3800_v24  ;;  %v9295_v60 = vld [vmem:[#allocation8 + $0x1050] ss:$20 sps:$4 sm:$0xff]   ;;  %v9301_v10 = vld [vmem:[#allocation8 + $0xee8] ss:$20 sps:$4 sm:$0xff]   ;;  %v9307_v31 = vld [vmem:[#allocation8 + $0xfd8] ss:$20 sps:$4 sm:$0xff]  }
 0x340   :  { %v3803_v51 = vpop.f32.mrf.mxu1  ;;  %v9302_v24 = vld [vmem:[#allocation8 + $0xdd0] ss:$20 sps:$4 sm:$0xff]   ;;  %v9439_v20 = vpop.eup %9438 }
 0x341   :  { %5448 = vmatpush2.bf16.msra.mxu1 %v9278_v27  ;;  %7939 = vmatmul.mubr.msk.bf16.vlgmr.msra.gmra.mxu0 %vm1982_vm4, %v10471_v50  ;;  %v10663_v28 = vadd.f32 %v3842_v37, %v3802_v34  ;;  %v9299_v37 = vld [vmem:[#allocation8 + $0x1028] ss:$20 sps:$4 sm:$0xff]   ;;  %v9305_v27 = vld [vmem:[#allocation8 + $0xec0] ss:$20 sps:$4 sm:$0xff]   ;;  %v9304_v34 = vld [vmem:[#allocation8 + $0xc90] ss:$20 sps:$4 sm:$0xff]  }
 0x342   :  { %v3804_v26 = vpop.f32.mrf.mxu1  ;;  %5449 = vmatprep.subr.bf16.mxu1 %v9286_v47  ;;  %8142 = vmatpush3.bf16.msra.mxu0 %v9288_v33  ;;  %v9309_v51 = vld [vmem:[#allocation8 + $0xe98] ss:$20 sps:$4 sm:$0xff]  }
 0x343   :  { %5575 = vmatprep.mubr.bf16.mxu0 %v10451_v54  ;;  %8143 = vmatprep.subr.bf16.mxu0 %v9292_v36  ;;  %v9300_v54 = vld [vmem:[#allocation8 + $0xcb8] ss:$20 sps:$4 sm:$0xff]   ;;  %v2385_v36 = vadd.f32 1.0, %v9439_v20  ;;  %v9317_v20 = vld [vmem:[#allocation8 + $0xe48] ss:$20 sps:$4 sm:$0xff]  }
 0x345   :  { %5450 = vmatpush2.bf16.msra.mxu1 %v9284_v55  ;;  %9442 = vrcp.f32 %v2385_v36  ;;  %v9547_v36 = vld [vmem:[#allocation8 + $0x118] ss:$20 sps:$4 sm:$0xff]  }
 0x346   :  { %5451 = vmatprep.subr.bf16.mxu1 %v9291_v57  ;;  %8144 = vmatpush3.bf16.msra.mxu0 %v9293_v63  ;;  %v9441_v47 = vpop.eup %9440 }
 0x347   :  { %8145 = vmatprep.subr.bf16.mxu0 %v9295_v60  ;;  %v2386_v26 = vadd.f32 1.0, %v9441_v47  ;;  %v9318_v47 = vld [vmem:[#allocation8 + $0xd30] ss:$20 sps:$4 sm:$0xff]  }
 0x349   :  { %5452 = vmatpush2.bf16.msra.mxu1 %v9289_v30 }
 0x34a   :  { %8119 = vmatprep.subr.bf16.mxu1 %v9294_v58  ;;  %8146 = vmatpush3.bf16.msra.mxu0 %v9297_v62  ;;  %v9308_v58 = vld [vmem:[#allocation8 + $0xc68] ss:$20 sps:$4 sm:$0xff]  }
 0x34b   :  { %8147 = vmatprep.subr.bf16.mxu0 %v9299_v37  ;;  %v9310_v37 = vld [vmem:[#allocation8 + $0xd80] ss:$20 sps:$4 sm:$0xff]  }
 0x34c   :  { %5454 = vmatmul.mubr.bf16.vlgmr.msra.gmra.mxu1 %v10453_v56 }
 0x34d   :  { %8120 = vmatpush3.bf16.msra.mxu1 %v9296_v1  ;;  %5535 = vmatprep.mubr.bf16.mxu1 %v10459_v8  ;;  %v9311_v8 = vld [vmem:[#allocation8 + $0xfb0] ss:$20 sps:$4 sm:$0xff]  }
 0x34e   :  { %8121 = vmatprep.subr.bf16.mxu1 %v9298_v4  ;;  %8148 = vmatpush3.bf16.msra.mxu0 %v9301_v10  ;;  %v9313_v1 = vld [vmem:[#allocation8 + $0xe70] ss:$20 sps:$4 sm:$0xff]  }
 0x34f   :  { %8149 = vmatprep.subr.bf16.mxu0 %v9303_v14  ;;  %v9315_v14 = vld [vmem:[#allocation8 + $0xf88] ss:$20 sps:$4 sm:$0xff]  }
 0x351   :  { %8122 = vmatpush3.bf16.msra.mxu1 %v9300_v54  ;;  %v8084_v33 = vpop.f32.mrf.mxu0 }
 0x352   :  { %8123 = vmatprep.subr.bf16.mxu1 %v9302_v24  ;;  %8150 = vmatpush3.bf16.msra.mxu0 %v9305_v27  ;;  %v9314_v27 = vld [vmem:[#allocation8 + $0xd58] ss:$20 sps:$4 sm:$0xff]  }
 0x353   :  { %v8085_v55 = vpop.f32.mrf.mxu0  ;;  %8151 = vmatprep.subr.bf16.mxu0 %v9307_v31  ;;  %v9316_v31 = vld [vmem:[#allocation8 + $0xc18] ss:$20 sps:$4 sm:$0xff]  }
 0x354   :  { %v3881_v57 = vpop.f32.mrf.mxu1  ;;  %v10668_v63 = vadd.f32 %v8085_v55, %v8084_v33  ;;  %v9319_v33 = vld [vmem:[#allocation8 + $0xbf0] ss:$20 sps:$4 sm:$0xff]  }
 0x355   :  { %v3882_v60 = vadd.f32 %v3881_v57, %v3841_v13  ;;  %8124 = vmatpush3.bf16.msra.mxu1 %v9304_v34  ;;  %v8087_v30 = vpop.f32.mrf.mxu0  ;;  %v9312_v13 = vld [vmem:[#allocation8 + $0xc40] ss:$20 sps:$4 sm:$0xff]   ;;  %v9320_v34 = vld [vmem:[#allocation8 + $0xd08] ss:$20 sps:$4 sm:$0xff]  }
 0x356   :  { %v3883_v62 = vpop.f32.mrf.mxu1  ;;  %8125 = vmatprep.subr.bf16.mxu1 %v9306_v3  ;;  %8152 = vmatpush3.bf16.msra.mxu0 %v9309_v51  ;;  %v9443_v3 = vpop.eup %9442  ;;  %v9548_v51 = vld [vmem:[#allocation8 + $0xf4] ss:$20 sps:$4 sm:$0xff]  }
 0x357   :  { %9444 = vtanh.f32 %v3882_v60  ;;  %v3884_v4 = vadd.f32 %v3883_v62, %v10663_v28  ;;  %v8088_v10 = vpop.f32.mrf.mxu0  ;;  %8153 = vmatprep.subr.bf16.mxu0 %v9311_v8  ;;  %v9546_v28 = vld [vmem:[#allocation8 + $0x11c] ss:$20 sps:$4 sm:$0xff]   ;;  %v7550_v8 = vmul.f32 -1.442695, %v10598_v23 }
 0x358   :  { %9446 = vrcp.f32 %v2386_v26  ;;  %v3885_v54 = vpop.f32.mrf.mxu1  ;;  %v9321_v60 = vld [vmem:[#allocation8 + $0xbc8] ss:$20 sps:$4 sm:$0xff]  }
 0x359   :  { %9448 = vtanh.f32 %v3884_v4  ;;  %8126 = vmatpush3.bf16.msra.mxu1 %v9308_v58  ;;  %v9322_v58 = vld [vmem:[#allocation8 + $0x1190] ss:$0 sps:$4 sm:$0xff]   ;;  %v9551_v4 = vld [vmem:[#allocation8 + $0xc8] ss:$20 sps:$4 sm:$0xff]  }
 0x35a   :  { %v3886_v24 = vpop.f32.mrf.mxu1  ;;  %8127 = vmatprep.subr.bf16.mxu1 %v9310_v37  ;;  %8154 = vmatpush3.bf16.msra.mxu0 %v9313_v1  ;;  %v9550_v37 = vld [vmem:[#allocation8 + $0xcc] ss:$20 sps:$4 sm:$0xff]   ;;  %9450 = vpow2.f32 %v7550_v8  ;;  %v10679_v23 = vsel %vm1986_vm3, %v9322_v58, 0  ;;  %v9326_v58 = vld [vmem:[#allocation8 + $0x10f0] ss:$20 sps:$4 sm:$0xff]  }
 0x35b   :  { %8155 = vmatprep.subr.bf16.mxu0 %v9315_v14  ;;  %v9552_v14 = vld [vmem:[#allocation8 + $0xa4] ss:$20 sps:$4 sm:$0xff]   ;;  %v9553_v24 = vld [vmem:[#allocation8 + $0xa0] ss:$20 sps:$4 sm:$0xff]  }
 0x35d   :  { %8128 = vmatpush3.bf16.msra.mxu1 %v9312_v13  ;;  %v9323_v13 = vld [vmem:[#allocation8 + $0x1168] ss:$20 sps:$4 sm:$0xff]  }
 0x35e   :  { %8129 = vmatprep.subr.bf16.mxu1 %v9314_v27  ;;  %8156 = vmatpush3.bf16.msra.mxu0 %v9317_v20  ;;  %v9554_v20 = vld [vmem:[#allocation8 + $0x7c] ss:$20 sps:$4 sm:$0xff]  }
 0x35f   :  { %5676 = vmatprep.subr.bf16.mxu0 %v9546_v28  ;;  %v9556_v28 = vld [vmem:[#allocation8 + $0x54] ss:$20 sps:$4 sm:$0xff]  }
 0x361   :  { %8130 = vmatpush3.bf16.msra.mxu1 %v9316_v31  ;;  %5576 = vmatmul.mubr.bf16.vlgmr.msra.gmra.mxu0 %v10453_v56  ;;  %v9549_v56 = vld [vmem:[#allocation8 + $0xf0] ss:$20 sps:$4 sm:$0xff]   ;;  %v9324_v31 = vld [vmem:[#allocation8 + $0x1140] ss:$20 sps:$4 sm:$0xff]  }
 0x362   :  { %8131 = vmatprep.subr.bf16.mxu1 %v9318_v47  ;;  %5677 = vmatpush1.bf16.msra.mxu0 %v9547_v36  ;;  %v9555_v47 = vld [vmem:[#allocation8 + $0x78] ss:$20 sps:$4 sm:$0xff]  }
 0x363   :  { %5678 = vmatprep.subr.bf16.mxu0 %v9548_v51  ;;  %v9325_v36 = vld [vmem:[#allocation8 + $0x1118] ss:$20 sps:$4 sm:$0xff]   ;;  %v9557_v51 = vld [vmem:[#allocation8 + $0x50] ss:$20 sps:$4 sm:$0xff]  }
 0x364   :  { %v9445_v55 = vpop.eup %9444 }
 0x365   :  { %v9447_v26 = vpop.eup %9446  ;;  %v10673_v57 = vmul.f32 %v9445_v55, %v9443_v3  ;;  %8132 = vmatpush3.bf16.msra.mxu1 %v9319_v33 }
 0x366   :  { %v9449_v30 = vpop.eup %9448  ;;  %8133 = vmatprep.subr.bf16.mxu1 %v9320_v34  ;;  %5679 = vmatpush1.bf16.msra.mxu0 %v9549_v56 }
 0x367   :  { %v10675_v62 = vmul.f32 %v9449_v30, %v9447_v26  ;;  %5680 = vmatprep.subr.bf16.mxu0 %v9550_v37  ;;  %v9451_v34 = vpop.eup %9450  ;;  %v9558_v26 = vld [vmem:[#allocation8 + $0x2c] ss:$20 sps:$4 sm:$0xff]   ;;  %v9559_v37 = vld [vmem:[#allocation8 + $0x28] ss:$20 sps:$4 sm:$0xff]  }
 0x369   :  { %8134 = vmatpush3.bf16.msra.mxu1 %v9321_v60  ;;  %v4002_v1 = vpop.f32.mrf.mxu0  ;;  %v2387_v60 = vadd.f32 1.0, %v9451_v34 }
 0x36a   :  { %8424 = vmatprep.subr.bf16.mxu1 %v10285_v17  ;;  %5681 = vmatpush1.bf16.msra.mxu0 %v9551_v4 }
 0x36b   :  { %v8422_v10 = vpop.f32.mrf.mxu0  ;;  %5682 = vmatprep.subr.bf16.mxu0 %v9552_v14  ;;  %9452 = vrcp.f32 %v2387_v60  ;;  %v9561_v14 = vld [vmem:[#allocation8] ss:$20 sps:$4 sm:$0xff]   ;;  %v9577_v60 = vld [vmem:[#allocation8 + $0x1bc] ss:$20 sps:$4 sm:$0xff]  }
 0x36c   :  { %5536 = vmatmul.mubr.bf16.vlgmr.msra.gmra.mxu1 %v10461_v9  ;;  %v10689_v9 = vrot.slane %v10615_v32, %v10432_v29  ;;  %v9560_v10 = vld [vmem:[#allocation8 + $0x4] ss:$20 sps:$4 sm:$0xff]  }
 0x36d   :  { %8425 = vmatpush3.bf16.msra.mxu1 %v10679_v23  ;;  %v4005_v54 = vpop.f32.mrf.mxu0  ;;  %8436 = vmatprep.mubr.msk.bf16.mxu1 %vm10286_vm2, %v10285_v17 }
 0x36e   :  { %8426 = vmatprep.subr.bf16.mxu1 %v10285_v17  ;;  %5683 = vmatpush1.bf16.msra.mxu0 %v9553_v24  ;;  %v3923_v55 = vadd.f32 %v10668_v63, %v10689_v9  ;;  %v9327_v63 = vld [vmem:[#allocation8 + $0x10c8] ss:$20 sps:$4 sm:$0xff]  }
 0x36f   :  { %v8423_v27 = vpop.f32.mrf.mxu0  ;;  %5684 = vmatprep.subr.bf16.mxu0 %v9554_v20  ;;  %v9562_v54 = vld [vmem:[#allocation8 + $0x25c] ss:$20 sps:$4 sm:$0xff]  }
 0x370   :  { %v9564_v24 = vld [vmem:[#allocation8 + $0x39c] ss:$20 sps:$4 sm:$0xff]   ;;  %v9565_v27 = vld [vmem:[#allocation8 + $0x234] ss:$20 sps:$4 sm:$0xff]  }
 0x371   :  { %8427 = vmatpush3.bf16.msra.mxu1 %v9323_v13  ;;  %v9563_v13 = vld [vmem:[#allocation8 + $0x258] ss:$20 sps:$4 sm:$0xff]   ;;  %v9567_v20 = vld [vmem:[#allocation8 + $0x230] ss:$20 sps:$4 sm:$0xff]  }
 0x372   :  { %8428 = vmatprep.subr.bf16.mxu1 %v10285_v17  ;;  %5685 = vmatpush1.bf16.msra.mxu0 %v9555_v47  ;;  %v9569_v47 = vld [vmem:[#allocation8 + $0x20c] ss:$20 sps:$4 sm:$0xff]  }
 0x373   :  { %5686 = vmatprep.subr.bf16.mxu0 %v9556_v28 }
 0x374   :  { %v8106_v33 = vpop.f32.mrf.mxu1 }
 0x375   :  { %8429 = vmatpush3.bf16.msra.mxu1 %v9324_v31  ;;  %v9568_v31 = vld [vmem:[#allocation8 + $0x374] ss:$20 sps:$4 sm:$0xff]  }
 0x376   :  { %v8107_v3 = vpop.f32.mrf.mxu1  ;;  %8430 = vmatprep.subr.bf16.mxu1 %v10285_v17  ;;  %5687 = vmatpush1.bf16.msra.mxu0 %v9557_v51 }
 0x377   :  { %v8108_v8 = vadd.f32 %v8107_v3, %v8106_v33  ;;  %5688 = vmatprep.subr.bf16.mxu0 %v9558_v26  ;;  %v9570_v33 = vld [vmem:[#allocation8 + $0x370] ss:$20 sps:$4 sm:$0xff]   ;;  %v9572_v3 = vld [vmem:[#allocation8 + $0x34c] ss:$20 sps:$4 sm:$0xff]  }
 0x378   :  { %v8109_v32 = vpop.f32.mrf.mxu1  ;;  %v9453_v28 = vpop.eup %9452  ;;  %v9576_v26 = vld [vmem:[#allocation8 + $0x324] ss:$20 sps:$4 sm:$0xff]  }
 0x379   :  { %v3963_v30 = vadd.f32 %v8108_v8, %v3923_v55  ;;  %8431 = vmatpush3.bf16.msra.mxu1 %v9325_v36  ;;  %v9571_v36 = vld [vmem:[#allocation8 + $0x208] ss:$20 sps:$4 sm:$0xff]   ;;  %v9573_v55 = vld [vmem:[#allocation8 + $0x1e4] ss:$20 sps:$4 sm:$0xff]   ;;  %v9575_v8 = vld [vmem:[#allocation8 + $0x1e0] ss:$20 sps:$4 sm:$0xff]  }
 0x37a   :  { %v8110_v56 = vpop.f32.mrf.mxu1  ;;  %8432 = vmatprep.subr.bf16.mxu1 %v10285_v17  ;;  %5689 = vmatpush1.bf16.msra.mxu0 %v9559_v37  ;;  %v9578_v32 = vld [vmem:[#allocation8 + $0x320] ss:$20 sps:$4 sm:$0xff]   ;;  %v9582_v37 = vld [vmem:[#allocation8 + $0x2f8] ss:$20 sps:$4 sm:$0xff]  }
 0x37b   :  { %v4003_v4 = vadd.f32 %v4002_v1, %v3963_v30  ;;  %5690 = vmatprep.subr.bf16.mxu0 %v9560_v10  ;;  %v9566_v1 = vld [vmem:[#allocation8 + $0x398] ss:$20 sps:$4 sm:$0xff]   ;;  %v9581_v56 = vld [vmem:[#allocation8 + $0x194] ss:$20 sps:$4 sm:$0xff]  }
 0x37c   :  { %v9579_v30 = vld [vmem:[#allocation8 + $0x1b8] ss:$20 sps:$4 sm:$0xff]   ;;  %v9584_v10 = vld [vmem:[#allocation8 + $0x2d4] ss:$20 sps:$4 sm:$0xff]  }
 0x37d   :  { %9454 = vtanh.f32 %v4003_v4  ;;  %8433 = vmatpush3.bf16.msra.mxu1 %v9326_v58  ;;  %v9580_v58 = vld [vmem:[#allocation8 + $0x2fc] ss:$20 sps:$4 sm:$0xff]  }
 0x37e   :  { %8434 = vmatprep.subr.bf16.mxu1 %v10285_v17  ;;  %5691 = vmatpush1.bf16.msra.mxu0 %v9561_v14  ;;  %v9583_v4 = vld [vmem:[#allocation8 + $0x190] ss:$20 sps:$4 sm:$0xff]  }
 0x37f   :  { %5692 = vmatprep.subr.bf16.mxu0 %v9562_v54  ;;  %v9586_v14 = vld [vmem:[#allocation8 + $0x2d0] ss:$20 sps:$4 sm:$0xff]   ;;  %v9587_v54 = vld [vmem:[#allocation8 + $0x168] ss:$20 sps:$4 sm:$0xff]  }
 0x381   :  { %8435 = vmatpush3.bf16.msra.mxu1 %v9327_v63  ;;  %v9585_v63 = vld [vmem:[#allocation8 + $0x16c] ss:$20 sps:$4 sm:$0xff]  }
 0x382   :  { %5693 = vmatpush2.bf16.msra.mxu0 %v9563_v13  ;;  %5717 = vmatprep.subr.bf16.mxu1 %v9564_v24  ;;  %v9588_v13 = vld [vmem:[#allocation8 + $0x2ac] ss:$20 sps:$4 sm:$0xff]   ;;  %v9589_v24 = vld [vmem:[#allocation8 + $0x144] ss:$20 sps:$4 sm:$0xff]  }
 0x383   :  { %5694 = vmatprep.subr.bf16.mxu0 %v9565_v27  ;;  %v9590_v27 = vld [vmem:[#allocation8 + $0x2a8] ss:$20 sps:$4 sm:$0xff]  }
 0x384   :  { %8437 = vmatmul.mubr.msk.bf16.vlgmr.msra.gmra.mxu1 %vm1982_vm4, %v10471_v50  ;;  %v9574_v50 = vld [vmem:[#allocation8 + $0x348] ss:$20 sps:$4 sm:$0xff]  }
 0x385   :  { %5718 = vmatpush1.bf16.msra.mxu1 %v9566_v1  ;;  %v9591_v1 = vld [vmem:[#allocation8 + $0x140] ss:$20 sps:$4 sm:$0xff]  }
 0x386   :  { %5695 = vmatpush2.bf16.msra.mxu0 %v9567_v20  ;;  %5719 = vmatprep.subr.bf16.mxu1 %v9568_v31  ;;  %v9592_v20 = vld [vmem:[#allocation8 + $0x284] ss:$20 sps:$4 sm:$0xff]   ;;  %v9593_v31 = vld [vmem:[#allocation8 + $0x280] ss:$20 sps:$4 sm:$0xff]  }
 0x387   :  { %5696 = vmatprep.subr.bf16.mxu0 %v9569_v47  ;;  %v9594_v47 = vld [vmem:[#allocation8 + $0x4dc] ss:$20 sps:$4 sm:$0xff]  }
 0x389   :  { %5720 = vmatpush1.bf16.msra.mxu1 %v9570_v33  ;;  %v9596_v33 = vld [vmem:[#allocation8 + $0x4b4] ss:$20 sps:$4 sm:$0xff]  }
 0x38a   :  { %v9455_v34 = vpop.eup %9454  ;;  %5697 = vmatpush2.bf16.msra.mxu0 %v9571_v36  ;;  %5721 = vmatprep.subr.bf16.mxu1 %v9572_v3  ;;  %v9597_v36 = vld [vmem:[#allocation8 + $0x4b0] ss:$20 sps:$4 sm:$0xff]   ;;  %v9598_v3 = vld [vmem:[#allocation8 + $0x48c] ss:$20 sps:$4 sm:$0xff]  }
 0x38b   :  { %v10698_v51 = vmul.f32 %v9455_v34, %v9453_v28  ;;  %5698 = vmatprep.subr.bf16.mxu0 %v9573_v55  ;;  %v9595_v28 = vld [vmem:[#allocation8 + $0x4d8] ss:$20 sps:$4 sm:$0xff]  }
 0x38d   :  { %5722 = vmatpush1.bf16.msra.mxu1 %v9574_v50 }
 0x38e   :  { %5699 = vmatpush2.bf16.msra.mxu0 %v9575_v8  ;;  %5723 = vmatprep.subr.bf16.mxu1 %v9576_v26  ;;  %v9599_v8 = vld [vmem:[#allocation8 + $0x488] ss:$20 sps:$4 sm:$0xff]   ;;  %v9600_v26 = vld [vmem:[#allocation8 + $0x464] ss:$20 sps:$4 sm:$0xff]  }
 0x38f   :  { %5700 = vmatprep.subr.bf16.mxu0 %v9577_v60  ;;  %v9601_v60 = vld [vmem:[#allocation8 + $0x460] ss:$20 sps:$4 sm:$0xff]  }
 0x391   :  { %5724 = vmatpush1.bf16.msra.mxu1 %v9578_v32  ;;  %v9602_v32 = vld [vmem:[#allocation8 + $0x43c] ss:$20 sps:$4 sm:$0xff]  }
 0x392   :  { %5701 = vmatpush2.bf16.msra.mxu0 %v9579_v30  ;;  %5725 = vmatprep.subr.bf16.mxu1 %v9580_v58  ;;  %v9603_v58 = vld [vmem:[#allocation8 + $0x438] ss:$20 sps:$4 sm:$0xff]  }
 0x393   :  { %5702 = vmatprep.subr.bf16.mxu0 %v9581_v56 }
 0x395   :  { %5726 = vmatpush1.bf16.msra.mxu1 %v9582_v37  ;;  %v9604_v37 = vld [vmem:[#allocation8 + $0x414] ss:$20 sps:$4 sm:$0xff]  }
 0x396   :  { %5703 = vmatpush2.bf16.msra.mxu0 %v9583_v4  ;;  %5727 = vmatprep.subr.bf16.mxu1 %v9584_v10  ;;  %v9605_v10 = vld [vmem:[#allocation8 + $0x410] ss:$20 sps:$4 sm:$0xff]  }
 0x397   :  { %5704 = vmatprep.subr.bf16.mxu0 %v9585_v63 }
 0x399   :  { %5728 = vmatpush1.bf16.msra.mxu1 %v9586_v14  ;;  %v9606_v14 = vld [vmem:[#allocation8 + $0x3ec] ss:$20 sps:$4 sm:$0xff]  }
 0x39a   :  { %5705 = vmatpush2.bf16.msra.mxu0 %v9587_v54  ;;  %5729 = vmatprep.subr.bf16.mxu1 %v9588_v13  ;;  %v9607_v54 = vld [vmem:[#allocation8 + $0x3e8] ss:$20 sps:$4 sm:$0xff]   ;;  %v9608_v13 = vld [vmem:[#allocation8 + $0x3c4] ss:$20 sps:$4 sm:$0xff]  }
 0x39b   :  { %5706 = vmatprep.subr.bf16.mxu0 %v9589_v24  ;;  %v10702_v24 = vld [vmem:[#allocation10 + $0xa] sm:$0x1f] }
 0x39d   :  { %5730 = vmatpush1.bf16.msra.mxu1 %v9590_v27  ;;  %v9609_v27 = vld [vmem:[#allocation8 + $0x3c0] ss:$20 sps:$4 sm:$0xff]  }
 0x39e   :  { %5707 = vmatpush2.bf16.msra.mxu0 %v9591_v1  ;;  %5731 = vmatprep.subr.bf16.mxu1 %v9592_v20  ;;  %v9610_v1 = vld [vmem:[#allocation8 + $0x124] ss:$20 sps:$4 sm:$0xff]   ;;  %v10706_v20 = vrot.slane %v10702_v24, %v10398_v42 }
 0x39f   :  { %7946 = vmatprep.subr.msk.bf16.mxu0 %vm1986_vm3, %v10392_v38 }
 0x3a1   :  { %5732 = vmatpush1.bf16.msra.mxu1 %v9593_v31  ;;  %v10710_v31 = vrot.slane %v10702_v24, %v10400_v44 }
 0x3a2   :  { %5733 = vmatprep.subr.bf16.mxu1 %v9594_v47 }
 0x3a5   :  { %5734 = vmatpush2.bf16.msra.mxu1 %v9595_v28 }
 0x3a6   :  { %5735 = vmatprep.subr.bf16.mxu1 %v9596_v33 }
 0x3a9   :  { %v5332_v34 = vpop.f32.mrf.mxu0  ;;  %5736 = vmatpush2.bf16.msra.mxu1 %v9597_v36 }
 0x3aa   :  { %5737 = vmatprep.subr.bf16.mxu1 %v9598_v3 }
 0x3ab   :  { %v5334_v55 = vpop.f32.mrf.mxu0 }
 0x3ad   :  { %v5336_v50 = vpop.f32.mrf.mxu0  ;;  %5738 = vmatpush2.bf16.msra.mxu1 %v9599_v8 }
 0x3ae   :  { %5739 = vmatprep.subr.bf16.mxu1 %v9600_v26 }
 0x3af   :  { %v5337_v38 = vpop.f32.mrf.mxu0 }
 0x3b1   :  { %5740 = vmatpush2.bf16.msra.mxu1 %v9601_v60 }
 0x3b2   :  { %5741 = vmatprep.subr.bf16.mxu1 %v9602_v32 }
 0x3b4   :  { %v5291_v30 = vpop.f32.mrf.mxu1 }
 0x3b5   :  { %5742 = vmatpush2.bf16.msra.mxu1 %v9603_v58  ;;  %v5292_v47 = vadd.f32 %v5291_v30, %v10706_v20 }
 0x3b6   :  { %v5293_v56 = vpop.f32.mrf.mxu1  ;;  %5743 = vmatprep.subr.bf16.mxu1 %v9604_v37 }
 0x3b7   :  { %v5294_v28 = vadd.f32 %v5293_v56, %v10710_v31  ;;  %v5333_v33 = vadd.f32 %v5332_v34, %v5292_v47 }
 0x3b8   :  { %v5295_v4 = vpop.f32.mrf.mxu1 }
 0x3b9   :  { %5744 = vmatpush2.bf16.msra.mxu1 %v9605_v10  ;;  %v5335_v50 = vadd.f32 %v5334_v55, %v5294_v28  ;;  %v9613_v28 = vld [vmem:[#allocation8 + $0x57c] ss:$20 sps:$4 sm:$0xff]  }
 0x3ba   :  { %v5296_v63 = vpop.f32.mrf.mxu1  ;;  %5745 = vmatprep.subr.bf16.mxu1 %v9606_v14 }
 0x3bd   :  { %5746 = vmatpush2.bf16.msra.mxu1 %v9607_v54 }
 0x3be   :  { %5747 = vmatprep.subr.bf16.mxu1 %v9608_v13 }
 0x3c1   :  { %5748 = vmatpush2.bf16.msra.mxu1 %v9609_v27 }
 0x3c2   :  { %5799 = vmatprep.subr.bf16.mxu1 %v9610_v1 }
 0x3cc   :  { %v5373_v36 = vpop.f32.mrf.mxu1 }
 0x3cd   :  { %v5374_v3 = vadd.f32 %v5373_v36, %v5333_v33  ;;  %v9614_v33 = vld [vmem:[#allocation8 + $0x578] ss:$20 sps:$4 sm:$0xff]   ;;  %v9615_v36 = vld [vmem:[#allocation8 + $0x554] ss:$20 sps:$4 sm:$0xff]  }
 0x3ce   :  { %v5375_v8 = vpop.f32.mrf.mxu1 }
 0x3cf   :  { %v7941_v26 = vmul.f32 -1.442695, %v5374_v3  ;;  %v5376_v38 = vadd.f32 %v5375_v8, %v5335_v50  ;;  %v9616_v8 = vld [vmem:[#allocation8 + $0x550] ss:$20 sps:$4 sm:$0xff]  }
 0x3d0   :  { %v5377_v60 = vpop.f32.mrf.mxu1 }
 0x3d1   :  { %9456 = vpow2.f32 %v7941_v26  ;;  %v7942_v32 = vmul.f32 -1.442695, %v5376_v38  ;;  %v9617_v26 = vld [vmem:[#allocation8 + $0x52c] ss:$20 sps:$4 sm:$0xff]  }
 0x3d2   :  { %v5378_v42 = vpop.f32.mrf.mxu1 }
 0x3d3   :  { %9458 = vpow2.f32 %v7942_v32  ;;  %v9618_v32 = vld [vmem:[#allocation8 + $0x528] ss:$20 sps:$4 sm:$0xff]   ;;  %v9619_v42 = vld [vmem:[#allocation8 + $0x504] ss:$20 sps:$4 sm:$0xff]  }
 0x3d4   :  { %9460 = vtanh.f32 %v10635_v6  ;;  %v9611_v6 = vld [vmem:[#allocation8 + $0x5a4] ss:$20 sps:$4 sm:$0xff]  }
 0x3de   :  { %v9457_v58 = vpop.eup %9456 }
 0x3df   :  { %v5638_v37 = vadd.f32 1.0, %v9457_v58  ;;  %v10730_v58 = vrot.slane %v10702_v24, %v10406_v48 }
 0x3e0   :  { %v9459_v44 = vpop.eup %9458 }
 0x3e1   :  { %9462 = vrcp.f32 %v5638_v37  ;;  %v5639_v30 = vadd.f32 1.0, %v9459_v44  ;;  %v9461_v56 = vpop.eup %9460  ;;  %v9620_v44 = vld [vmem:[#allocation8 + $0x500] ss:$20 sps:$4 sm:$0xff]  }
 0x3e2   :  { %9464 = vtanh.f32 %v10637_v12  ;;  %v9612_v12 = vld [vmem:[#allocation8 + $0x5a0] ss:$20 sps:$4 sm:$0xff]  }
 0x3e3   :  { %9466 = vrcp.f32 %v5639_v30 }
 0x3e9   :  { %v5414_v34 = vpop.f32.mrf.mxu0 }
 0x3eb   :  { %v5416_v55 = vpop.f32.mrf.mxu0 }
 0x3ed   :  { %v5418_v4 = vpop.f32.mrf.mxu0 }
 0x3ee   :  { %v9463_v10 = vpop.eup %9462  ;;  %v5417_v4 = vadd.f32 %v5416_v55, %v10730_v58 }
 0x3ef   :  { %v9465_v63 = vpop.eup %9464  ;;  %v5419_v14 = vpop.f32.mrf.mxu0  ;;  %v5663_v13 = vmul.f32 %v9463_v10, %v9461_v56  ;;  %v9621_v56 = vld [vmem:[#allocation8 + $0x3a4] ss:$20 sps:$4 sm:$0xff]  }
 0x3f0   :  { %v9467_v54 = vpop.eup %9466 }
 0x3f1   :  { %v5664_v27 = vmul.f32 %v9467_v54, %v9465_v63  ;;  %v10718_v47 = vpack.c.bf16 %v5663_v13, %v5663_v13 }
 0x3f3   :  { %v10716_v1 = vpack.c.bf16 %v5664_v27, %v5664_v27 }
 0x3f5   :  { %5708 = vmatprep.mubr.bf16.mxu0 %v10716_v1 }
 0x3f6   :  { %5709 = vmatmul.mubr.bf16.vlgmr.msra.gmra.mxu0 %v10718_v47 }
 0x3f7   :  { %5763 = vmatpush1.bf16.msra.mxu0 %v10464_v11  ;;  %5790 = vmatprep.mubr.bf16.mxu0 %v10284_v0  ;;  %v10726_v11 = vrot.slane %v10702_v24, %v10402_v45 }
 0x3f8   :  { %5764 = vmatprep.subr.bf16.mxu0 %v9611_v6 }
 0x3f9   :  { %v5415_v37 = vadd.f32 %v5414_v34, %v10726_v11 }
 0x3fb   :  { %5765 = vmatpush1.bf16.msra.mxu0 %v9612_v12 }
 0x3fc   :  { %5766 = vmatprep.subr.bf16.mxu0 %v9613_v28 }
 0x3ff   :  { %5767 = vmatpush1.bf16.msra.mxu0 %v9614_v33 }
 0x400   :  { %5768 = vmatprep.subr.bf16.mxu0 %v9615_v36 }
 0x401   :  { %v5496_v3 = vpop.f32.mrf.mxu0 }
 0x403   :  { %v5498_v50 = vpop.f32.mrf.mxu0  ;;  %5769 = vmatpush1.bf16.msra.mxu0 %v9616_v8 }
 0x404   :  { %5770 = vmatprep.subr.bf16.mxu0 %v9617_v26 }
 0x405   :  { %v5500_v38 = vpop.f32.mrf.mxu0 }
 0x407   :  { %v5501_v60 = vpop.f32.mrf.mxu0  ;;  %5771 = vmatpush1.bf16.msra.mxu0 %v9618_v32 }
 0x408   :  { %5772 = vmatprep.subr.bf16.mxu0 %v9619_v42 }
 0x40b   :  { %5773 = vmatpush1.bf16.msra.mxu0 %v9620_v44 }
 0x40c   :  { %v5455_v30 = vpop.f32.mrf.mxu1  ;;  %5840 = vmatprep.subr.bf16.mxu0 %v9621_v56 }
 0x40d   :  { %v5456_v45 = vadd.f32 %v5455_v30, %v5415_v37 }
 0x40e   :  { %v5457_v10 = vpop.f32.mrf.mxu1 }
 0x40f   :  { %v5497_v63 = vadd.f32 %v5496_v3, %v5456_v45  ;;  %v5458_v14 = vadd.f32 %v5457_v10, %v5417_v4  ;;  %v9623_v45 = vld [vmem:[#allocation8 + $0xfc] ss:$20 sps:$4 sm:$0xff]   ;;  %v10745_v10 = vrot.slane %v10702_v24, %v10432_v29  ;;  %v9629_v29 = vld [vmem:[#allocation8 + $0x84] ss:$20 sps:$4 sm:$0xff]  }
 0x410   :  { %v5459_v54 = vpop.f32.mrf.mxu1 }
 0x411   :  { %v7943_v13 = vmul.f32 -1.442695, %v5497_v63  ;;  %v5499_v27 = vadd.f32 %v5498_v50, %v5458_v14  ;;  %v9624_v14 = vld [vmem:[#allocation8 + $0xf8] ss:$20 sps:$4 sm:$0xff]   ;;  %v9625_v54 = vld [vmem:[#allocation8 + $0xd4] ss:$20 sps:$4 sm:$0xff]  }
 0x412   :  { %v5460_v6 = vpop.f32.mrf.mxu1 }
 0x413   :  { %9468 = vpow2.f32 %v7943_v13  ;;  %v7944_v48 = vmul.f32 -1.442695, %v5499_v27  ;;  %v9626_v6 = vld [vmem:[#allocation8 + $0xd0] ss:$20 sps:$4 sm:$0xff]  }
 0x415   :  { %9470 = vpow2.f32 %v7944_v48  ;;  %v9627_v48 = vld [vmem:[#allocation8 + $0xac] ss:$20 sps:$4 sm:$0xff]  }
 0x416   :  { %9472 = vtanh.f32 %v10673_v57 }
 0x420   :  { %v9469_v12 = vpop.eup %9468 }
 0x421   :  { %v5640_v34 = vadd.f32 1.0, %v9469_v12  ;;  %v8157_v28 = vpop.f32.mrf.mxu0 }
 0x422   :  { %v9471_v33 = vpop.eup %9470 }
 0x423   :  { %9474 = vrcp.f32 %v5640_v34  ;;  %v5641_v36 = vadd.f32 1.0, %v9471_v33  ;;  %v8158_v55 = vpop.f32.mrf.mxu0  ;;  %v9473_v38 = vpop.eup %9472 }
 0x424   :  { %9476 = vtanh.f32 %v10675_v62  ;;  %v9622_v62 = vld [vmem:[#allocation8 + $0x120] ss:$20 sps:$4 sm:$0xff]   ;;  %v8159_v27 = vadd.f32 %v8158_v55, %v8157_v28  ;;  %v9632_v28 = vld [vmem:[#allocation8 + $0x58] ss:$20 sps:$4 sm:$0xff]  }
 0x425   :  { %9478 = vrcp.f32 %v5641_v36  ;;  %v8160_v3 = vpop.f32.mrf.mxu0  ;;  %v9628_v36 = vld [vmem:[#allocation8 + $0xa8] ss:$20 sps:$4 sm:$0xff]  }
 0x426   :  { %v9633_v55 = vld [vmem:[#allocation8 + $0x34] ss:$20 sps:$4 sm:$0xff]  }
 0x427   :  { %v8161_v8 = vpop.f32.mrf.mxu0 }
 0x42c   :  { %v8135_v26 = vpop.f32.mrf.mxu1 }
 0x42e   :  { %v8136_v50 = vpop.f32.mrf.mxu1 }
 0x42f   :  { %v8137_v63 = vadd.f32 %v8136_v50, %v8135_v26  ;;  %v9630_v26 = vld [vmem:[#allocation8 + $0x80] ss:$20 sps:$4 sm:$0xff]  }
 0x430   :  { %v9475_v60 = vpop.eup %9474  ;;  %v8138_v32 = vpop.f32.mrf.mxu1 }
 0x431   :  { %v9477_v42 = vpop.eup %9476  ;;  %v5665_v44 = vmul.f32 %v9475_v60, %v9473_v38  ;;  %v5538_v13 = vadd.f32 %v8137_v63, %v10745_v10  ;;  %v9631_v38 = vld [vmem:[#allocation8 + $0x5c] ss:$20 sps:$4 sm:$0xff]   ;;  %v9635_v32 = vld [vmem:[#allocation8 + $0xc] ss:$20 sps:$4 sm:$0xff]   ;;  %v9641_v63 = vld [vmem:[#allocation8 + $0x214] ss:$20 sps:$4 sm:$0xff]  }
 0x432   :  { %v9479_v37 = vpop.eup %9478  ;;  %v8139_v30 = vpop.f32.mrf.mxu1  ;;  %v9634_v60 = vld [vmem:[#allocation8 + $0x30] ss:$20 sps:$4 sm:$0xff]  }
 0x433   :  { %v5666_v56 = vmul.f32 %v9479_v37, %v9477_v42  ;;  %v10738_v57 = vpack.c.bf16 %v5665_v44, %v5665_v44  ;;  %v5578_v12 = vadd.f32 %v8159_v27, %v5538_v13  ;;  %v9636_v42 = vld [vmem:[#allocation8 + $0x8] ss:$20 sps:$4 sm:$0xff]   ;;  %v9637_v44 = vld [vmem:[#allocation8 + $0x264] ss:$20 sps:$4 sm:$0xff]  }
 0x434   :  { %v9644_v27 = vld [vmem:[#allocation8 + $0x1e8] ss:$20 sps:$4 sm:$0xff]  }
 0x435   :  { %v10736_v4 = vpack.c.bf16 %v5666_v56, %v5666_v56  ;;  %v9638_v56 = vld [vmem:[#allocation8 + $0x260] ss:$20 sps:$4 sm:$0xff]  }
 0x437   :  { %5749 = vmatprep.mubr.bf16.mxu1 %v10736_v4 }
 0x438   :  { %5750 = vmatmul.mubr.bf16.vlgmr.msra.gmra.mxu1 %v10738_v57 }
 0x439   :  { %5800 = vmatpush1.bf16.msra.mxu1 %v9622_v62  ;;  %5831 = vmatprep.mubr.bf16.mxu1 %v10716_v1  ;;  %v9639_v62 = vld [vmem:[#allocation8 + $0x23c] ss:$20 sps:$4 sm:$0xff]  }
 0x43a   :  { %5801 = vmatprep.subr.bf16.mxu1 %v9623_v45  ;;  %v9640_v45 = vld [vmem:[#allocation8 + $0x238] ss:$20 sps:$4 sm:$0xff]  }
 0x43d   :  { %5802 = vmatpush1.bf16.msra.mxu1 %v9624_v14  ;;  %v9642_v14 = vld [vmem:[#allocation8 + $0x210] ss:$20 sps:$4 sm:$0xff]  }
 0x43e   :  { %5803 = vmatprep.subr.bf16.mxu1 %v9625_v54  ;;  %v9643_v54 = vld [vmem:[#allocation8 + $0x1ec] ss:$20 sps:$4 sm:$0xff]  }
 0x441   :  { %5804 = vmatpush1.bf16.msra.mxu1 %v9626_v6 }
 0x442   :  { %5805 = vmatprep.subr.bf16.mxu1 %v9627_v48  ;;  %v9645_v48 = vld [vmem:[#allocation8 + $0x1c4] ss:$20 sps:$4 sm:$0xff]  }
 0x444   :  { %v5617_v34 = vpop.f32.mrf.mxu1 }
 0x445   :  { %v5618_v33 = vadd.f32 %v5617_v34, %v5578_v12  ;;  %5806 = vmatpush1.bf16.msra.mxu1 %v9628_v36  ;;  %v9646_v34 = vld [vmem:[#allocation8 + $0x1c0] ss:$20 sps:$4 sm:$0xff]  }
 0x446   :  { %v8438_v3 = vpop.f32.mrf.mxu1  ;;  %5807 = vmatprep.subr.bf16.mxu1 %v9629_v29  ;;  %v9648_v36 = vld [vmem:[#allocation8 + $0x3a0] ss:$20 sps:$4 sm:$0xff]   ;;  %v9650_v29 = vld [vmem:[#allocation8 + $0x37c] ss:$20 sps:$4 sm:$0xff]  }
 0x447   :  { %v7945_v24 = vmul.f32 -1.442695, %v5618_v33  ;;  %v9647_v33 = vld [vmem:[#allocation8 + $0x19c] ss:$20 sps:$4 sm:$0xff]   ;;  %v9649_v3 = vld [vmem:[#allocation8 + $0x198] ss:$20 sps:$4 sm:$0xff]  }
 0x448   :  { %v5620_v8 = vpop.f32.mrf.mxu1 }
 0x449   :  { %9480 = vpow2.f32 %v7945_v24  ;;  %5808 = vmatpush1.bf16.msra.mxu1 %v9630_v26  ;;  %v9651_v24 = vld [vmem:[#allocation8 + $0x174] ss:$20 sps:$4 sm:$0xff]   ;;  %v9652_v8 = vld [vmem:[#allocation8 + $0x378] ss:$20 sps:$4 sm:$0xff]   ;;  %v9653_v26 = vld [vmem:[#allocation8 + $0x170] ss:$20 sps:$4 sm:$0xff]  }
 0x44a   :  { %v8439_v50 = vpop.f32.mrf.mxu1  ;;  %5809 = vmatprep.subr.bf16.mxu1 %v9631_v38  ;;  %9482 = vtanh.f32 %v10698_v51  ;;  %v9655_v38 = vld [vmem:[#allocation8 + $0x14c] ss:$20 sps:$4 sm:$0xff]  }
 0x44b   :  { %v9654_v50 = vld [vmem:[#allocation8 + $0x354] ss:$20 sps:$4 sm:$0xff]  }
 0x44d   :  { %5810 = vmatpush1.bf16.msra.mxu1 %v9632_v28  ;;  %v9656_v28 = vld [vmem:[#allocation8 + $0x350] ss:$20 sps:$4 sm:$0xff]  }
 0x44e   :  { %5811 = vmatprep.subr.bf16.mxu1 %v9633_v55  ;;  %v9657_v55 = vld [vmem:[#allocation8 + $0x148] ss:$20 sps:$4 sm:$0xff]  }
 0x451   :  { %5812 = vmatpush1.bf16.msra.mxu1 %v9634_v60  ;;  %v9658_v60 = vld [vmem:[#allocation8 + $0x32c] ss:$20 sps:$4 sm:$0xff]  }
 0x452   :  { %5813 = vmatprep.subr.bf16.mxu1 %v9635_v32  ;;  %v9659_v32 = vld [vmem:[#allocation8 + $0x328] ss:$20 sps:$4 sm:$0xff]  }
 0x455   :  { %5814 = vmatpush1.bf16.msra.mxu1 %v9636_v42  ;;  %v9660_v42 = vld [vmem:[#allocation8 + $0x304] ss:$20 sps:$4 sm:$0xff]  }
 0x456   :  { %v9481_v37 = vpop.eup %9480  ;;  %5815 = vmatprep.subr.bf16.mxu1 %v9637_v44  ;;  %v9662_v44 = vld [vmem:[#allocation8 + $0x300] ss:$20 sps:$4 sm:$0xff]  }
 0x457   :  { %v5642_v30 = vadd.f32 1.0, %v9481_v37  ;;  %v9483_v13 = vpop.eup %9482  ;;  %v9661_v37 = vld [vmem:[#allocation8 + $0x5ac] ss:$20 sps:$4 sm:$0xff]  }
 0x459   :  { %9484 = vrcp.f32 %v5642_v30  ;;  %5816 = vmatpush2.bf16.msra.mxu1 %v9638_v56  ;;  %v9663_v30 = vld [vmem:[#allocation8 + $0x5a8] ss:$20 sps:$4 sm:$0xff]  }
 0x45a   :  { %5817 = vmatprep.subr.bf16.mxu1 %v9639_v62  ;;  %v9664_v56 = vld [vmem:[#allocation8 + $0x2dc] ss:$20 sps:$4 sm:$0xff]   ;;  %v9665_v62 = vld [vmem:[#allocation8 + $0x584] ss:$20 sps:$4 sm:$0xff]  }
 0x45d   :  { %5818 = vmatpush2.bf16.msra.mxu1 %v9640_v45  ;;  %v9667_v45 = vld [vmem:[#allocation8 + $0x580] ss:$20 sps:$4 sm:$0xff]  }
 0x45e   :  { %5819 = vmatprep.subr.bf16.mxu1 %v9641_v63  ;;  %v9668_v63 = vld [vmem:[#allocation8 + $0x2b4] ss:$20 sps:$4 sm:$0xff]  }
 0x461   :  { %5820 = vmatpush2.bf16.msra.mxu1 %v9642_v14  ;;  %v9670_v14 = vld [vmem:[#allocation8 + $0x2b0] ss:$20 sps:$4 sm:$0xff]  }
 0x462   :  { %5821 = vmatprep.subr.bf16.mxu1 %v9643_v54  ;;  %v9671_v54 = vld [vmem:[#allocation8 + $0x558] ss:$20 sps:$4 sm:$0xff]  }
 0x465   :  { %5822 = vmatpush2.bf16.msra.mxu1 %v9644_v27  ;;  %v9673_v27 = vld [vmem:[#allocation8 + $0x534] ss:$20 sps:$4 sm:$0xff]  }
 0x466   :  { %v9485_v6 = vpop.eup %9484  ;;  %5823 = vmatprep.subr.bf16.mxu1 %v9645_v48  ;;  %v9675_v48 = vld [vmem:[#allocation8 + $0x530] ss:$20 sps:$4 sm:$0xff]  }
 0x467   :  { %v5667_v51 = vmul.f32 %v9485_v6, %v9483_v13  ;;  %v9672_v13 = vld [vmem:[#allocation8 + $0x28c] ss:$20 sps:$4 sm:$0xff]   ;;  %v9674_v6 = vld [vmem:[#allocation8 + $0x288] ss:$20 sps:$4 sm:$0xff]  }
 0x469   :  { %v10749_v12 = vpack.c.bf16 %v5667_v51, %v5667_v51  ;;  %5824 = vmatpush2.bf16.msra.mxu1 %v9646_v34  ;;  %v9676_v51 = vld [vmem:[#allocation8 + $0x4e4] ss:$20 sps:$4 sm:$0xff]   ;;  %v9677_v34 = vld [vmem:[#allocation8 + $0x50c] ss:$20 sps:$4 sm:$0xff]  }
 0x46a   :  { %5825 = vmatprep.subr.bf16.mxu1 %v9647_v33  ;;  %v9678_v33 = vld [vmem:[#allocation8 + $0x4e0] ss:$20 sps:$4 sm:$0xff]  }
 0x46b   :  { %7947 = vmatmul.mubr.msk.bf16.vlgmr.msra.gmra.mxu0 %vm1982_vm4, %v10749_v12 }
 0x46c   :  { %5841 = vmatpush1.bf16.msra.mxu0 %v9648_v36  ;;  %5872 = vmatprep.mubr.bf16.mxu0 %v10736_v4  ;;  %v9679_v36 = vld [vmem:[#allocation8 + $0x508] ss:$20 sps:$4 sm:$0xff]  }
 0x46d   :  { %5826 = vmatpush2.bf16.msra.mxu1 %v9649_v3  ;;  %5842 = vmatprep.subr.bf16.mxu0 %v9650_v29  ;;  %v9680_v3 = vld [vmem:[#allocation8 + $0x4bc] ss:$20 sps:$4 sm:$0xff]  }
 0x46e   :  { %5827 = vmatprep.subr.bf16.mxu1 %v9651_v24  ;;  %v9681_v29 = vld [vmem:[#allocation8 + $0x4e8] ss:$20 sps:$4 sm:$0xff]   ;;  %v9682_v24 = vld [vmem:[#allocation8 + $0x4b8] ss:$20 sps:$4 sm:$0xff]  }
 0x470   :  { %5843 = vmatpush1.bf16.msra.mxu0 %v9652_v8  ;;  %v9683_v8 = vld [vmem:[#allocation8 + $0x3a8] ss:$20 sps:$4 sm:$0xff]  }
 0x471   :  { %5828 = vmatpush2.bf16.msra.mxu1 %v9653_v26  ;;  %5844 = vmatprep.subr.bf16.mxu0 %v9654_v50  ;;  %v9684_v26 = vld [vmem:[#allocation8 + $0x494] ss:$20 sps:$4 sm:$0xff]  }
 0x472   :  { %5829 = vmatprep.subr.bf16.mxu1 %v9655_v38  ;;  %v9685_v50 = vld [vmem:[#allocation8 + $0x4c0] ss:$20 sps:$4 sm:$0xff]   ;;  %v9686_v38 = vld [vmem:[#allocation8 + $0x490] ss:$20 sps:$4 sm:$0xff]  }
 0x474   :  { %5845 = vmatpush1.bf16.msra.mxu0 %v9656_v28  ;;  %v9687_v28 = vld [vmem:[#allocation8 + $0x380] ss:$20 sps:$4 sm:$0xff]  }
 0x475   :  { %5830 = vmatpush2.bf16.msra.mxu1 %v9657_v55  ;;  %5846 = vmatprep.subr.bf16.mxu0 %v9658_v60  ;;  %v9688_v55 = vld [vmem:[#allocation8 + $0x46c] ss:$20 sps:$4 sm:$0xff]  }
 0x476   :  { %7948 = vmatprep.subr.msk.bf16.mxu1 %vm1986_vm3, %v10476_v16  ;;  %v9666_v16 = vld [vmem:[#allocation8 + $0x2d8] ss:$20 sps:$4 sm:$0xff]  }
 0x477   :  { %v9689_v60 = vld [vmem:[#allocation8 + $0x498] ss:$20 sps:$4 sm:$0xff]  }
 0x478   :  { %5832 = vmatmul.mubr.bf16.vlgmr.msra.gmra.mxu1 %v10718_v47  ;;  %5847 = vmatpush1.bf16.msra.mxu0 %v9659_v32  ;;  %v9690_v32 = vld [vmem:[#allocation8 + $0x468] ss:$20 sps:$4 sm:$0xff]  }
 0x479   :  { %5886 = vmatpush1.bf16.msra.mxu1 %v10479_v21  ;;  %5848 = vmatprep.subr.bf16.mxu0 %v9660_v42  ;;  %v9669_v21 = vld [vmem:[#allocation8 + $0x55c] ss:$20 sps:$4 sm:$0xff]   ;;  %v9691_v42 = vld [vmem:[#allocation8 + $0x358] ss:$20 sps:$4 sm:$0xff]  }
 0x47a   :  { %5887 = vmatprep.subr.bf16.mxu1 %v9661_v37  ;;  %5913 = vmatprep.mubr.bf16.mxu1 %v10284_v0  ;;  %v9692_v37 = vld [vmem:[#allocation8 + $0x444] ss:$20 sps:$4 sm:$0xff]  }
 0x47c   :  { %5849 = vmatpush1.bf16.msra.mxu0 %v9662_v44  ;;  %v9693_v44 = vld [vmem:[#allocation8 + $0x470] ss:$20 sps:$4 sm:$0xff]  }
 0x47d   :  { %5888 = vmatpush1.bf16.msra.mxu1 %v9663_v30  ;;  %5850 = vmatprep.subr.bf16.mxu0 %v9664_v56  ;;  %v9694_v30 = vld [vmem:[#allocation8 + $0x440] ss:$20 sps:$4 sm:$0xff]   ;;  %v9695_v56 = vld [vmem:[#allocation8 + $0x330] ss:$20 sps:$4 sm:$0xff]  }
 0x47e   :  { %5889 = vmatprep.subr.bf16.mxu1 %v9665_v62  ;;  %v9696_v62 = vld [vmem:[#allocation8 + $0x41c] ss:$20 sps:$4 sm:$0xff]  }
 0x480   :  { %5851 = vmatpush1.bf16.msra.mxu0 %v9666_v16  ;;  %v9697_v16 = vld [vmem:[#allocation8 + $0x448] ss:$20 sps:$4 sm:$0xff]  }
 0x481   :  { %5890 = vmatpush1.bf16.msra.mxu1 %v9667_v45  ;;  %5852 = vmatprep.subr.bf16.mxu0 %v9668_v63  ;;  %v9698_v45 = vld [vmem:[#allocation8 + $0x418] ss:$20 sps:$4 sm:$0xff]   ;;  %v9699_v63 = vld [vmem:[#allocation8 + $0x308] ss:$20 sps:$4 sm:$0xff]  }
 0x482   :  { %5891 = vmatprep.subr.bf16.mxu1 %v9669_v21  ;;  %v9700_v21 = vld [vmem:[#allocation8 + $0x3f4] ss:$20 sps:$4 sm:$0xff]  }
 0x484   :  { %5853 = vmatpush1.bf16.msra.mxu0 %v9670_v14  ;;  %v9701_v14 = vld [vmem:[#allocation8 + $0x420] ss:$20 sps:$4 sm:$0xff]  }
 0x485   :  { %5892 = vmatpush1.bf16.msra.mxu1 %v9671_v54  ;;  %5854 = vmatprep.subr.bf16.mxu0 %v9672_v13  ;;  %v9702_v54 = vld [vmem:[#allocation8 + $0x3f0] ss:$20 sps:$4 sm:$0xff]   ;;  %v9703_v13 = vld [vmem:[#allocation8 + $0x2e0] ss:$20 sps:$4 sm:$0xff]  }
 0x486   :  { %5893 = vmatprep.subr.bf16.mxu1 %v9673_v27  ;;  %v9704_v27 = vld [vmem:[#allocation8 + $0x3cc] ss:$20 sps:$4 sm:$0xff]  }
 0x488   :  { %5855 = vmatpush1.bf16.msra.mxu0 %v9674_v6  ;;  %v9705_v6 = vld [vmem:[#allocation8 + $0x3f8] ss:$20 sps:$4 sm:$0xff]  }
 0x489   :  { %5894 = vmatpush1.bf16.msra.mxu1 %v9675_v48  ;;  %5856 = vmatprep.subr.bf16.mxu0 %v9676_v51  ;;  %v9706_v48 = vld [vmem:[#allocation8 + $0x3c8] ss:$20 sps:$4 sm:$0xff]   ;;  %v9707_v51 = vld [vmem:[#allocation8 + $0x2b8] ss:$20 sps:$4 sm:$0xff]  }
 0x48a   :  { %5895 = vmatprep.subr.bf16.mxu1 %v9677_v34  ;;  %v9708_v34 = vld [vmem:[#allocation8 + $0x268] ss:$20 sps:$4 sm:$0xff]  }
 0x48c   :  { %5857 = vmatpush2.bf16.msra.mxu0 %v9678_v33  ;;  %v9709_v33 = vld [vmem:[#allocation8 + $0x3d0] ss:$20 sps:$4 sm:$0xff]  }
 0x48d   :  { %5896 = vmatpush1.bf16.msra.mxu1 %v9679_v36  ;;  %5858 = vmatprep.subr.bf16.mxu0 %v9680_v3  ;;  %v9710_v36 = vld [vmem:[#allocation8 + $0x128] ss:$20 sps:$4 sm:$0xff]   ;;  %v9711_v3 = vld [vmem:[#allocation8 + $0x290] ss:$20 sps:$4 sm:$0xff]  }
 0x48e   :  { %8192 = vmatprep.subr.bf16.mxu1 %v9681_v29  ;;  %v9712_v29 = vld [vmem:[#allocation8 + $0x240] ss:$20 sps:$4 sm:$0xff]  }
 0x490   :  { %5859 = vmatpush2.bf16.msra.mxu0 %v9682_v24  ;;  %7949 = vmatmul.mubr.msk.bf16.vlgmr.msra.gmra.mxu1 %vm1982_vm4, %v10749_v12  ;;  %v9713_v24 = vld [vmem:[#allocation8 + $0x6f8] ss:$20 sps:$4 sm:$0xff]  }
 0x491   :  { %8193 = vmatpush3.bf16.msra.mxu1 %v9683_v8  ;;  %5994 = vmatprep.mubr.bf16.mxu1 %v10736_v4  ;;  %v9714_v8 = vld [vmem:[#allocation8 + $0x100] ss:$20 sps:$4 sm:$0xff]  }
 0x492   :  { %5860 = vmatprep.subr.bf16.mxu0 %v9684_v26  ;;  %8194 = vmatprep.subr.bf16.mxu1 %v9685_v50  ;;  %v9715_v26 = vld [vmem:[#allocation8 + $0x6f4] ss:$20 sps:$4 sm:$0xff]   ;;  %v9716_v50 = vld [vmem:[#allocation8 + $0x218] ss:$20 sps:$4 sm:$0xff]  }
 0x494   :  { %5861 = vmatpush2.bf16.msra.mxu0 %v9686_v38  ;;  %v9717_v38 = vld [vmem:[#allocation8 + $0x6d0] ss:$20 sps:$4 sm:$0xff]  }
 0x495   :  { %8195 = vmatpush3.bf16.msra.mxu1 %v9687_v28  ;;  %5862 = vmatprep.subr.bf16.mxu0 %v9688_v55  ;;  %v9718_v28 = vld [vmem:[#allocation8 + $0xd8] ss:$20 sps:$4 sm:$0xff]  }
 0x496   :  { %8196 = vmatprep.subr.bf16.mxu1 %v9689_v60  ;;  %v9719_v55 = vld [vmem:[#allocation8 + $0x6cc] ss:$20 sps:$4 sm:$0xff]   ;;  %v9720_v60 = vld [vmem:[#allocation8 + $0x1f0] ss:$20 sps:$4 sm:$0xff]  }
 0x498   :  { %5863 = vmatpush2.bf16.msra.mxu0 %v9690_v32 }
 0x499   :  { %8197 = vmatpush3.bf16.msra.mxu1 %v9691_v42  ;;  %5864 = vmatprep.subr.bf16.mxu0 %v9692_v37  ;;  %v9721_v42 = vld [vmem:[#allocation8 + $0x6a8] ss:$20 sps:$4 sm:$0xff]   ;;  %v9722_v37 = vld [vmem:[#allocation8 + $0xb0] ss:$20 sps:$4 sm:$0xff]  }
 0x49a   :  { %8198 = vmatprep.subr.bf16.mxu1 %v9693_v44 }
 0x49c   :  { %5865 = vmatpush2.bf16.msra.mxu0 %v9694_v30  ;;  %v9723_v30 = vld [vmem:[#allocation8 + $0x6a4] ss:$20 sps:$4 sm:$0xff]  }
 0x49d   :  { %8199 = vmatpush3.bf16.msra.mxu1 %v9695_v56  ;;  %5866 = vmatprep.subr.bf16.mxu0 %v9696_v62  ;;  %v9724_v56 = vld [vmem:[#allocation8 + $0x1c8] ss:$20 sps:$4 sm:$0xff]  }
 0x49e   :  { %8200 = vmatprep.subr.bf16.mxu1 %v9697_v16  ;;  %v9725_v16 = vld [vmem:[#allocation8 + $0x680] ss:$20 sps:$4 sm:$0xff]  }
 0x4a0   :  { %5867 = vmatpush2.bf16.msra.mxu0 %v9698_v45  ;;  %v9726_v45 = vld [vmem:[#allocation8 + $0x88] ss:$20 sps:$4 sm:$0xff]  }
 0x4a1   :  { %8201 = vmatpush3.bf16.msra.mxu1 %v9699_v63  ;;  %5868 = vmatprep.subr.bf16.mxu0 %v9700_v21  ;;  %v9727_v21 = vld [vmem:[#allocation8 + $0x67c] ss:$20 sps:$4 sm:$0xff]  }
 0x4a2   :  { %8202 = vmatprep.subr.bf16.mxu1 %v9701_v14  ;;  %v9728_v14 = vld [vmem:[#allocation8 + $0x1a0] ss:$20 sps:$4 sm:$0xff]  }
 0x4a4   :  { %5869 = vmatpush2.bf16.msra.mxu0 %v9702_v54  ;;  %v9729_v54 = vld [vmem:[#allocation8 + $0x658] ss:$20 sps:$4 sm:$0xff]  }
 0x4a5   :  { %8203 = vmatpush3.bf16.msra.mxu1 %v9703_v13  ;;  %5870 = vmatprep.subr.bf16.mxu0 %v9704_v27  ;;  %v9730_v13 = vld [vmem:[#allocation8 + $0x60] ss:$20 sps:$4 sm:$0xff]  }
 0x4a6   :  { %8204 = vmatprep.subr.bf16.mxu1 %v9705_v6  ;;  %v9731_v27 = vld [vmem:[#allocation8 + $0x654] ss:$20 sps:$4 sm:$0xff]   ;;  %v9732_v6 = vld [vmem:[#allocation8 + $0x178] ss:$20 sps:$4 sm:$0xff]  }
 0x4a8   :  { %5871 = vmatpush2.bf16.msra.mxu0 %v9706_v48  ;;  %v9733_v48 = vld [vmem:[#allocation8 + $0x630] ss:$20 sps:$4 sm:$0xff]  }
 0x4a9   :  { %8205 = vmatpush3.bf16.msra.mxu1 %v9707_v51  ;;  %8170 = vmatprep.subr.bf16.mxu0 %v9708_v34  ;;  %v9734_v51 = vld [vmem:[#allocation8 + $0x38] ss:$20 sps:$4 sm:$0xff]  }
 0x4aa   :  { %8206 = vmatprep.subr.bf16.mxu1 %v9709_v33  ;;  %v9735_v34 = vld [vmem:[#allocation8 + $0x62c] ss:$20 sps:$4 sm:$0xff]   ;;  %v9736_v33 = vld [vmem:[#allocation8 + $0x150] ss:$20 sps:$4 sm:$0xff]  }
 0x4ab   :  { %5873 = vmatmul.mubr.bf16.vlgmr.msra.gmra.mxu0 %v10738_v57 }
 0x4ac   :  { %8171 = vmatpush3.bf16.msra.mxu0 %v9710_v36  ;;  %5954 = vmatprep.mubr.bf16.mxu0 %v10716_v1  ;;  %v9737_v36 = vld [vmem:[#allocation8 + $0x608] ss:$20 sps:$4 sm:$0xff]  }
 0x4ad   :  { %8207 = vmatpush3.bf16.msra.mxu1 %v9711_v3  ;;  %8172 = vmatprep.subr.bf16.mxu0 %v9712_v29  ;;  %v9738_v3 = vld [vmem:[#allocation8 + $0x10] ss:$20 sps:$4 sm:$0xff]  }
 0x4ae   :  { %6072 = vmatprep.subr.bf16.mxu1 %v9713_v24  ;;  %v9739_v29 = vld [vmem:[#allocation8 + $0x604] ss:$20 sps:$4 sm:$0xff]   ;;  %v9740_v24 = vld [vmem:[#allocation8 + $0x5e0] ss:$20 sps:$4 sm:$0xff]  }
 0x4b0   :  { %8173 = vmatpush3.bf16.msra.mxu0 %v9714_v8  ;;  %5995 = vmatmul.mubr.bf16.vlgmr.msra.gmra.mxu1 %v10738_v57  ;;  %v9741_v8 = vld [vmem:[#allocation8 + $0x5dc] ss:$20 sps:$4 sm:$0xff]  }
 0x4b1   :  { %6073 = vmatpush1.bf16.msra.mxu1 %v9715_v26  ;;  %6104 = vmatprep.mubr.bf16.mxu1 %v10716_v1  ;;  %v9742_v26 = vld [vmem:[#allocation8 + $0x838] ss:$20 sps:$4 sm:$0xff]  }
 0x4b2   :  { %8174 = vmatprep.subr.bf16.mxu0 %v9716_v50  ;;  %6074 = vmatprep.subr.bf16.mxu1 %v9717_v38  ;;  %v9743_v50 = vld [vmem:[#allocation8 + $0x5b0] ss:$20 sps:$4 sm:$0xff]   ;;  %v9744_v38 = vld [vmem:[#allocation8 + $0x834] ss:$20 sps:$4 sm:$0xff]  }
 0x4b4   :  { %8175 = vmatpush3.bf16.msra.mxu0 %v9718_v28  ;;  %v9745_v28 = vld [vmem:[#allocation8 + $0x810] ss:$20 sps:$4 sm:$0xff]  }
 0x4b5   :  { %6075 = vmatpush1.bf16.msra.mxu1 %v9719_v55  ;;  %8176 = vmatprep.subr.bf16.mxu0 %v9720_v60  ;;  %v9746_v55 = vld [vmem:[#allocation8 + $0x588] ss:$20 sps:$4 sm:$0xff]  }
 0x4b6   :  { %v10766_v32 = vpop.f32.mrf.mxu0  ;;  %6076 = vmatprep.subr.bf16.mxu1 %v9721_v42  ;;  %v9748_v60 = vld [vmem:[#allocation8 + $0x7e8] ss:$20 sps:$4 sm:$0xff]   ;;  %v9749_v42 = vld [vmem:[#allocation8 + $0x560] ss:$20 sps:$4 sm:$0xff]  }
 0x4b8   :  { %8177 = vmatpush3.bf16.msra.mxu0 %v9722_v37  ;;  %v10768_v44 = vpop.f32.mrf.mxu0  ;;  %v9750_v37 = vld [vmem:[#allocation8 + $0x7e4] ss:$20 sps:$4 sm:$0xff]  }
 0x4b9   :  { %6077 = vmatpush1.bf16.msra.mxu1 %v9723_v30  ;;  %8178 = vmatprep.subr.bf16.mxu0 %v9724_v56  ;;  %v9751_v30 = vld [vmem:[#allocation8 + $0x7c0] ss:$20 sps:$4 sm:$0xff]   ;;  %v9752_v56 = vld [vmem:[#allocation8 + $0x538] ss:$20 sps:$4 sm:$0xff]  }
 0x4ba   :  { %v5714_v62 = vpop.f32.mrf.mxu0  ;;  %6078 = vmatprep.subr.bf16.mxu1 %v9725_v16  ;;  %v9754_v16 = vld [vmem:[#allocation8 + $0x798] ss:$20 sps:$4 sm:$0xff]  }
 0x4bb   :  { %v9753_v62 = vld [vmem:[#allocation8 + $0x7bc] ss:$20 sps:$4 sm:$0xff]  }
 0x4bc   :  { %8179 = vmatpush3.bf16.msra.mxu0 %v9726_v45  ;;  %v5715_v63 = vpop.f32.mrf.mxu0  ;;  %v9755_v45 = vld [vmem:[#allocation8 + $0x510] ss:$20 sps:$4 sm:$0xff]  }
 0x4bd   :  { %6079 = vmatpush1.bf16.msra.mxu1 %v9727_v21  ;;  %8180 = vmatprep.subr.bf16.mxu0 %v9728_v14  ;;  %v9756_v63 = vld [vmem:[#allocation8 + $0x794] ss:$20 sps:$4 sm:$0xff]   ;;  %v9757_v21 = vld [vmem:[#allocation8 + $0x978] ss:$20 sps:$4 sm:$0xff]   ;;  %v9758_v14 = vld [vmem:[#allocation8 + $0x770] ss:$20 sps:$4 sm:$0xff]  }
 0x4be   :  { %6080 = vmatprep.subr.bf16.mxu1 %v9729_v54  ;;  %v9759_v54 = vld [vmem:[#allocation8 + $0x974] ss:$20 sps:$4 sm:$0xff]  }
 0x4c0   :  { %8181 = vmatpush3.bf16.msra.mxu0 %v9730_v13  ;;  %v9760_v13 = vld [vmem:[#allocation8 + $0x76c] ss:$20 sps:$4 sm:$0xff]  }
 0x4c1   :  { %6081 = vmatpush1.bf16.msra.mxu1 %v9731_v27  ;;  %8182 = vmatprep.subr.bf16.mxu0 %v9732_v6  ;;  %v9761_v27 = vld [vmem:[#allocation8 + $0x950] ss:$20 sps:$4 sm:$0xff]   ;;  %v9762_v6 = vld [vmem:[#allocation8 + $0x748] ss:$20 sps:$4 sm:$0xff]  }
 0x4c2   :  { %6082 = vmatprep.subr.bf16.mxu1 %v9733_v48  ;;  %v9763_v48 = vld [vmem:[#allocation8 + $0x94c] ss:$20 sps:$4 sm:$0xff]  }
 0x4c4   :  { %8183 = vmatpush3.bf16.msra.mxu0 %v9734_v51  ;;  %v9764_v51 = vld [vmem:[#allocation8 + $0x744] ss:$20 sps:$4 sm:$0xff]  }
 0x4c5   :  { %6083 = vmatpush1.bf16.msra.mxu1 %v9735_v34  ;;  %8184 = vmatprep.subr.bf16.mxu0 %v9736_v33  ;;  %v9765_v34 = vld [vmem:[#allocation8 + $0x928] ss:$20 sps:$4 sm:$0xff]   ;;  %v9766_v33 = vld [vmem:[#allocation8 + $0x720] ss:$20 sps:$4 sm:$0xff]  }
 0x4c6   :  { %6084 = vmatprep.subr.bf16.mxu1 %v9737_v36  ;;  %v9767_v36 = vld [vmem:[#allocation8 + $0x924] ss:$20 sps:$4 sm:$0xff]  }
 0x4c8   :  { %8185 = vmatpush3.bf16.msra.mxu0 %v9738_v3  ;;  %v9768_v3 = vld [vmem:[#allocation8 + $0x71c] ss:$20 sps:$4 sm:$0xff]  }
 0x4c9   :  { %6085 = vmatpush1.bf16.msra.mxu1 %v9739_v29  ;;  %8440 = vmatprep.subr.bf16.mxu0 %v10285_v17  ;;  %v9769_v29 = vld [vmem:[#allocation8 + $0x900] ss:$20 sps:$4 sm:$0xff]  }
 0x4ca   :  { %6086 = vmatprep.subr.bf16.mxu1 %v9740_v24  ;;  %v9770_v24 = vld [vmem:[#allocation8 + $0x8fc] ss:$20 sps:$4 sm:$0xff]  }
 0x4cb   :  { %5955 = vmatmul.mubr.bf16.vlgmr.msra.gmra.mxu0 %v10718_v47 }
 0x4cc   :  { %8441 = vmatpush3.bf16.msra.mxu0 %v10495_v40  ;;  %8452 = vmatprep.mubr.msk.bf16.mxu0 %vm10286_vm2, %v10285_v17  ;;  %v9747_v40 = vld [vmem:[#allocation8 + $0x80c] ss:$20 sps:$4 sm:$0xff]  }
 0x4cd   :  { %6087 = vmatpush1.bf16.msra.mxu1 %v9741_v8  ;;  %8442 = vmatprep.subr.bf16.mxu0 %v10285_v17  ;;  %v9771_v8 = vld [vmem:[#allocation8 + $0x8d8] ss:$20 sps:$4 sm:$0xff]  }
 0x4ce   :  { %6088 = vmatprep.subr.bf16.mxu1 %v9742_v26  ;;  %v9772_v26 = vld [vmem:[#allocation8 + $0xb80] ss:$20 sps:$4 sm:$0xff]  }
 0x4d0   :  { %8443 = vmatpush3.bf16.msra.mxu0 %v9743_v50  ;;  %v9773_v50 = vld [vmem:[#allocation8 + $0x8d4] ss:$20 sps:$4 sm:$0xff]  }
 0x4d1   :  { %6089 = vmatpush2.bf16.msra.mxu1 %v9744_v38  ;;  %8444 = vmatprep.subr.bf16.mxu0 %v10285_v17  ;;  %v9774_v38 = vld [vmem:[#allocation8 + $0xb7c] ss:$20 sps:$4 sm:$0xff]  }
 0x4d2   :  { %6090 = vmatprep.subr.bf16.mxu1 %v9745_v28  ;;  %v9775_v28 = vld [vmem:[#allocation8 + $0x8b0] ss:$20 sps:$4 sm:$0xff]  }
 0x4d4   :  { %8445 = vmatpush3.bf16.msra.mxu0 %v9746_v55  ;;  %v9776_v55 = vld [vmem:[#allocation8 + $0xb58] ss:$20 sps:$4 sm:$0xff]  }
 0x4d5   :  { %6091 = vmatpush2.bf16.msra.mxu1 %v9747_v40  ;;  %8446 = vmatprep.subr.bf16.mxu0 %v10285_v17  ;;  %v9777_v40 = vld [vmem:[#allocation8 + $0x8ac] ss:$20 sps:$4 sm:$0xff]  }
 0x4d6   :  { %6092 = vmatprep.subr.bf16.mxu1 %v9748_v60  ;;  %v5713_v60 = vadd.f32 %v10768_v44, %v10527_v22  ;;  %v9784_v22 = vld [vmem:[#allocation8 + $0xb08] ss:$20 sps:$4 sm:$0xff]  }
 0x4d7   :  { %v9785_v44 = vld [vmem:[#allocation8 + $0x85c] ss:$20 sps:$4 sm:$0xff]  }
 0x4d8   :  { %8447 = vmatpush3.bf16.msra.mxu0 %v9749_v42 }
 0x4d9   :  { %6093 = vmatpush2.bf16.msra.mxu1 %v9750_v37  ;;  %8448 = vmatprep.subr.bf16.mxu0 %v10285_v17  ;;  %v9778_v37 = vld [vmem:[#allocation8 + $0xb54] ss:$20 sps:$4 sm:$0xff]  }
 0x4da   :  { %6094 = vmatprep.subr.bf16.mxu1 %v9751_v30  ;;  %v9779_v30 = vld [vmem:[#allocation8 + $0x888] ss:$20 sps:$4 sm:$0xff]  }
 0x4dc   :  { %8449 = vmatpush3.bf16.msra.mxu0 %v9752_v56 }
 0x4dd   :  { %6095 = vmatpush2.bf16.msra.mxu1 %v9753_v62  ;;  %8450 = vmatprep.subr.bf16.mxu0 %v10285_v17  ;;  %v9780_v62 = vld [vmem:[#allocation8 + $0xb30] ss:$20 sps:$4 sm:$0xff]  }
 0x4de   :  { %6096 = vmatprep.subr.bf16.mxu1 %v9754_v16 }
 0x4e0   :  { %8451 = vmatpush3.bf16.msra.mxu0 %v9755_v45  ;;  %v9781_v45 = vld [vmem:[#allocation8 + $0x884] ss:$20 sps:$4 sm:$0xff]  }
 0x4e1   :  { %6097 = vmatpush2.bf16.msra.mxu1 %v9756_v63  ;;  %6113 = vmatprep.subr.bf16.mxu0 %v9757_v21  ;;  %v9783_v63 = vld [vmem:[#allocation8 + $0x860] ss:$20 sps:$4 sm:$0xff]  }
 0x4e2   :  { %6098 = vmatprep.subr.bf16.mxu1 %v9758_v14  ;;  %v9786_v14 = vld [vmem:[#allocation8 + $0xb04] ss:$20 sps:$4 sm:$0xff]  }
 0x4e3   :  { %8453 = vmatmul.mubr.msk.bf16.vlgmr.msra.gmra.mxu0 %vm1982_vm4, %v10749_v12 }
 0x4e4   :  { %6114 = vmatpush1.bf16.msra.mxu0 %v9759_v54  ;;  %6145 = vmatprep.mubr.bf16.mxu0 %v10736_v4  ;;  %v9787_v54 = vld [vmem:[#allocation8 + $0xab8] ss:$20 sps:$4 sm:$0xff]  }
 0x4e5   :  { %6099 = vmatpush2.bf16.msra.mxu1 %v9760_v13  ;;  %6115 = vmatprep.subr.bf16.mxu0 %v9761_v27  ;;  %v9788_v13 = vld [vmem:[#allocation8 + $0xae0] ss:$20 sps:$4 sm:$0xff]  }
 0x4e6   :  { %6100 = vmatprep.subr.bf16.mxu1 %v9762_v6  ;;  %v9789_v27 = vld [vmem:[#allocation8 + $0xab4] ss:$20 sps:$4 sm:$0xff]   ;;  %v9790_v6 = vld [vmem:[#allocation8 + $0xadc] ss:$20 sps:$4 sm:$0xff]  }
 0x4e8   :  { %6116 = vmatpush1.bf16.msra.mxu0 %v9763_v48  ;;  %v9791_v48 = vld [vmem:[#allocation8 + $0xa90] ss:$20 sps:$4 sm:$0xff]  }
 0x4e9   :  { %6101 = vmatpush2.bf16.msra.mxu1 %v9764_v51  ;;  %6117 = vmatprep.subr.bf16.mxu0 %v9765_v34  ;;  %v9792_v51 = vld [vmem:[#allocation8 + $0x980] ss:$20 sps:$4 sm:$0xff]  }
 0x4ea   :  { %6102 = vmatprep.subr.bf16.mxu1 %v9766_v33  ;;  %v9793_v34 = vld [vmem:[#allocation8 + $0xa8c] ss:$20 sps:$4 sm:$0xff]   ;;  %v9794_v33 = vld [vmem:[#allocation8 + $0x97c] ss:$20 sps:$4 sm:$0xff]  }
 0x4ec   :  { %6118 = vmatpush1.bf16.msra.mxu0 %v9767_v36  ;;  %v9795_v36 = vld [vmem:[#allocation8 + $0xa68] ss:$20 sps:$4 sm:$0xff]  }
 0x4ed   :  { %6103 = vmatpush2.bf16.msra.mxu1 %v9768_v3  ;;  %6119 = vmatprep.subr.bf16.mxu0 %v9769_v29  ;;  %v9796_v3 = vld [vmem:[#allocation8 + $0x958] ss:$20 sps:$4 sm:$0xff]  }
 0x4ee   :  { %7956 = vmatprep.subr.msk.bf16.mxu1 %vm1986_vm3, %v10509_v46  ;;  %v5711_v46 = vadd.f32 %v10766_v32, %v10523_v15  ;;  %v9782_v32 = vld [vmem:[#allocation8 + $0xb2c] ss:$20 sps:$4 sm:$0xff]   ;;  %v9797_v29 = vld [vmem:[#allocation8 + $0xa64] ss:$20 sps:$4 sm:$0xff]  }
 0x4f0   :  { %6105 = vmatmul.mubr.bf16.vlgmr.msra.gmra.mxu1 %v10718_v47  ;;  %6120 = vmatpush1.bf16.msra.mxu0 %v9770_v24  ;;  %v9798_v24 = vld [vmem:[#allocation8 + $0x954] ss:$20 sps:$4 sm:$0xff]  }
 0x4f1   :  { %6159 = vmatpush1.bf16.msra.mxu1 %v10514_v53  ;;  %6121 = vmatprep.subr.bf16.mxu0 %v9771_v8  ;;  %v9799_v8 = vld [vmem:[#allocation8 + $0xa40] ss:$20 sps:$4 sm:$0xff]  }
 0x4f2   :  { %6160 = vmatprep.subr.bf16.mxu1 %v9772_v26  ;;  %6186 = vmatprep.mubr.bf16.mxu1 %v10284_v0  ;;  %v9800_v26 = vld [vmem:[#allocation8 + $0x930] ss:$20 sps:$4 sm:$0xff]  }
 0x4f4   :  { %6122 = vmatpush1.bf16.msra.mxu0 %v9773_v50  ;;  %v9801_v50 = vld [vmem:[#allocation8 + $0xa3c] ss:$20 sps:$4 sm:$0xff]  }
 0x4f5   :  { %6161 = vmatpush1.bf16.msra.mxu1 %v9774_v38  ;;  %6123 = vmatprep.subr.bf16.mxu0 %v9775_v28  ;;  %v9802_v38 = vld [vmem:[#allocation8 + $0x92c] ss:$20 sps:$4 sm:$0xff]  }
 0x4f6   :  { %6162 = vmatprep.subr.bf16.mxu1 %v9776_v55  ;;  %v9803_v28 = vld [vmem:[#allocation8 + $0xa18] ss:$20 sps:$4 sm:$0xff]   ;;  %v9804_v55 = vld [vmem:[#allocation8 + $0x908] ss:$20 sps:$4 sm:$0xff]  }
 0x4f8   :  { %6124 = vmatpush1.bf16.msra.mxu0 %v9777_v40  ;;  %v5751_v53 = vpop.f32.mrf.mxu1  ;;  %v9806_v40 = vld [vmem:[#allocation8 + $0x904] ss:$20 sps:$4 sm:$0xff]  }
 0x4f9   :  { %v10792_v42 = vadd.f32 %v5751_v53, %v5711_v46  ;;  %6163 = vmatpush1.bf16.msra.mxu1 %v9778_v37  ;;  %6125 = vmatprep.subr.bf16.mxu0 %v9779_v30  ;;  %v9805_v46 = vld [vmem:[#allocation8 + $0xa14] ss:$20 sps:$4 sm:$0xff]   ;;  %v9807_v53 = vld [vmem:[#allocation8 + $0x9f0] ss:$20 sps:$4 sm:$0xff]   ;;  %v9809_v37 = vld [vmem:[#allocation8 + $0x9ec] ss:$20 sps:$4 sm:$0xff]  }
 0x4fa   :  { %v5753_v56 = vpop.f32.mrf.mxu1  ;;  %6164 = vmatprep.subr.bf16.mxu1 %v9780_v62  ;;  %v9810_v30 = vld [vmem:[#allocation8 + $0x8dc] ss:$20 sps:$4 sm:$0xff]   ;;  %v9812_v62 = vld [vmem:[#allocation8 + $0x8b8] ss:$20 sps:$4 sm:$0xff]  }
 0x4fb   :  { %v10794_v16 = vadd.f32 %v5753_v56, %v5713_v60  ;;  %v9808_v60 = vld [vmem:[#allocation8 + $0x8e0] ss:$20 sps:$4 sm:$0xff]   ;;  %v9811_v56 = vld [vmem:[#allocation8 + $0x9c8] ss:$20 sps:$4 sm:$0xff]  }
 0x4fc   :  { %6126 = vmatpush1.bf16.msra.mxu0 %v9781_v45  ;;  %v5755_v15 = vpop.f32.mrf.mxu1  ;;  %v9813_v45 = vld [vmem:[#allocation8 + $0x9c4] ss:$20 sps:$4 sm:$0xff]  }
 0x4fd   :  { %6165 = vmatpush1.bf16.msra.mxu1 %v9782_v32  ;;  %6127 = vmatprep.subr.bf16.mxu0 %v9783_v63  ;;  %v9814_v15 = vld [vmem:[#allocation8 + $0x8b4] ss:$20 sps:$4 sm:$0xff]   ;;  %v9816_v63 = vld [vmem:[#allocation8 + $0x890] ss:$20 sps:$4 sm:$0xff]  }
 0x4fe   :  { %v5756_v21 = vpop.f32.mrf.mxu1  ;;  %6166 = vmatprep.subr.bf16.mxu1 %v9784_v22  ;;  %v9815_v32 = vld [vmem:[#allocation8 + $0x9a0] ss:$20 sps:$4 sm:$0xff]  }
 0x4ff   :  { %v9817_v21 = vld [vmem:[#allocation8 + $0x99c] ss:$20 sps:$4 sm:$0xff]   ;;  %v9818_v22 = vld [vmem:[#allocation8 + $0x88c] ss:$20 sps:$4 sm:$0xff]  }
 0x500   :  { %6128 = vmatpush1.bf16.msra.mxu0 %v9785_v44  ;;  %v9819_v44 = vld [vmem:[#allocation8 + $0x700] ss:$20 sps:$4 sm:$0xff]  }
 0x501   :  { %6167 = vmatpush1.bf16.msra.mxu1 %v9786_v14  ;;  %6129 = vmatprep.subr.bf16.mxu0 %v9787_v54  ;;  %v9820_v14 = vld [vmem:[#allocation8 + $0x868] ss:$20 sps:$4 sm:$0xff]  }
 0x502   :  { %6168 = vmatprep.subr.bf16.mxu1 %v9788_v13  ;;  %v9821_v54 = vld [vmem:[#allocation8 + $0x6fc] ss:$20 sps:$4 sm:$0xff]   ;;  %v9822_v13 = vld [vmem:[#allocation8 + $0x864] ss:$20 sps:$4 sm:$0xff]  }
 0x504   :  { %6130 = vmatpush2.bf16.msra.mxu0 %v9789_v27  ;;  %v9823_v27 = vld [vmem:[#allocation8 + $0x6d8] ss:$20 sps:$4 sm:$0xff]  }
 0x505   :  { %6169 = vmatpush1.bf16.msra.mxu1 %v9790_v6  ;;  %6131 = vmatprep.subr.bf16.mxu0 %v9791_v48  ;;  %v9824_v6 = vld [vmem:[#allocation8 + $0xac0] ss:$20 sps:$4 sm:$0xff]  }
 0x506   :  { %6236 = vmatprep.subr.bf16.mxu1 %v9792_v51  ;;  %v9825_v48 = vld [vmem:[#allocation8 + $0x6d4] ss:$20 sps:$4 sm:$0xff]   ;;  %v9826_v51 = vld [vmem:[#allocation8 + $0xabc] ss:$20 sps:$4 sm:$0xff]  }
 0x508   :  { %6132 = vmatpush2.bf16.msra.mxu0 %v9793_v34  ;;  %7957 = vmatmul.mubr.msk.bf16.vlgmr.msra.gmra.mxu1 %vm1982_vm4, %v10749_v12  ;;  %v9827_v34 = vld [vmem:[#allocation8 + $0x6b0] ss:$20 sps:$4 sm:$0xff]  }
 0x509   :  { %6237 = vmatpush1.bf16.msra.mxu1 %v9794_v33  ;;  %6268 = vmatprep.mubr.bf16.mxu1 %v10736_v4  ;;  %v9828_v33 = vld [vmem:[#allocation8 + $0xa98] ss:$20 sps:$4 sm:$0xff]  }
 0x50a   :  { %6133 = vmatprep.subr.bf16.mxu0 %v9795_v36  ;;  %6238 = vmatprep.subr.bf16.mxu1 %v9796_v3 }
 0x50c   :  { %6134 = vmatpush2.bf16.msra.mxu0 %v9797_v29  ;;  %v9829_v29 = vld [vmem:[#allocation8 + $0x6ac] ss:$20 sps:$4 sm:$0xff]  }
 0x50d   :  { %6239 = vmatpush1.bf16.msra.mxu1 %v9798_v24  ;;  %6135 = vmatprep.subr.bf16.mxu0 %v9799_v8  ;;  %v9830_v24 = vld [vmem:[#allocation8 + $0xa94] ss:$20 sps:$4 sm:$0xff]  }
 0x50e   :  { %6240 = vmatprep.subr.bf16.mxu1 %v9800_v26  ;;  %v9831_v26 = vld [vmem:[#allocation8 + $0x688] ss:$20 sps:$4 sm:$0xff]  }
 0x510   :  { %6136 = vmatpush2.bf16.msra.mxu0 %v9801_v50 }
 0x511   :  { %6241 = vmatpush1.bf16.msra.mxu1 %v9802_v38  ;;  %6137 = vmatprep.subr.bf16.mxu0 %v9803_v28  ;;  %v9832_v38 = vld [vmem:[#allocation8 + $0xa70] ss:$20 sps:$4 sm:$0xff]  }
 0x512   :  { %6242 = vmatprep.subr.bf16.mxu1 %v9804_v55  ;;  %v9833_v55 = vld [vmem:[#allocation8 + $0x684] ss:$20 sps:$4 sm:$0xff]  }
 0x514   :  { %6138 = vmatpush2.bf16.msra.mxu0 %v9805_v46  ;;  %v9834_v46 = vld [vmem:[#allocation8 + $0xa6c] ss:$20 sps:$4 sm:$0xff]  }
 0x515   :  { %6243 = vmatpush1.bf16.msra.mxu1 %v9806_v40  ;;  %6139 = vmatprep.subr.bf16.mxu0 %v9807_v53  ;;  %v9836_v53 = vld [vmem:[#allocation8 + $0xa48] ss:$20 sps:$4 sm:$0xff]  }
 0x516   :  { %6244 = vmatprep.subr.bf16.mxu1 %v9808_v60  ;;  %v9837_v60 = vld [vmem:[#allocation8 + $0x65c] ss:$20 sps:$4 sm:$0xff]  }
 0x518   :  { %6140 = vmatpush2.bf16.msra.mxu0 %v9809_v37  ;;  %v9838_v37 = vld [vmem:[#allocation8 + $0xa44] ss:$20 sps:$4 sm:$0xff]  }
 0x519   :  { %6245 = vmatpush1.bf16.msra.mxu1 %v9810_v30  ;;  %6141 = vmatprep.subr.bf16.mxu0 %v9811_v56  ;;  %v9839_v30 = vld [vmem:[#allocation8 + $0x638] ss:$20 sps:$4 sm:$0xff]  }
 0x51a   :  { %6246 = vmatprep.subr.bf16.mxu1 %v9812_v62  ;;  %v9841_v62 = vld [vmem:[#allocation8 + $0x634] ss:$20 sps:$4 sm:$0xff]  }
 0x51c   :  { %6142 = vmatpush2.bf16.msra.mxu0 %v9813_v45  ;;  %v9842_v45 = vld [vmem:[#allocation8 + $0xa1c] ss:$20 sps:$4 sm:$0xff]  }
 0x51d   :  { %6247 = vmatpush1.bf16.msra.mxu1 %v9814_v15  ;;  %6143 = vmatprep.subr.bf16.mxu0 %v9815_v32  ;;  %v9843_v15 = vld [vmem:[#allocation8 + $0x610] ss:$20 sps:$4 sm:$0xff]  }
 0x51e   :  { %6248 = vmatprep.subr.bf16.mxu1 %v9816_v63  ;;  %v9844_v63 = vld [vmem:[#allocation8 + $0x9f8] ss:$20 sps:$4 sm:$0xff]  }
 0x520   :  { %6144 = vmatpush2.bf16.msra.mxu0 %v9817_v21 }
 0x521   :  { %6249 = vmatpush1.bf16.msra.mxu1 %v9818_v22  ;;  %6195 = vmatprep.subr.bf16.mxu0 %v9819_v44  ;;  %v9845_v22 = vld [vmem:[#allocation8 + $0x60c] ss:$20 sps:$4 sm:$0xff]   ;;  %v9846_v44 = vld [vmem:[#allocation8 + $0x9f4] ss:$20 sps:$4 sm:$0xff]  }
 0x522   :  { %6250 = vmatprep.subr.bf16.mxu1 %v9820_v14  ;;  %v9847_v14 = vld [vmem:[#allocation8 + $0x5e8] ss:$20 sps:$4 sm:$0xff]  }
 0x523   :  { %6146 = vmatmul.mubr.bf16.vlgmr.msra.gmra.mxu0 %v10738_v57 }
 0x524   :  { %6196 = vmatpush1.bf16.msra.mxu0 %v9821_v54  ;;  %6227 = vmatprep.mubr.bf16.mxu0 %v10716_v1 }
 0x525   :  { %6251 = vmatpush1.bf16.msra.mxu1 %v9822_v13  ;;  %6197 = vmatprep.subr.bf16.mxu0 %v9823_v27  ;;  %v9848_v13 = vld [vmem:[#allocation8 + $0x9d0] ss:$20 sps:$4 sm:$0xff]  }
 0x526   :  { %6252 = vmatprep.subr.bf16.mxu1 %v9824_v6  ;;  %v9849_v27 = vld [vmem:[#allocation8 + $0x5e4] ss:$20 sps:$4 sm:$0xff]   ;;  %v9850_v6 = vld [vmem:[#allocation8 + $0x9cc] ss:$20 sps:$4 sm:$0xff]  }
 0x528   :  { %6198 = vmatpush1.bf16.msra.mxu0 %v9825_v48  ;;  %v9851_v48 = vld [vmem:[#allocation8 + $0x840] ss:$20 sps:$4 sm:$0xff]  }
 0x529   :  { %6253 = vmatpush2.bf16.msra.mxu1 %v9826_v51  ;;  %6199 = vmatprep.subr.bf16.mxu0 %v9827_v34  ;;  %v9852_v51 = vld [vmem:[#allocation8 + $0x9a8] ss:$20 sps:$4 sm:$0xff]  }
 0x52a   :  { %6254 = vmatprep.subr.bf16.mxu1 %v9828_v33  ;;  %v9853_v34 = vld [vmem:[#allocation8 + $0x83c] ss:$20 sps:$4 sm:$0xff]   ;;  %v9854_v33 = vld [vmem:[#allocation8 + $0x9a4] ss:$20 sps:$4 sm:$0xff]  }
 0x52b   :  { %v5792_v36 = vpop.f32.mrf.mxu0 }
 0x52c   :  { %v10802_v3 = vadd.f32 %v5792_v36, %v10792_v42  ;;  %6200 = vmatpush1.bf16.msra.mxu0 %v9829_v29  ;;  %v9835_v42 = vld [vmem:[#allocation8 + $0x660] ss:$20 sps:$4 sm:$0xff]   ;;  %v9855_v36 = vld [vmem:[#allocation8 + $0x818] ss:$20 sps:$4 sm:$0xff]  }
 0x52d   :  { %6255 = vmatpush2.bf16.msra.mxu1 %v9830_v24  ;;  %v5794_v8 = vpop.f32.mrf.mxu0  ;;  %6201 = vmatprep.subr.bf16.mxu0 %v9831_v26  ;;  %v9856_v29 = vld [vmem:[#allocation8 + $0x844] ss:$20 sps:$4 sm:$0xff]   ;;  %v9857_v24 = vld [vmem:[#allocation8 + $0x814] ss:$20 sps:$4 sm:$0xff]  }
 0x52e   :  { %v10805_v50 = vadd.f32 %v5794_v8, %v10794_v16  ;;  %6256 = vmatprep.subr.bf16.mxu1 %v9832_v38  ;;  %v9840_v16 = vld [vmem:[#allocation8 + $0xa20] ss:$20 sps:$4 sm:$0xff]   ;;  %v9858_v8 = vld [vmem:[#allocation8 + $0x704] ss:$20 sps:$4 sm:$0xff]   ;;  %v9860_v38 = vld [vmem:[#allocation8 + $0x81c] ss:$20 sps:$4 sm:$0xff]  }
 0x52f   :  { %v5796_v28 = vpop.f32.mrf.mxu0  ;;  %v9859_v26 = vld [vmem:[#allocation8 + $0x7f0] ss:$20 sps:$4 sm:$0xff]  }
 0x530   :  { %6202 = vmatpush1.bf16.msra.mxu0 %v9833_v55  ;;  %v9861_v28 = vld [vmem:[#allocation8 + $0x7ec] ss:$20 sps:$4 sm:$0xff]   ;;  %v9862_v55 = vld [vmem:[#allocation8 + $0x6dc] ss:$20 sps:$4 sm:$0xff]  }
 0x531   :  { %6257 = vmatpush2.bf16.msra.mxu1 %v9834_v46  ;;  %v5797_v40 = vpop.f32.mrf.mxu0  ;;  %6203 = vmatprep.subr.bf16.mxu0 %v9835_v42  ;;  %v9863_v46 = vld [vmem:[#allocation8 + $0x7c8] ss:$20 sps:$4 sm:$0xff]  }
 0x532   :  { %6258 = vmatprep.subr.bf16.mxu1 %v9836_v53  ;;  %v9864_v40 = vld [vmem:[#allocation8 + $0x7f4] ss:$20 sps:$4 sm:$0xff]   ;;  %v9865_v53 = vld [vmem:[#allocation8 + $0x7c4] ss:$20 sps:$4 sm:$0xff]  }
 0x534   :  { %6204 = vmatpush1.bf16.msra.mxu0 %v9837_v60  ;;  %v9866_v60 = vld [vmem:[#allocation8 + $0x6b4] ss:$20 sps:$4 sm:$0xff]  }
 0x535   :  { %6259 = vmatpush2.bf16.msra.mxu1 %v9838_v37  ;;  %6205 = vmatprep.subr.bf16.mxu0 %v9839_v30  ;;  %v9867_v37 = vld [vmem:[#allocation8 + $0x7a0] ss:$20 sps:$4 sm:$0xff]  }
 0x536   :  { %6260 = vmatprep.subr.bf16.mxu1 %v9840_v16  ;;  %v9868_v16 = vld [vmem:[#allocation8 + $0x7cc] ss:$20 sps:$4 sm:$0xff]  }
 0x538   :  { %v10807_v56 = vpop.f32.mrf.mxu1  ;;  %6206 = vmatpush1.bf16.msra.mxu0 %v9841_v62 }
 0x539   :  { %6261 = vmatpush2.bf16.msra.mxu1 %v9842_v45  ;;  %6207 = vmatprep.subr.bf16.mxu0 %v9843_v15  ;;  %v9869_v45 = vld [vmem:[#allocation8 + $0x79c] ss:$20 sps:$4 sm:$0xff]   ;;  %v9870_v15 = vld [vmem:[#allocation8 + $0x68c] ss:$20 sps:$4 sm:$0xff]  }
 0x53a   :  { %v10809_v32 = vpop.f32.mrf.mxu1  ;;  %6262 = vmatprep.subr.bf16.mxu1 %v9844_v63  ;;  %v9871_v63 = vld [vmem:[#allocation8 + $0x778] ss:$20 sps:$4 sm:$0xff]  }
 0x53c   :  { %v5837_v21 = vpop.f32.mrf.mxu1  ;;  %6208 = vmatpush1.bf16.msra.mxu0 %v9845_v22  ;;  %v9872_v22 = vld [vmem:[#allocation8 + $0x7a4] ss:$20 sps:$4 sm:$0xff]  }
 0x53d   :  { %6263 = vmatpush2.bf16.msra.mxu1 %v9846_v44  ;;  %6209 = vmatprep.subr.bf16.mxu0 %v9847_v14  ;;  %v9873_v44 = vld [vmem:[#allocation8 + $0x774] ss:$20 sps:$4 sm:$0xff]   ;;  %v9874_v14 = vld [vmem:[#allocation8 + $0x664] ss:$20 sps:$4 sm:$0xff]  }
 0x53e   :  { %v5838_v54 = vpop.f32.mrf.mxu1  ;;  %6264 = vmatprep.subr.bf16.mxu1 %v9848_v13  ;;  %v9876_v13 = vld [vmem:[#allocation8 + $0x77c] ss:$20 sps:$4 sm:$0xff]  }
 0x53f   :  { %v9875_v54 = vld [vmem:[#allocation8 + $0x750] ss:$20 sps:$4 sm:$0xff]  }
 0x540   :  { %6210 = vmatpush1.bf16.msra.mxu0 %v9849_v27  ;;  %v9877_v27 = vld [vmem:[#allocation8 + $0x74c] ss:$20 sps:$4 sm:$0xff]  }
 0x541   :  { %6265 = vmatpush2.bf16.msra.mxu1 %v9850_v6  ;;  %6211 = vmatprep.subr.bf16.mxu0 %v9851_v48  ;;  %v9878_v6 = vld [vmem:[#allocation8 + $0x63c] ss:$20 sps:$4 sm:$0xff]  }
 0x542   :  { %6266 = vmatprep.subr.bf16.mxu1 %v9852_v51  ;;  %v9879_v48 = vld [vmem:[#allocation8 + $0x728] ss:$20 sps:$4 sm:$0xff]  }
 0x543   :  { %v9880_v51 = vld [vmem:[#allocation8 + $0x754] ss:$20 sps:$4 sm:$0xff]  }
 0x544   :  { %6212 = vmatpush2.bf16.msra.mxu0 %v9853_v34  ;;  %v9881_v34 = vld [vmem:[#allocation8 + $0x724] ss:$20 sps:$4 sm:$0xff]  }
 0x545   :  { %6267 = vmatpush2.bf16.msra.mxu1 %v9854_v33  ;;  %6213 = vmatprep.subr.bf16.mxu0 %v9855_v36  ;;  %v9882_v33 = vld [vmem:[#allocation8 + $0x614] ss:$20 sps:$4 sm:$0xff]   ;;  %v9883_v36 = vld [vmem:[#allocation8 + $0x72c] ss:$20 sps:$4 sm:$0xff]  }
 0x546   :  { %8221 = vmatprep.subr.bf16.mxu1 %v9856_v29  ;;  %v9884_v29 = vld [vmem:[#allocation8 + $0x5ec] ss:$20 sps:$4 sm:$0xff]  }
 0x548   :  { %6214 = vmatpush2.bf16.msra.mxu0 %v9857_v24  ;;  %6269 = vmatmul.mubr.bf16.vlgmr.msra.gmra.mxu1 %v10738_v57  ;;  %v9885_v24 = vld [vmem:[#allocation8 + $0xb88] ss:$20 sps:$4 sm:$0xff]  }
 0x549   :  { %8222 = vmatpush3.bf16.msra.mxu1 %v9858_v8  ;;  %6350 = vmatprep.mubr.bf16.mxu1 %v10716_v1  ;;  %v9886_v8 = vld [vmem:[#allocation8 + $0xb84] ss:$20 sps:$4 sm:$0xff]  }
 0x54a   :  { %6215 = vmatprep.subr.bf16.mxu0 %v9859_v26  ;;  %8223 = vmatprep.subr.bf16.mxu1 %v9860_v38  ;;  %v5834_v26 = vadd.f32 %v10807_v56, %v10558_v61  ;;  %v5836_v38 = vadd.f32 %v10809_v32, %v10562_v2  ;;  %v9891_v2 = vld [vmem:[#allocation8 + $0xb34] ss:$20 sps:$4 sm:$0xff]  }
 0x54c   :  { %6216 = vmatpush2.bf16.msra.mxu0 %v9861_v28 }
 0x54d   :  { %8224 = vmatpush3.bf16.msra.mxu1 %v9862_v55  ;;  %6217 = vmatprep.subr.bf16.mxu0 %v9863_v46  ;;  %v9888_v55 = vld [vmem:[#allocation8 + $0xb5c] ss:$20 sps:$4 sm:$0xff]  }
 0x54e   :  { %8225 = vmatprep.subr.bf16.mxu1 %v9864_v40  ;;  %v9889_v40 = vld [vmem:[#allocation8 + $0xb8c] ss:$20 sps:$4 sm:$0xff]  }
 0x550   :  { %v10813_v42 = vpop.f32.mrf.mxu1  ;;  %6218 = vmatpush2.bf16.msra.mxu0 %v9865_v53 }
 0x551   :  { %8226 = vmatpush3.bf16.msra.mxu1 %v9866_v60  ;;  %6219 = vmatprep.subr.bf16.mxu0 %v9867_v37 }
 0x552   :  { %v10815_v30 = vpop.f32.mrf.mxu1  ;;  %8227 = vmatprep.subr.bf16.mxu1 %v9868_v16  ;;  %v9892_v16 = vld [vmem:[#allocation8 + $0xb64] ss:$20 sps:$4 sm:$0xff]  }
 0x554   :  { %v5919_v62 = vpop.f32.mrf.mxu1  ;;  %6220 = vmatpush2.bf16.msra.mxu0 %v9869_v45 }
 0x555   :  { %8228 = vmatpush3.bf16.msra.mxu1 %v9870_v15  ;;  %6221 = vmatprep.subr.bf16.mxu0 %v9871_v63  ;;  %v9893_v62 = vld [vmem:[#allocation8 + $0xb10] ss:$20 sps:$4 sm:$0xff]   ;;  %v9894_v63 = vld [vmem:[#allocation8 + $0xb0c] ss:$20 sps:$4 sm:$0xff]  }
 0x556   :  { %v5920_v21 = vpop.f32.mrf.mxu1  ;;  %8229 = vmatprep.subr.bf16.mxu1 %v9872_v22 }
 0x557   :  { %v9895_v21 = vld [vmem:[#allocation8 + $0xb3c] ss:$20 sps:$4 sm:$0xff]  }
 0x558   :  { %6222 = vmatpush2.bf16.msra.mxu0 %v9873_v44  ;;  %v9897_v44 = vld [vmem:[#allocation8 + $0xae4] ss:$20 sps:$4 sm:$0xff]  }
 0x559   :  { %8230 = vmatpush3.bf16.msra.mxu1 %v9874_v14  ;;  %6223 = vmatprep.subr.bf16.mxu0 %v9875_v54  ;;  %v9898_v14 = vld [vmem:[#allocation8 + $0xb14] ss:$20 sps:$4 sm:$0xff]   ;;  %v9899_v54 = vld [vmem:[#allocation8 + $0xac4] ss:$20 sps:$4 sm:$0xff]  }
 0x55a   :  { %8231 = vmatprep.subr.bf16.mxu1 %v9876_v13  ;;  %v9900_v13 = vld [vmem:[#allocation8 + $0x984] ss:$20 sps:$4 sm:$0xff]  }
 0x55c   :  { %6224 = vmatpush2.bf16.msra.mxu0 %v9877_v27  ;;  %v9901_v27 = vld [vmem:[#allocation8 + $0xaec] ss:$20 sps:$4 sm:$0xff]  }
 0x55d   :  { %8232 = vmatpush3.bf16.msra.mxu1 %v9878_v6  ;;  %6225 = vmatprep.subr.bf16.mxu0 %v9879_v48  ;;  %v9902_v6 = vld [vmem:[#allocation8 + $0xa9c] ss:$20 sps:$4 sm:$0xff]   ;;  %v9903_v48 = vld [vmem:[#allocation8 + $0xf54] ss:$20 sps:$4 sm:$0xff]  }
 0x55e   :  { %8233 = vmatprep.subr.bf16.mxu1 %v9880_v51  ;;  %v9904_v51 = vld [vmem:[#allocation8 + $0x95c] ss:$20 sps:$4 sm:$0xff]  }
 0x560   :  { %6226 = vmatpush2.bf16.msra.mxu0 %v9881_v34  ;;  %v9905_v34 = vld [vmem:[#allocation8 + $0xf50] ss:$20 sps:$4 sm:$0xff]  }
 0x561   :  { %8234 = vmatpush3.bf16.msra.mxu1 %v9882_v33  ;;  %7958 = vmatprep.subr.msk.bf16.mxu0 %vm1986_vm3, %v10546_v35  ;;  %v9887_v35 = vld [vmem:[#allocation8 + $0xb60] ss:$20 sps:$4 sm:$0xff]  }
 0x562   :  { %8235 = vmatprep.subr.bf16.mxu1 %v9883_v36  ;;  %v9906_v33 = vld [vmem:[#allocation8 + $0xa74] ss:$20 sps:$4 sm:$0xff]   ;;  %v9907_v36 = vld [vmem:[#allocation8 + $0xf2c] ss:$20 sps:$4 sm:$0xff]  }
 0x563   :  { %6228 = vmatmul.mubr.bf16.vlgmr.msra.gmra.mxu0 %v10718_v47 }
 0x564   :  { %6282 = vmatpush1.bf16.msra.mxu0 %v10551_v49  ;;  %6309 = vmatprep.mubr.bf16.mxu0 %v10284_v0 }
 0x565   :  { %8236 = vmatpush3.bf16.msra.mxu1 %v9884_v29  ;;  %6283 = vmatprep.subr.bf16.mxu0 %v9885_v24  ;;  %v9908_v29 = vld [vmem:[#allocation8 + $0x934] ss:$20 sps:$4 sm:$0xff]  }
 0x566   :  { %8456 = vmatprep.subr.bf16.mxu1 %v10285_v17  ;;  %v9909_v24 = vld [vmem:[#allocation8 + $0xf28] ss:$20 sps:$4 sm:$0xff]  }
 0x568   :  { %6284 = vmatpush1.bf16.msra.mxu0 %v9886_v8  ;;  %6351 = vmatmul.mubr.bf16.vlgmr.msra.gmra.mxu1 %v10718_v47  ;;  %v9910_v8 = vld [vmem:[#allocation8 + $0xa4c] ss:$20 sps:$4 sm:$0xff]  }
 0x569   :  { %8457 = vmatpush3.bf16.msra.mxu1 %v10574_v43  ;;  %6285 = vmatprep.subr.bf16.mxu0 %v9887_v35  ;;  %v9890_v43 = vld [vmem:[#allocation8 + $0xb38] ss:$20 sps:$4 sm:$0xff]  }
 0x56a   :  { %8458 = vmatprep.subr.bf16.mxu1 %v10285_v17  ;;  %8468 = vmatprep.mubr.msk.bf16.mxu1 %vm10286_vm2, %v10285_v17  ;;  %v9911_v35 = vld [vmem:[#allocation8 + $0xf04] ss:$20 sps:$4 sm:$0xff]  }
 0x56b   :  { %v5874_v49 = vpop.f32.mrf.mxu0 }
 0x56c   :  { %v5875_v28 = vadd.f32 %v5874_v49, %v5834_v26  ;;  %6286 = vmatpush1.bf16.msra.mxu0 %v9888_v55  ;;  %v9912_v26 = vld [vmem:[#allocation8 + $0x90c] ss:$20 sps:$4 sm:$0xff]  }
 0x56d   :  { %v5876_v46 = vpop.f32.mrf.mxu0  ;;  %8459 = vmatpush3.bf16.msra.mxu1 %v9889_v40  ;;  %6287 = vmatprep.subr.bf16.mxu0 %v9890_v43  ;;  %v9913_v49 = vld [vmem:[#allocation8 + $0xf00] ss:$20 sps:$4 sm:$0xff]   ;;  %v9917_v43 = vld [vmem:[#allocation8 + $0xed8] ss:$20 sps:$4 sm:$0xff]  }
 0x56e   :  { %v10833_v53 = vadd.f32 %v10813_v42, %v5875_v28  ;;  %v5877_v61 = vadd.f32 %v5876_v46, %v5836_v38  ;;  %8460 = vmatprep.subr.bf16.mxu1 %v10285_v17  ;;  %v9914_v38 = vld [vmem:[#allocation8 + $0xa24] ss:$20 sps:$4 sm:$0xff]   ;;  %v9915_v28 = vld [vmem:[#allocation8 + $0xedc] ss:$20 sps:$4 sm:$0xff]  }
 0x56f   :  { %v5878_v56 = vpop.f32.mrf.mxu0  ;;  %v9916_v46 = vld [vmem:[#allocation8 + $0x8e4] ss:$20 sps:$4 sm:$0xff]  }
 0x570   :  { %v10837_v60 = vadd.f32 %v10815_v30, %v5877_v61  ;;  %v8208_v37 = vpop.f32.mrf.mxu1  ;;  %6288 = vmatpush1.bf16.msra.mxu0 %v9891_v2  ;;  %v9896_v30 = vld [vmem:[#allocation8 + $0xae8] ss:$20 sps:$4 sm:$0xff]  }
 0x571   :  { %v5879_v32 = vpop.f32.mrf.mxu0  ;;  %8461 = vmatpush3.bf16.msra.mxu1 %v9892_v16  ;;  %6289 = vmatprep.subr.bf16.mxu0 %v9893_v62  ;;  %v9918_v61 = vld [vmem:[#allocation8 + $0x9fc] ss:$20 sps:$4 sm:$0xff]  }
 0x572   :  { %v8209_v45 = vpop.f32.mrf.mxu1  ;;  %8462 = vmatprep.subr.bf16.mxu1 %v10285_v17  ;;  %v9920_v16 = vld [vmem:[#allocation8 + $0x8bc] ss:$20 sps:$4 sm:$0xff]  }
 0x573   :  { %v10840_v42 = vadd.f32 %v8209_v45, %v8208_v37  ;;  %v9919_v37 = vld [vmem:[#allocation8 + $0xeb4] ss:$20 sps:$4 sm:$0xff]   ;;  %v9921_v45 = vld [vmem:[#allocation8 + $0xeb0] ss:$20 sps:$4 sm:$0xff]  }
 0x574   :  { %v8211_v15 = vpop.f32.mrf.mxu1  ;;  %6290 = vmatpush1.bf16.msra.mxu0 %v9894_v63  ;;  %v9923_v63 = vld [vmem:[#allocation8 + $0xe8c] ss:$20 sps:$4 sm:$0xff]  }
 0x575   :  { %8463 = vmatpush3.bf16.msra.mxu1 %v9895_v21  ;;  %6291 = vmatprep.subr.bf16.mxu0 %v9896_v30  ;;  %v9922_v15 = vld [vmem:[#allocation8 + $0x9d4] ss:$20 sps:$4 sm:$0xff]  }
 0x576   :  { %v8212_v22 = vpop.f32.mrf.mxu1  ;;  %8464 = vmatprep.subr.bf16.mxu1 %v10285_v17  ;;  %v9924_v30 = vld [vmem:[#allocation8 + $0x894] ss:$20 sps:$4 sm:$0xff]  }
 0x577   :  { %v9925_v22 = vld [vmem:[#allocation8 + $0xe88] ss:$20 sps:$4 sm:$0xff]  }
 0x578   :  { %6292 = vmatpush1.bf16.msra.mxu0 %v9897_v44  ;;  %v9926_v44 = vld [vmem:[#allocation8 + $0x9ac] ss:$20 sps:$4 sm:$0xff]  }
 0x579   :  { %8465 = vmatpush3.bf16.msra.mxu1 %v9898_v14  ;;  %8243 = vmatprep.subr.bf16.mxu0 %v9899_v54  ;;  %v9927_v14 = vld [vmem:[#allocation8 + $0xe64] ss:$20 sps:$4 sm:$0xff]   ;;  %v9929_v54 = vld [vmem:[#allocation8 + $0xe60] ss:$20 sps:$4 sm:$0xff]  }
 0x57a   :  { %8466 = vmatprep.subr.bf16.mxu1 %v10285_v17 }
 0x57b   :  { %7959 = vmatmul.mubr.msk.bf16.vlgmr.msra.gmra.mxu0 %vm1982_vm4, %v10749_v12 }
 0x57c   :  { %8244 = vmatpush3.bf16.msra.mxu0 %v9900_v13  ;;  %6390 = vmatprep.mubr.bf16.mxu0 %v10736_v4  ;;  %v9930_v13 = vld [vmem:[#allocation8 + $0xcd4] ss:$20 sps:$4 sm:$0xff]  }
 0x57d   :  { %8467 = vmatpush3.bf16.msra.mxu1 %v9901_v27  ;;  %8245 = vmatprep.subr.bf16.mxu0 %v9902_v6  ;;  %v9931_v27 = vld [vmem:[#allocation8 + $0xe3c] ss:$20 sps:$4 sm:$0xff]  }
 0x57e   :  { %6484 = vmatprep.subr.bf16.mxu1 %v9903_v48  ;;  %v9932_v6 = vld [vmem:[#allocation8 + $0xcd0] ss:$20 sps:$4 sm:$0xff]   ;;  %v9934_v48 = vld [vmem:[#allocation8 + $0xcac] ss:$20 sps:$4 sm:$0xff]  }
 0x580   :  { %8246 = vmatpush3.bf16.msra.mxu0 %v9904_v51  ;;  %8469 = vmatmul.mubr.msk.bf16.vlgmr.msra.gmra.mxu1 %vm1982_vm4, %v10749_v12  ;;  %v9935_v51 = vld [vmem:[#allocation8 + $0x1094] ss:$20 sps:$4 sm:$0xff]  }
 0x581   :  { %6485 = vmatpush1.bf16.msra.mxu1 %v9905_v34  ;;  %6516 = vmatprep.mubr.bf16.mxu1 %v10736_v4  ;;  %v9936_v34 = vld [vmem:[#allocation8 + $0xca8] ss:$20 sps:$4 sm:$0xff]  }
 0x582   :  { %8247 = vmatprep.subr.bf16.mxu0 %v9906_v33  ;;  %6486 = vmatprep.subr.bf16.mxu1 %v9907_v36  ;;  %v9937_v33 = vld [vmem:[#allocation8 + $0x1090] ss:$20 sps:$4 sm:$0xff]  }
 0x583   :  { %v9938_v36 = vld [vmem:[#allocation8 + $0xc84] ss:$20 sps:$4 sm:$0xff]  }
 0x584   :  { %8248 = vmatpush3.bf16.msra.mxu0 %v9908_v29  ;;  %v9939_v29 = vld [vmem:[#allocation8 + $0x106c] ss:$20 sps:$4 sm:$0xff]  }
 0x585   :  { %6487 = vmatpush1.bf16.msra.mxu1 %v9909_v24  ;;  %8249 = vmatprep.subr.bf16.mxu0 %v9910_v8 }
 0x586   :  { %6488 = vmatprep.subr.bf16.mxu1 %v9911_v35  ;;  %v9940_v35 = vld [vmem:[#allocation8 + $0xc80] ss:$20 sps:$4 sm:$0xff]  }
 0x588   :  { %8250 = vmatpush3.bf16.msra.mxu0 %v9912_v26 }
 0x589   :  { %6489 = vmatpush1.bf16.msra.mxu1 %v9913_v49  ;;  %8251 = vmatprep.subr.bf16.mxu0 %v9914_v38  ;;  %v9941_v49 = vld [vmem:[#allocation8 + $0x1068] ss:$20 sps:$4 sm:$0xff]  }
 0x58a   :  { %6490 = vmatprep.subr.bf16.mxu1 %v9915_v28  ;;  %v9942_v38 = vld [vmem:[#allocation8 + $0xc5c] ss:$20 sps:$4 sm:$0xff]   ;;  %v9943_v28 = vld [vmem:[#allocation8 + $0x1044] ss:$20 sps:$4 sm:$0xff]  }
 0x58b   :  { %v8186_v55 = vpop.f32.mrf.mxu0 }
 0x58c   :  { %8252 = vmatpush3.bf16.msra.mxu0 %v9916_v46  ;;  %v9944_v46 = vld [vmem:[#allocation8 + $0xc58] ss:$20 sps:$4 sm:$0xff]  }
 0x58d   :  { %v8187_v40 = vpop.f32.mrf.mxu0  ;;  %6491 = vmatpush1.bf16.msra.mxu1 %v9917_v43  ;;  %8253 = vmatprep.subr.bf16.mxu0 %v9918_v61  ;;  %v9945_v43 = vld [vmem:[#allocation8 + $0x1040] ss:$20 sps:$4 sm:$0xff]  }
 0x58e   :  { %v8188_v56 = vadd.f32 %v8187_v40, %v8186_v55  ;;  %6492 = vmatprep.subr.bf16.mxu1 %v9919_v37  ;;  %v9946_v61 = vld [vmem:[#allocation8 + $0xc34] ss:$20 sps:$4 sm:$0xff]   ;;  %v9948_v37 = vld [vmem:[#allocation8 + $0xc30] ss:$20 sps:$4 sm:$0xff]  }
 0x58f   :  { %v8189_v2 = vpop.f32.mrf.mxu0 }
 0x590   :  { %v5957_v32 = vadd.f32 %v8188_v56, %v10590_v25  ;;  %8254 = vmatpush3.bf16.msra.mxu0 %v9920_v16  ;;  %v9928_v25 = vld [vmem:[#allocation8 + $0x86c] ss:$20 sps:$4 sm:$0xff]   ;;  %v9947_v56 = vld [vmem:[#allocation8 + $0x101c] ss:$20 sps:$4 sm:$0xff]   ;;  %v9951_v16 = vld [vmem:[#allocation8 + $0xff4] ss:$20 sps:$4 sm:$0xff]  }
 0x591   :  { %v8190_v62 = vpop.f32.mrf.mxu0  ;;  %6493 = vmatpush1.bf16.msra.mxu1 %v9921_v45  ;;  %8255 = vmatprep.subr.bf16.mxu0 %v9922_v15  ;;  %v9949_v2 = vld [vmem:[#allocation8 + $0x1018] ss:$20 sps:$4 sm:$0xff]   ;;  %v9952_v45 = vld [vmem:[#allocation8 + $0xc08] ss:$20 sps:$4 sm:$0xff]   ;;  %v9953_v15 = vld [vmem:[#allocation8 + $0xff0] ss:$20 sps:$4 sm:$0xff]  }
 0x592   :  { %6494 = vmatprep.subr.bf16.mxu1 %v9923_v63  ;;  %v5997_v21 = vadd.f32 %v10840_v42, %v5957_v32  ;;  %v9933_v42 = vld [vmem:[#allocation8 + $0xe38] ss:$20 sps:$4 sm:$0xff]  }
 0x593   :  { %v9950_v32 = vld [vmem:[#allocation8 + $0xc0c] ss:$20 sps:$4 sm:$0xff]   ;;  %v9954_v63 = vld [vmem:[#allocation8 + $0xbe4] ss:$20 sps:$4 sm:$0xff]  }
 0x594   :  { %8256 = vmatpush3.bf16.msra.mxu0 %v9924_v30  ;;  %v9955_v30 = vld [vmem:[#allocation8 + $0xfcc] ss:$20 sps:$4 sm:$0xff]  }
 0x595   :  { %6495 = vmatpush1.bf16.msra.mxu1 %v9925_v22  ;;  %8257 = vmatprep.subr.bf16.mxu0 %v9926_v44  ;;  %v9956_v44 = vld [vmem:[#allocation8 + $0xbe0] ss:$20 sps:$4 sm:$0xff]  }
 0x596   :  { %6496 = vmatprep.subr.bf16.mxu1 %v9927_v14  ;;  %v9957_v14 = vld [vmem:[#allocation8 + $0xfc8] ss:$20 sps:$4 sm:$0xff]  }
 0x598   :  { %8258 = vmatpush3.bf16.msra.mxu0 %v9928_v25  ;;  %v9958_v25 = vld [vmem:[#allocation8 + $0xbbc] ss:$20 sps:$4 sm:$0xff]  }
 0x599   :  { %6497 = vmatpush1.bf16.msra.mxu1 %v9929_v54  ;;  %6443 = vmatprep.subr.bf16.mxu0 %v9930_v13  ;;  %v9959_v13 = vld [vmem:[#allocation8 + $0xfa4] ss:$20 sps:$4 sm:$0xff]  }
 0x59a   :  { %6498 = vmatprep.subr.bf16.mxu1 %v9931_v27  ;;  %v9960_v27 = vld [vmem:[#allocation8 + $0xbb8] ss:$20 sps:$4 sm:$0xff]  }
 0x59b   :  { %6391 = vmatmul.mubr.bf16.vlgmr.msra.gmra.mxu0 %v10738_v57 }
 0x59c   :  { %6444 = vmatpush1.bf16.msra.mxu0 %v9932_v6  ;;  %6475 = vmatprep.mubr.bf16.mxu0 %v10716_v1  ;;  %v9961_v6 = vld [vmem:[#allocation8 + $0xfa0] ss:$20 sps:$4 sm:$0xff]  }
 0x59d   :  { %6499 = vmatpush1.bf16.msra.mxu1 %v9933_v42  ;;  %6445 = vmatprep.subr.bf16.mxu0 %v9934_v48  ;;  %v9962_v42 = vld [vmem:[#allocation8 + $0xe14] ss:$20 sps:$4 sm:$0xff]   ;;  %v9963_v48 = vld [vmem:[#allocation8 + $0xf7c] ss:$20 sps:$4 sm:$0xff]  }
 0x59e   :  { %6500 = vmatprep.subr.bf16.mxu1 %v9935_v51  ;;  %v9964_v51 = vld [vmem:[#allocation8 + $0xe10] ss:$20 sps:$4 sm:$0xff]  }
 0x5a0   :  { %6446 = vmatpush1.bf16.msra.mxu0 %v9936_v34  ;;  %v9965_v34 = vld [vmem:[#allocation8 + $0xf78] ss:$20 sps:$4 sm:$0xff]  }
 0x5a1   :  { %6501 = vmatpush2.bf16.msra.mxu1 %v9937_v33  ;;  %6447 = vmatprep.subr.bf16.mxu0 %v9938_v36  ;;  %v9966_v33 = vld [vmem:[#allocation8 + $0xdec] ss:$20 sps:$4 sm:$0xff]   ;;  %v9967_v36 = vld [vmem:[#allocation8 + $0xcdc] ss:$20 sps:$4 sm:$0xff]  }
 0x5a2   :  { %6502 = vmatprep.subr.bf16.mxu1 %v9939_v29  ;;  %v9968_v29 = vld [vmem:[#allocation8 + $0xde8] ss:$20 sps:$4 sm:$0xff]  }
 0x5a3   :  { %v6036_v24 = vpop.f32.mrf.mxu0 }
 0x5a4   :  { %v10854_v8 = vadd.f32 %v6036_v24, %v5997_v21  ;;  %6448 = vmatpush1.bf16.msra.mxu0 %v9940_v35  ;;  %v9969_v24 = vld [vmem:[#allocation8 + $0xcd8] ss:$20 sps:$4 sm:$0xff]  }
 0x5a5   :  { %v8454_v26 = vpop.f32.mrf.mxu0  ;;  %6503 = vmatpush2.bf16.msra.mxu1 %v9941_v49  ;;  %6449 = vmatprep.subr.bf16.mxu0 %v9942_v38  ;;  %v9970_v35 = vld [vmem:[#allocation8 + $0xdc4] ss:$20 sps:$4 sm:$0xff]   ;;  %v9972_v49 = vld [vmem:[#allocation8 + $0xdc0] ss:$20 sps:$4 sm:$0xff]  }
 0x5a6   :  { %6504 = vmatprep.subr.bf16.mxu1 %v9943_v28  ;;  %v9971_v26 = vld [vmem:[#allocation8 + $0xcb4] ss:$20 sps:$4 sm:$0xff]   ;;  %v9973_v38 = vld [vmem:[#allocation8 + $0xcb0] ss:$20 sps:$4 sm:$0xff]  }
 0x5a7   :  { %v6039_v55 = vpop.f32.mrf.mxu0  ;;  %v9974_v28 = vld [vmem:[#allocation8 + $0xd9c] ss:$20 sps:$4 sm:$0xff]  }
 0x5a8   :  { %6450 = vmatpush1.bf16.msra.mxu0 %v9944_v46  ;;  %v9975_v55 = vld [vmem:[#allocation8 + $0xc8c] ss:$20 sps:$4 sm:$0xff]  }
 0x5a9   :  { %v8455_v40 = vpop.f32.mrf.mxu0  ;;  %6505 = vmatpush2.bf16.msra.mxu1 %v9945_v43  ;;  %6451 = vmatprep.subr.bf16.mxu0 %v9946_v61  ;;  %v9977_v43 = vld [vmem:[#allocation8 + $0xc88] ss:$20 sps:$4 sm:$0xff]  }
 0x5aa   :  { %6506 = vmatprep.subr.bf16.mxu1 %v9947_v56  ;;  %v9976_v40 = vld [vmem:[#allocation8 + $0xd98] ss:$20 sps:$4 sm:$0xff]   ;;  %v9978_v61 = vld [vmem:[#allocation8 + $0xd74] ss:$20 sps:$4 sm:$0xff]  }
 0x5ac   :  { %6452 = vmatpush1.bf16.msra.mxu0 %v9948_v37  ;;  %v9979_v37 = vld [vmem:[#allocation8 + $0xc64] ss:$20 sps:$4 sm:$0xff]  }
 0x5ad   :  { %6507 = vmatpush2.bf16.msra.mxu1 %v9949_v2  ;;  %6453 = vmatprep.subr.bf16.mxu0 %v9950_v32  ;;  %v9980_v32 = vld [vmem:[#allocation8 + $0xd70] ss:$20 sps:$4 sm:$0xff]  }
 0x5ae   :  { %6508 = vmatprep.subr.bf16.mxu1 %v9951_v16  ;;  %v9981_v16 = vld [vmem:[#allocation8 + $0xc60] ss:$20 sps:$4 sm:$0xff]  }
 0x5b0   :  { %v10856_v62 = vpop.f32.mrf.mxu1  ;;  %6454 = vmatpush1.bf16.msra.mxu0 %v9952_v45  ;;  %v9982_v45 = vld [vmem:[#allocation8 + $0xd4c] ss:$20 sps:$4 sm:$0xff]  }
 0x5b1   :  { %6509 = vmatpush2.bf16.msra.mxu1 %v9953_v15  ;;  %6455 = vmatprep.subr.bf16.mxu0 %v9954_v63  ;;  %v9983_v63 = vld [vmem:[#allocation8 + $0xc3c] ss:$20 sps:$4 sm:$0xff]  }
 0x5b2   :  { %v10858_v21 = vpop.f32.mrf.mxu1  ;;  %6510 = vmatprep.subr.bf16.mxu1 %v9955_v30  ;;  %v7951_v30 = vmul.f32 -1.442695, %v10802_v3  ;;  %v9992_v3 = vld [vmem:[#allocation8 + $0xcf8] ss:$20 sps:$4 sm:$0xff]  }
 0x5b4   :  { %v6110_v22 = vpop.f32.mrf.mxu1  ;;  %6456 = vmatpush1.bf16.msra.mxu0 %v9956_v44  ;;  %v7952_v44 = vmul.f32 -1.442695, %v10805_v50  ;;  %9486 = vpow2.f32 %v7951_v30  ;;  %v9994_v50 = vld [vmem:[#allocation8 + $0xbc4] ss:$20 sps:$4 sm:$0xff]  }
 0x5b5   :  { %6511 = vmatpush2.bf16.msra.mxu1 %v9957_v14  ;;  %6457 = vmatprep.subr.bf16.mxu0 %v9958_v25  ;;  %v9984_v22 = vld [vmem:[#allocation8 + $0xd48] ss:$20 sps:$4 sm:$0xff]   ;;  %v9985_v14 = vld [vmem:[#allocation8 + $0xc38] ss:$20 sps:$4 sm:$0xff]  }
 0x5b6   :  { %v6111_v54 = vpop.f32.mrf.mxu1  ;;  %6512 = vmatprep.subr.bf16.mxu1 %v9959_v13  ;;  %v9986_v25 = vld [vmem:[#allocation8 + $0xd24] ss:$20 sps:$4 sm:$0xff]   ;;  %v9988_v13 = vld [vmem:[#allocation8 + $0xd20] ss:$20 sps:$4 sm:$0xff]   ;;  %9488 = vpow2.f32 %v7952_v44  ;;  %v10012_v44 = vld [vmem:[#allocation8 + $0x10bc] ss:$20 sps:$4 sm:$0xff]  }
 0x5b7   :  { %v9987_v54 = vld [vmem:[#allocation8 + $0xc14] ss:$20 sps:$4 sm:$0xff]   ;;  %v10009_v30 = vld [vmem:[#allocation8 + $0xda4] ss:$20 sps:$4 sm:$0xff]  }
 0x5b8   :  { %6458 = vmatpush1.bf16.msra.mxu0 %v9960_v27  ;;  %v9989_v27 = vld [vmem:[#allocation8 + $0xc10] ss:$20 sps:$4 sm:$0xff]  }
 0x5b9   :  { %6513 = vmatpush2.bf16.msra.mxu1 %v9961_v6  ;;  %6459 = vmatprep.subr.bf16.mxu0 %v9962_v42  ;;  %v9990_v6 = vld [vmem:[#allocation8 + $0xcfc] ss:$20 sps:$4 sm:$0xff]   ;;  %v9991_v42 = vld [vmem:[#allocation8 + $0xbec] ss:$20 sps:$4 sm:$0xff]  }
 0x5ba   :  { %6514 = vmatprep.subr.bf16.mxu1 %v9963_v48  ;;  %v9993_v48 = vld [vmem:[#allocation8 + $0xbe8] ss:$20 sps:$4 sm:$0xff]  }
 0x5bc   :  { %6460 = vmatpush2.bf16.msra.mxu0 %v9964_v51  ;;  %v9995_v51 = vld [vmem:[#allocation8 + $0xbc0] ss:$20 sps:$4 sm:$0xff]  }
 0x5bd   :  { %6515 = vmatpush2.bf16.msra.mxu1 %v9965_v34  ;;  %6461 = vmatprep.subr.bf16.mxu0 %v9966_v33  ;;  %v9996_v34 = vld [vmem:[#allocation8 + $0x115c] ss:$20 sps:$4 sm:$0xff]  }
 0x5be   :  { %6566 = vmatprep.subr.bf16.mxu1 %v9967_v36  ;;  %v9997_v33 = vld [vmem:[#allocation8 + $0xe1c] ss:$20 sps:$4 sm:$0xff]  }
 0x5c0   :  { %6462 = vmatpush2.bf16.msra.mxu0 %v9968_v29  ;;  %6517 = vmatmul.mubr.bf16.vlgmr.msra.gmra.mxu1 %v10738_v57  ;;  %v9998_v29 = vld [vmem:[#allocation8 + $0x1158] ss:$20 sps:$4 sm:$0xff]  }
 0x5c1   :  { %6567 = vmatpush1.bf16.msra.mxu1 %v9969_v24  ;;  %6598 = vmatprep.mubr.bf16.mxu1 %v10716_v1  ;;  %v9487_v36 = vpop.eup %9486  ;;  %v9999_v24 = vld [vmem:[#allocation8 + $0xe18] ss:$20 sps:$4 sm:$0xff]  }
 0x5c2   :  { %6463 = vmatprep.subr.bf16.mxu0 %v9970_v35  ;;  %6568 = vmatprep.subr.bf16.mxu1 %v9971_v26  ;;  %v6107_v26 = vadd.f32 %v10856_v62, %v10622_v39  ;;  %v10005_v39 = vld [vmem:[#allocation8 + $0xdcc] ss:$20 sps:$4 sm:$0xff]  }
 0x5c3   :  { %v9489_v35 = vpop.eup %9488 }
 0x5c4   :  { %6464 = vmatpush2.bf16.msra.mxu0 %v9972_v49  ;;  %v6057_v49 = vadd.f32 1.0, %v9487_v36 }
 0x5c5   :  { %6569 = vmatpush1.bf16.msra.mxu1 %v9973_v38  ;;  %6465 = vmatprep.subr.bf16.mxu0 %v9974_v28  ;;  %v6109_v28 = vadd.f32 %v10858_v21, %v10626_v19  ;;  %v10006_v19 = vld [vmem:[#allocation8 + $0x1108] ss:$20 sps:$4 sm:$0xff]  }
 0x5c6   :  { %6570 = vmatprep.subr.bf16.mxu1 %v9975_v55  ;;  %9490 = vrcp.f32 %v6057_v49  ;;  %v10028_v49 = vld [vmem:[#allocation8 + $0xee4] ss:$20 sps:$4 sm:$0xff]  }
 0x5c8   :  { %v10862_v46 = vpop.f32.mrf.mxu1  ;;  %6466 = vmatpush2.bf16.msra.mxu0 %v9976_v40  ;;  %v10002_v40 = vld [vmem:[#allocation8 + $0x1130] ss:$20 sps:$4 sm:$0xff]  }
 0x5c9   :  { %6571 = vmatpush1.bf16.msra.mxu1 %v9977_v43  ;;  %6467 = vmatprep.subr.bf16.mxu0 %v9978_v61  ;;  %v6058_v43 = vadd.f32 1.0, %v9489_v35  ;;  %v10025_v35 = vld [vmem:[#allocation8 + $0xd04] ss:$20 sps:$4 sm:$0xff]  }
 0x5ca   :  { %v10864_v56 = vpop.f32.mrf.mxu1  ;;  %6572 = vmatprep.subr.bf16.mxu1 %v9979_v37  ;;  %v10003_v37 = vld [vmem:[#allocation8 + $0xdf0] ss:$20 sps:$4 sm:$0xff]  }
 0x5cc   :  { %v6192_v2 = vpop.f32.mrf.mxu1  ;;  %6468 = vmatpush2.bf16.msra.mxu0 %v9980_v32 }
 0x5cd   :  { %6573 = vmatpush1.bf16.msra.mxu1 %v9981_v16  ;;  %6469 = vmatprep.subr.bf16.mxu0 %v9982_v45  ;;  %v10004_v2 = vld [vmem:[#allocation8 + $0x110c] ss:$20 sps:$4 sm:$0xff]  }
 0x5ce   :  { %v6193_v15 = vpop.f32.mrf.mxu1  ;;  %6574 = vmatprep.subr.bf16.mxu1 %v9983_v63  ;;  %v10008_v63 = vld [vmem:[#allocation8 + $0x10e4] ss:$20 sps:$4 sm:$0xff]  }
 0x5cf   :  { %v10007_v15 = vld [vmem:[#allocation8 + $0xdc8] ss:$20 sps:$4 sm:$0xff]  }
 0x5d0   :  { %6470 = vmatpush2.bf16.msra.mxu0 %v9984_v22  ;;  %v10011_v22 = vld [vmem:[#allocation8 + $0xda0] ss:$20 sps:$4 sm:$0xff]  }
 0x5d1   :  { %6575 = vmatpush1.bf16.msra.mxu1 %v9985_v14  ;;  %6471 = vmatprep.subr.bf16.mxu0 %v9986_v25  ;;  %v10013_v14 = vld [vmem:[#allocation8 + $0xd7c] ss:$20 sps:$4 sm:$0xff]   ;;  %v10015_v25 = vld [vmem:[#allocation8 + $0xd78] ss:$20 sps:$4 sm:$0xff]  }
 0x5d2   :  { %6576 = vmatprep.subr.bf16.mxu1 %v9987_v54  ;;  %v10016_v54 = vld [vmem:[#allocation8 + $0xf5c] ss:$20 sps:$4 sm:$0xff]  }
 0x5d4   :  { %6472 = vmatpush2.bf16.msra.mxu0 %v9988_v13  ;;  %v10017_v13 = vld [vmem:[#allocation8 + $0xd54] ss:$20 sps:$4 sm:$0xff]  }
 0x5d5   :  { %6577 = vmatpush1.bf16.msra.mxu1 %v9989_v27  ;;  %6473 = vmatprep.subr.bf16.mxu0 %v9990_v6  ;;  %v9491_v27 = vpop.eup %9490  ;;  %v10018_v6 = vld [vmem:[#allocation8 + $0xf58] ss:$20 sps:$4 sm:$0xff]  }
 0x5d6   :  { %6578 = vmatprep.subr.bf16.mxu1 %v9991_v42 }
 0x5d8   :  { %6474 = vmatpush2.bf16.msra.mxu0 %v9992_v3  ;;  %v10019_v3 = vld [vmem:[#allocation8 + $0xd50] ss:$20 sps:$4 sm:$0xff]  }
 0x5d9   :  { %6579 = vmatpush1.bf16.msra.mxu1 %v9993_v48  ;;  %7961 = vmatprep.subr.msk.bf16.mxu0 %vm1986_vm3, %v10608_v7  ;;  %v10000_v7 = vld [vmem:[#allocation8 + $0x1134] ss:$20 sps:$4 sm:$0xff]  }
 0x5da   :  { %6580 = vmatprep.subr.bf16.mxu1 %v9994_v50  ;;  %v10020_v48 = vld [vmem:[#allocation8 + $0xf34] ss:$20 sps:$4 sm:$0xff]  }
 0x5db   :  { %6476 = vmatmul.mubr.bf16.vlgmr.msra.gmra.mxu0 %v10718_v47 }
 0x5dc   :  { %6530 = vmatpush1.bf16.msra.mxu0 %v10613_v18  ;;  %6557 = vmatprep.mubr.bf16.mxu0 %v10284_v0  ;;  %v10001_v18 = vld [vmem:[#allocation8 + $0xdf4] ss:$20 sps:$4 sm:$0xff]  }
 0x5dd   :  { %6581 = vmatpush1.bf16.msra.mxu1 %v9995_v51  ;;  %6531 = vmatprep.subr.bf16.mxu0 %v9996_v34  ;;  %v10021_v34 = vld [vmem:[#allocation8 + $0xd2c] ss:$20 sps:$4 sm:$0xff]  }
 0x5de   :  { %6582 = vmatprep.subr.bf16.mxu1 %v9997_v33 }
 0x5e0   :  { %6532 = vmatpush1.bf16.msra.mxu0 %v9998_v29  ;;  %v10022_v29 = vld [vmem:[#allocation8 + $0xf30] ss:$20 sps:$4 sm:$0xff]  }
 0x5e1   :  { %6583 = vmatpush2.bf16.msra.mxu1 %v9999_v24  ;;  %6533 = vmatprep.subr.bf16.mxu0 %v10000_v7  ;;  %v10023_v24 = vld [vmem:[#allocation8 + $0xd28] ss:$20 sps:$4 sm:$0xff]   ;;  %v10024_v7 = vld [vmem:[#allocation8 + $0xf0c] ss:$20 sps:$4 sm:$0xff]  }
 0x5e2   :  { %6584 = vmatprep.subr.bf16.mxu1 %v10001_v18  ;;  %v10027_v18 = vld [vmem:[#allocation8 + $0xd00] ss:$20 sps:$4 sm:$0xff]  }
 0x5e3   :  { %v6147_v38 = vpop.f32.mrf.mxu0 }
 0x5e4   :  { %v6148_v55 = vadd.f32 %v6147_v38, %v6107_v26  ;;  %6534 = vmatpush1.bf16.msra.mxu0 %v10002_v40  ;;  %v10026_v26 = vld [vmem:[#allocation8 + $0xf08] ss:$20 sps:$4 sm:$0xff]   ;;  %v10029_v38 = vld [vmem:[#allocation8 + $0xee0] ss:$20 sps:$4 sm:$0xff]   ;;  %v10032_v40 = vld [vmem:[#allocation8 + $0xeb8] ss:$20 sps:$4 sm:$0xff]  }
 0x5e5   :  { %v6149_v61 = vpop.f32.mrf.mxu0  ;;  %6585 = vmatpush2.bf16.msra.mxu1 %v10003_v37  ;;  %6535 = vmatprep.subr.bf16.mxu0 %v10004_v2  ;;  %v10035_v37 = vld [vmem:[#allocation8 + $0x113c] ss:$20 sps:$4 sm:$0xff]  }
 0x5e6   :  { %v6189_v32 = vadd.f32 %v10862_v46, %v6148_v55  ;;  %v6150_v16 = vadd.f32 %v6149_v61, %v6109_v28  ;;  %6586 = vmatprep.subr.bf16.mxu1 %v10005_v39  ;;  %v10010_v46 = vld [vmem:[#allocation8 + $0x10e0] ss:$20 sps:$4 sm:$0xff]   ;;  %v10030_v28 = vld [vmem:[#allocation8 + $0xebc] ss:$20 sps:$4 sm:$0xff]   ;;  %v10031_v55 = vld [vmem:[#allocation8 + $0x1164] ss:$20 sps:$4 sm:$0xff]  }
 0x5e7   :  { %v6151_v62 = vpop.f32.mrf.mxu0  ;;  %v10034_v61 = vld [vmem:[#allocation8 + $0xe94] ss:$20 sps:$4 sm:$0xff]   ;;  %v10036_v2 = vld [vmem:[#allocation8 + $0xe90] ss:$20 sps:$4 sm:$0xff]  }
 0x5e8   :  { %9492 = vtanh.f32 %v6189_v32  ;;  %v6191_v45 = vadd.f32 %v10864_v56, %v6150_v16  ;;  %6536 = vmatpush1.bf16.msra.mxu0 %v10006_v19  ;;  %v10014_v56 = vld [vmem:[#allocation8 + $0x10b8] ss:$20 sps:$4 sm:$0xff]   ;;  %v10039_v39 = vld [vmem:[#allocation8 + $0x1114] ss:$20 sps:$4 sm:$0xff]  }
 0x5e9   :  { %9494 = vrcp.f32 %v6058_v43  ;;  %v6152_v21 = vpop.f32.mrf.mxu0  ;;  %6587 = vmatpush2.bf16.msra.mxu1 %v10007_v15  ;;  %6537 = vmatprep.subr.bf16.mxu0 %v10008_v63  ;;  %v10033_v43 = vld [vmem:[#allocation8 + $0x1160] ss:$20 sps:$4 sm:$0xff]   ;;  %v10037_v32 = vld [vmem:[#allocation8 + $0x1138] ss:$20 sps:$4 sm:$0xff]   ;;  %v10040_v62 = vld [vmem:[#allocation8 + $0xe68] ss:$20 sps:$4 sm:$0xff]  }
 0x5ea   :  { %9496 = vtanh.f32 %v6191_v45  ;;  %6588 = vmatprep.subr.bf16.mxu1 %v10009_v30  ;;  %v10041_v45 = vld [vmem:[#allocation8 + $0x1110] ss:$20 sps:$4 sm:$0xff]   ;;  %v10043_v15 = vld [vmem:[#allocation8 + $0x10ec] ss:$20 sps:$4 sm:$0xff]   ;;  %v10045_v30 = vld [vmem:[#allocation8 + $0x10e8] ss:$20 sps:$4 sm:$0xff]  }
 0x5eb   :  { %v10042_v19 = vld [vmem:[#allocation8 + $0xe44] ss:$20 sps:$4 sm:$0xff]   ;;  %v10044_v63 = vld [vmem:[#allocation8 + $0xe40] ss:$20 sps:$4 sm:$0xff]  }
 0x5ec   :  { %6538 = vmatpush1.bf16.msra.mxu0 %v10010_v46  ;;  %v10046_v46 = vld [vmem:[#allocation8 + $0x109c] ss:$20 sps:$4 sm:$0xff]  }
 0x5ed   :  { %6589 = vmatpush2.bf16.msra.mxu1 %v10011_v22  ;;  %6539 = vmatprep.subr.bf16.mxu0 %v10012_v44  ;;  %v10047_v22 = vld [vmem:[#allocation8 + $0x10c4] ss:$20 sps:$4 sm:$0xff]  }
 0x5ee   :  { %6590 = vmatprep.subr.bf16.mxu1 %v10013_v14  ;;  %v10048_v44 = vld [vmem:[#allocation8 + $0x1098] ss:$20 sps:$4 sm:$0xff]   ;;  %v10049_v14 = vld [vmem:[#allocation8 + $0x10c0] ss:$20 sps:$4 sm:$0xff]  }
 0x5f0   :  { %6540 = vmatpush1.bf16.msra.mxu0 %v10014_v56  ;;  %v10050_v56 = vld [vmem:[#allocation8 + $0x1074] ss:$20 sps:$4 sm:$0xff]  }
 0x5f1   :  { %6591 = vmatpush2.bf16.msra.mxu1 %v10015_v25  ;;  %6607 = vmatprep.subr.bf16.mxu0 %v10016_v54  ;;  %v10051_v25 = vld [vmem:[#allocation8 + $0x10a0] ss:$20 sps:$4 sm:$0xff]   ;;  %v10052_v54 = vld [vmem:[#allocation8 + $0x1070] ss:$20 sps:$4 sm:$0xff]  }
 0x5f2   :  { %6592 = vmatprep.subr.bf16.mxu1 %v10017_v13  ;;  %v10053_v13 = vld [vmem:[#allocation8 + $0xf60] ss:$20 sps:$4 sm:$0xff]  }
 0x5f3   :  { %7962 = vmatmul.mubr.msk.bf16.vlgmr.msra.gmra.mxu0 %vm1982_vm4, %v10749_v12 }
 0x5f4   :  { %6608 = vmatpush1.bf16.msra.mxu0 %v10018_v6  ;;  %6639 = vmatprep.mubr.bf16.mxu0 %v10736_v4  ;;  %v10055_v6 = vld [vmem:[#allocation8 + $0x1078] ss:$20 sps:$4 sm:$0xff]  }
 0x5f5   :  { %v9493_v42 = vpop.eup %9492  ;;  %6593 = vmatpush2.bf16.msra.mxu1 %v10019_v3  ;;  %6609 = vmatprep.subr.bf16.mxu0 %v10020_v48  ;;  %v10057_v3 = vld [vmem:[#allocation8 + $0xf38] ss:$20 sps:$4 sm:$0xff]  }
 0x5f6   :  { %v9495_v50 = vpop.eup %9494  ;;  %v10882_v51 = vmul.f32 %v9493_v42, %v9491_v27  ;;  %6594 = vmatprep.subr.bf16.mxu1 %v10021_v34  ;;  %v10054_v27 = vld [vmem:[#allocation8 + $0x104c] ss:$20 sps:$4 sm:$0xff]   ;;  %v10056_v42 = vld [vmem:[#allocation8 + $0x1048] ss:$20 sps:$4 sm:$0xff]   ;;  %v10058_v48 = vld [vmem:[#allocation8 + $0x1024] ss:$20 sps:$4 sm:$0xff]  }
 0x5f7   :  { %v9497_v33 = vpop.eup %9496  ;;  %v10060_v34 = vld [vmem:[#allocation8 + $0x1020] ss:$20 sps:$4 sm:$0xff]  }
 0x5f8   :  { %v10884_v36 = vmul.f32 %v9497_v33, %v9495_v50  ;;  %6610 = vmatpush1.bf16.msra.mxu0 %v10022_v29  ;;  %v10059_v50 = vld [vmem:[#allocation8 + $0x1050] ss:$20 sps:$4 sm:$0xff]  }
 0x5f9   :  { %6595 = vmatpush2.bf16.msra.mxu1 %v10023_v24  ;;  %6611 = vmatprep.subr.bf16.mxu0 %v10024_v7  ;;  %v10061_v33 = vld [vmem:[#allocation8 + $0xf10] ss:$20 sps:$4 sm:$0xff]   ;;  %v10063_v24 = vld [vmem:[#allocation8 + $0x1028] ss:$20 sps:$4 sm:$0xff]  }
 0x5fa   :  { %6596 = vmatprep.subr.bf16.mxu1 %v10025_v35  ;;  %v10062_v29 = vld [vmem:[#allocation8 + $0xffc] ss:$20 sps:$4 sm:$0xff]   ;;  %v10064_v35 = vld [vmem:[#allocation8 + $0xff8] ss:$20 sps:$4 sm:$0xff]  }
 0x5fc   :  { %6612 = vmatpush1.bf16.msra.mxu0 %v10026_v26  ;;  %v7953_v26 = vmul.f32 -1.442695, %v10833_v53 }
 0x5fd   :  { %6597 = vmatpush2.bf16.msra.mxu1 %v10027_v18  ;;  %6613 = vmatprep.subr.bf16.mxu0 %v10028_v49  ;;  %v10065_v49 = vld [vmem:[#allocation8 + $0xee8] ss:$20 sps:$4 sm:$0xff]  }
 0x5fe   :  { %7963 = vmatprep.subr.msk.bf16.mxu1 %vm1986_vm3, %v10639_v59  ;;  %9498 = vpow2.f32 %v7953_v26  ;;  %v10088_v26 = vld [vmem:[#allocation8 + $0xd80] ss:$20 sps:$4 sm:$0xff]  }
 0x600   :  { %6599 = vmatmul.mubr.bf16.vlgmr.msra.gmra.mxu1 %v10718_v47  ;;  %6614 = vmatpush1.bf16.msra.mxu0 %v10029_v38  ;;  %v10066_v38 = vld [vmem:[#allocation8 + $0xfd4] ss:$20 sps:$4 sm:$0xff]  }
 0x601   :  { %6653 = vmatpush1.bf16.msra.mxu1 %v10644_v5  ;;  %6615 = vmatprep.subr.bf16.mxu0 %v10030_v28  ;;  %v10038_v5 = vld [vmem:[#allocation8 + $0xe6c] ss:$20 sps:$4 sm:$0xff]  }
 0x602   :  { %6654 = vmatprep.subr.bf16.mxu1 %v10031_v55  ;;  %6680 = vmatprep.mubr.bf16.mxu1 %v10284_v0  ;;  %v10067_v55 = vld [vmem:[#allocation8 + $0x1000] ss:$20 sps:$4 sm:$0xff]  }
 0x604   :  { %6616 = vmatpush1.bf16.msra.mxu0 %v10032_v40 }
 0x605   :  { %6655 = vmatpush1.bf16.msra.mxu1 %v10033_v43  ;;  %6617 = vmatprep.subr.bf16.mxu0 %v10034_v61  ;;  %v7954_v43 = vmul.f32 -1.442695, %v10837_v60  ;;  %v10072_v60 = vld [vmem:[#allocation8 + $0xfa8] ss:$20 sps:$4 sm:$0xff]  }
 0x606   :  { %6656 = vmatprep.subr.bf16.mxu1 %v10035_v37 }
 0x607   :  { %9500 = vpow2.f32 %v7954_v43 }
 0x608   :  { %v10891_v59 = vpop.f32.mrf.mxu1  ;;  %6618 = vmatpush1.bf16.msra.mxu0 %v10036_v2 }
 0x609   :  { %6657 = vmatpush1.bf16.msra.mxu1 %v10037_v32  ;;  %6619 = vmatprep.subr.bf16.mxu0 %v10038_v5  ;;  %v10069_v32 = vld [vmem:[#allocation8 + $0xec0] ss:$20 sps:$4 sm:$0xff]  }
 0x60a   :  { %v10893_v16 = vpop.f32.mrf.mxu1  ;;  %6658 = vmatprep.subr.bf16.mxu1 %v10039_v39  ;;  %v10070_v5 = vld [vmem:[#allocation8 + $0xfac] ss:$20 sps:$4 sm:$0xff]  }
 0x60c   :  { %v6274_v0 = vpop.f32.mrf.mxu1  ;;  %6620 = vmatpush1.bf16.msra.mxu0 %v10040_v62  ;;  %v10073_v62 = vld [vmem:[#allocation8 + $0xe98] ss:$20 sps:$4 sm:$0xff]  }
 0x60d   :  { %6659 = vmatpush1.bf16.msra.mxu1 %v10041_v45  ;;  %6621 = vmatprep.subr.bf16.mxu0 %v10042_v19  ;;  %v10074_v45 = vld [vmem:[#allocation8 + $0xf84] ss:$20 sps:$4 sm:$0xff]  }
 0x60e   :  { %v6275_v21 = vpop.f32.mrf.mxu1  ;;  %6660 = vmatprep.subr.bf16.mxu1 %v10043_v15  ;;  %v10075_v19 = vld [vmem:[#allocation8 + $0xfb0] ss:$20 sps:$4 sm:$0xff]  }
 0x60f   :  { %v10076_v21 = vld [vmem:[#allocation8 + $0xf80] ss:$20 sps:$4 sm:$0xff]   ;;  %v10077_v15 = vld [vmem:[#allocation8 + $0xe70] ss:$20 sps:$4 sm:$0xff]  }
 0x610   :  { %6622 = vmatpush1.bf16.msra.mxu0 %v10044_v63  ;;  %v10078_v63 = vld [vmem:[#allocation8 + $0xe20] ss:$20 sps:$4 sm:$0xff]  }
 0x611   :  { %6661 = vmatpush1.bf16.msra.mxu1 %v10045_v30  ;;  %6623 = vmatprep.subr.bf16.mxu0 %v10046_v46  ;;  %v10079_v30 = vld [vmem:[#allocation8 + $0xf88] ss:$20 sps:$4 sm:$0xff]   ;;  %v10080_v46 = vld [vmem:[#allocation8 + $0xce0] ss:$20 sps:$4 sm:$0xff]  }
 0x612   :  { %6662 = vmatprep.subr.bf16.mxu1 %v10047_v22  ;;  %v10081_v22 = vld [vmem:[#allocation8 + $0xe48] ss:$20 sps:$4 sm:$0xff]  }
 0x614   :  { %6624 = vmatpush2.bf16.msra.mxu0 %v10048_v44  ;;  %v10082_v44 = vld [vmem:[#allocation8 + $0xdf8] ss:$20 sps:$4 sm:$0xff]  }
 0x615   :  { %6663 = vmatpush1.bf16.msra.mxu1 %v10049_v14  ;;  %6625 = vmatprep.subr.bf16.mxu0 %v10050_v56  ;;  %v9499_v14 = vpop.eup %9498 }
 0x616   :  { %8294 = vmatprep.subr.bf16.mxu1 %v10051_v25  ;;  %v9501_v56 = vpop.eup %9500  ;;  %v10083_v25 = vld [vmem:[#allocation8 + $0xcb8] ss:$20 sps:$4 sm:$0xff]  }
 0x618   :  { %6626 = vmatpush2.bf16.msra.mxu0 %v10052_v54  ;;  %7964 = vmatmul.mubr.msk.bf16.vlgmr.msra.gmra.mxu1 %vm1982_vm4, %v10749_v12  ;;  %v6059_v54 = vadd.f32 1.0, %v9499_v14 }
 0x619   :  { %8295 = vmatpush3.bf16.msra.mxu1 %v10053_v13  ;;  %6761 = vmatprep.mubr.bf16.mxu1 %v10736_v4  ;;  %v10084_v13 = vld [vmem:[#allocation8 + $0xdd0] ss:$20 sps:$4 sm:$0xff]  }
 0x61a   :  { %6627 = vmatprep.subr.bf16.mxu0 %v10054_v27  ;;  %8296 = vmatprep.subr.bf16.mxu1 %v10055_v6  ;;  %v6060_v27 = vadd.f32 1.0, %v9501_v56  ;;  %9502 = vrcp.f32 %v6059_v54  ;;  %v10097_v56 = vld [vmem:[#allocation8 + $0x1140] ss:$20 sps:$4 sm:$0xff]  }
 0x61c   :  { %6628 = vmatpush2.bf16.msra.mxu0 %v10056_v42  ;;  %v9328_v42 = vld [vmem:[#allocation11 + $0x78] sm:$0xff]  }
 0x61d   :  { %8297 = vmatpush3.bf16.msra.mxu1 %v10057_v3  ;;  %6629 = vmatprep.subr.bf16.mxu0 %v10058_v48  ;;  %v10085_v48 = vld [vmem:[#allocation8 + $0xc90] ss:$20 sps:$4 sm:$0xff]  }
 0x61e   :  { %8298 = vmatprep.subr.bf16.mxu1 %v10059_v50 }
 0x620   :  { %6630 = vmatpush2.bf16.msra.mxu0 %v10060_v34  ;;  %v10086_v34 = vld [vmem:[#allocation8 + $0xda8] ss:$20 sps:$4 sm:$0xff]  }
 0x621   :  { %8299 = vmatpush3.bf16.msra.mxu1 %v10061_v33  ;;  %6631 = vmatprep.subr.bf16.mxu0 %v10062_v29  ;;  %v9330_v29 = vld [vmem:[#allocation11 + $0x70] sm:$0xff]  }
 0x622   :  { %8300 = vmatprep.subr.bf16.mxu1 %v10063_v24 }
 0x623   :  { %v6229_v4 = vpop.f32.mrf.mxu0 }
 0x624   :  { %v6230_v7 = vadd.f32 %v6229_v4, %v10651_v41  ;;  %6632 = vmatpush2.bf16.msra.mxu0 %v10064_v35  ;;  %v10068_v41 = vld [vmem:[#allocation8 + $0xfd0] ss:$20 sps:$4 sm:$0xff]   ;;  %v10087_v4 = vld [vmem:[#allocation8 + $0xc68] ss:$20 sps:$4 sm:$0xff]  }
 0x625   :  { %v6231_v18 = vpop.f32.mrf.mxu0  ;;  %8301 = vmatpush3.bf16.msra.mxu1 %v10065_v49  ;;  %6633 = vmatprep.subr.bf16.mxu0 %v10066_v38  ;;  %v9332_v49 = vld [vmem:[#allocation11 + $0x68] sm:$0xff]  }
 0x626   :  { %v6232_v28 = vadd.f32 %v6231_v18, %v10655_v52  ;;  %8302 = vmatprep.subr.bf16.mxu1 %v10067_v55  ;;  %v6271_v40 = vadd.f32 %v10891_v59, %v6230_v7  ;;  %v10071_v52 = vld [vmem:[#allocation8 + $0xfd8] ss:$20 sps:$4 sm:$0xff]  }
 0x627   :  { %v6233_v61 = vpop.f32.mrf.mxu0  ;;  %v9331_v7 = vld [vmem:[#allocation11 + $0x30] sm:$0xff]   ;;  %v9333_v55 = vld [vmem:[#allocation11 + $0x28] sm:$0xff]  }
 0x628   :  { %v8237_v37 = vpop.f32.mrf.mxu1  ;;  %6634 = vmatpush2.bf16.msra.mxu0 %v10068_v41  ;;  %v6273_v2 = vadd.f32 %v10893_v16, %v6232_v28  ;;  %v10089_v28 = vld [vmem:[#allocation8 + $0xc40] ss:$20 sps:$4 sm:$0xff]   ;;  %v9334_v61 = vld [vmem:[#allocation11 + $0x60] sm:$0xff]  }
 0x629   :  { %v6234_v53 = vpop.f32.mrf.mxu0  ;;  %8303 = vmatpush3.bf16.msra.mxu1 %v10069_v32  ;;  %6635 = vmatprep.subr.bf16.mxu0 %v10070_v5  ;;  %v9335_v41 = vld [vmem:[#allocation11 + $0x20] sm:$0xff]   ;;  %v9336_v32 = vld [vmem:[#allocation11 + $0x58] sm:$0xff]  }
 0x62a   :  { %v8238_v39 = vpop.f32.mrf.mxu1  ;;  %8304 = vmatprep.subr.bf16.mxu1 %v10071_v52  ;;  %v9503_v53 = vpop.eup %9502  ;;  %v9337_v5 = vld [vmem:[#allocation11 + $0x18] sm:$0xff]   ;;  %v7955_v52 = vmul.f32 -1.442695, %v10854_v8  ;;  %v9341_v8 = vld [vmem:[#allocation11 + $0x8] sm:$0xff]  }
 0x62b   :  { %v10904_v0 = vadd.f32 %v8238_v39, %v8237_v37  ;;  %v10091_v37 = vld [vmem:[#allocation8 + $0xc18] ss:$20 sps:$4 sm:$0xff]  }
 0x62c   :  { %v8240_v59 = vpop.f32.mrf.mxu1  ;;  %6636 = vmatpush2.bf16.msra.mxu0 %v10072_v60 }
 0x62d   :  { %8305 = vmatpush3.bf16.msra.mxu1 %v10073_v62  ;;  %6637 = vmatprep.subr.bf16.mxu0 %v10074_v45  ;;  %v9338_v59 = vld [vmem:[#allocation11 + $0x50] sm:$0xff]   ;;  %v10093_v45 = vld [vmem:[#allocation8 + $0xbf0] ss:$20 sps:$4 sm:$0xff]  }
 0x62e   :  { %v8241_v16 = vpop.f32.mrf.mxu1  ;;  %8306 = vmatprep.subr.bf16.mxu1 %v10075_v19  ;;  %v10094_v19 = vld [vmem:[#allocation8 + $0xd08] ss:$20 sps:$4 sm:$0xff]  }
 0x630   :  { %6638 = vmatpush2.bf16.msra.mxu0 %v10076_v21 }
 0x631   :  { %8307 = vmatpush3.bf16.msra.mxu1 %v10077_v15  ;;  %8272 = vmatprep.subr.bf16.mxu0 %v10078_v63  ;;  %v9339_v15 = vld [vmem:[#allocation11 + $0x10] sm:$0xff]   ;;  %v9340_v63 = vld [vmem:[#allocation11 + $0x48] sm:$0xff]  }
 0x632   :  { %8308 = vmatprep.subr.bf16.mxu1 %v10079_v30  ;;  %v10095_v30 = vld [vmem:[#allocation8 + $0xbc8] ss:$20 sps:$4 sm:$0xff]  }
 0x633   :  { %6640 = vmatmul.mubr.bf16.vlgmr.msra.gmra.mxu0 %v10738_v57 }
 0x634   :  { %8273 = vmatpush3.bf16.msra.mxu0 %v10080_v46  ;;  %6721 = vmatprep.mubr.bf16.mxu0 %v10716_v1  ;;  %v9329_v1 = vld [vmem:[#allocation11 + $0x38] sm:$0xff]   ;;  %v9342_v46 = vld [vmem:[#allocation11 + $0x40] sm:$0xff]  }
 0x635   :  { %8309 = vmatpush3.bf16.msra.mxu1 %v10081_v22  ;;  %8274 = vmatprep.subr.bf16.mxu0 %v10082_v44  ;;  %v10096_v22 = vld [vmem:[#allocation8 + $0x1168] ss:$20 sps:$4 sm:$0xff]  }
 0x636   :  { %8323 = vmatprep.subr.bf16.mxu1 %v9328_v42  ;;  %v9343_v44 = vld [vmem:[#allocation11] sm:$0xff]   ;;  %v10098_v42 = vld [vmem:[#allocation8 + $0x1118] ss:$20 sps:$4 sm:$0xff]  }
 0x638   :  { %8275 = vmatpush3.bf16.msra.mxu0 %v10083_v25  ;;  %6762 = vmatmul.mubr.bf16.vlgmr.msra.gmra.mxu1 %v10738_v57  ;;  %v6353_v25 = vadd.f32 %v10904_v0, %v10689_v9 }
 0x639   :  { %8276 = vmatprep.subr.bf16.mxu0 %v10084_v13  ;;  %8324 = vmatpush3.bf16.msra.mxu1 %v9329_v1  ;;  %v10099_v1 = vld [vmem:[#allocation8 + $0x10f0] ss:$20 sps:$4 sm:$0xff]  }
 0x63a   :  { %8325 = vmatprep.subr.bf16.mxu1 %v9330_v29 }
 0x63b   :  { %v6311_v6 = vpop.f32.mrf.mxu0 }
 0x63c   :  { %v6312_v3 = vadd.f32 %v6311_v6, %v6271_v40  ;;  %8277 = vmatpush3.bf16.msra.mxu0 %v10085_v48  ;;  %v10090_v40 = vld [vmem:[#allocation8 + $0xd58] ss:$20 sps:$4 sm:$0xff]  }
 0x63d   :  { %v6313_v50 = vpop.f32.mrf.mxu0  ;;  %8278 = vmatprep.subr.bf16.mxu0 %v10086_v34  ;;  %8326 = vmatpush3.bf16.msra.mxu1 %v9331_v7  ;;  %v9347_v7 = vld [vmem:[#allocation11 + $0xb0] sm:$0xff]  }
 0x63e   :  { %9504 = vtanh.f32 %v6312_v3  ;;  %v6314_v33 = vadd.f32 %v6313_v50, %v6273_v2  ;;  %8327 = vmatprep.subr.bf16.mxu1 %v9332_v49  ;;  %v10092_v2 = vld [vmem:[#allocation8 + $0xd30] ss:$20 sps:$4 sm:$0xff]   ;;  %v10100_v50 = vld [vmem:[#allocation8 + $0x10c8] ss:$20 sps:$4 sm:$0xff]  }
 0x63f   :  { %9506 = vrcp.f32 %v6060_v27  ;;  %v6315_v57 = vpop.f32.mrf.mxu0  ;;  %v9349_v49 = vld [vmem:[#allocation11 + $0xa8] sm:$0xff]  }
 0x640   :  { %9508 = vtanh.f32 %v6314_v33  ;;  %v10909_v24 = vpop.f32.mrf.mxu1  ;;  %8279 = vmatpush3.bf16.msra.mxu0 %v10087_v4  ;;  %v9344_v33 = vld [vmem:[#allocation11 + $0xf8] sm:$0xff]  }
 0x641   :  { %v6316_v35 = vpop.f32.mrf.mxu0  ;;  %8280 = vmatprep.subr.bf16.mxu0 %v10088_v26  ;;  %8328 = vmatpush3.bf16.msra.mxu1 %v9333_v55  ;;  %9510 = vpow2.f32 %v7955_v52  ;;  %v9345_v57 = vld [vmem:[#allocation11 + $0xb8] sm:$0xff]   ;;  %v9348_v26 = vld [vmem:[#allocation11 + $0xe8] sm:$0xff]  }
 0x642   :  { %v8470_v18 = vpop.f32.mrf.mxu1  ;;  %8329 = vmatprep.subr.bf16.mxu1 %v9334_v61  ;;  %v9353_v55 = vld [vmem:[#allocation11 + $0x98] sm:$0xff]   ;;  %v9356_v61 = vld [vmem:[#allocation11 + $0xc8] sm:$0xff]  }
 0x644   :  { %v6435_v38 = vpop.f32.mrf.mxu1  ;;  %8281 = vmatpush3.bf16.msra.mxu0 %v10089_v28  ;;  %v9352_v28 = vld [vmem:[#allocation11 + $0xd8] sm:$0xff]  }
 0x645   :  { %8282 = vmatprep.subr.bf16.mxu0 %v10090_v40  ;;  %8330 = vmatpush3.bf16.msra.mxu1 %v9335_v41  ;;  %v9351_v38 = vld [vmem:[#allocation11 + $0xa0] sm:$0xff]   ;;  %v9354_v40 = vld [vmem:[#allocation11 + $0xd0] sm:$0xff]  }
 0x646   :  { %v8471_v43 = vpop.f32.mrf.mxu1  ;;  %8331 = vmatprep.subr.bf16.mxu1 %v9336_v32  ;;  %v9358_v41 = vld [vmem:[#allocation11 + $0xc0] sm:$0xff]  }
 0x647   :  { %v9355_v43 = vld [vmem:[#allocation11 + $0x90] sm:$0xff]  }
 0x648   :  { %8283 = vmatpush3.bf16.msra.mxu0 %v10091_v37  ;;  %v9357_v37 = vld [vmem:[#allocation11 + $0x88] sm:$0xff]  }
 0x649   :  { %8284 = vmatprep.subr.bf16.mxu0 %v10092_v2  ;;  %8332 = vmatpush3.bf16.msra.mxu1 %v9337_v5  ;;  %v9359_v2 = vld [vmem:[#allocation11 + $0x80] sm:$0xff]  }
 0x64a   :  { %8333 = vmatprep.subr.bf16.mxu1 %v9338_v59 }
 0x64b   :  { %v9505_v39 = vpop.eup %9504 }
 0x64c   :  { %v9507_v60 = vpop.eup %9506  ;;  %v10912_v62 = vmul.f32 %v9505_v39, %v9503_v53  ;;  %8285 = vmatpush3.bf16.msra.mxu0 %v10093_v45 }
 0x64d   :  { %v9509_v16 = vpop.eup %9508  ;;  %8286 = vmatprep.subr.bf16.mxu0 %v10094_v19  ;;  %8334 = vmatpush3.bf16.msra.mxu1 %v9339_v15 }
 0x64e   :  { %v10914_v21 = vmul.f32 %v9509_v16, %v9507_v60  ;;  %8335 = vmatprep.subr.bf16.mxu1 %v9340_v63 }
 0x650   :  { %8287 = vmatpush3.bf16.msra.mxu0 %v10095_v30 }
 0x651   :  { %8472 = vmatprep.subr.bf16.mxu0 %v10285_v17  ;;  %8336 = vmatpush3.bf16.msra.mxu1 %v9341_v8 }
 0x652   :  { %8337 = vmatprep.subr.bf16.mxu1 %v9342_v46 }
 0x653   :  { %6722 = vmatmul.mubr.bf16.vlgmr.msra.gmra.mxu0 %v10718_v47  ;;  %v9511_v47 = vpop.eup %9510 }
 0x654   :  { %8473 = vmatpush3.bf16.msra.mxu0 %v10679_v23  ;;  %8484 = vmatprep.mubr.msk.bf16.mxu0 %vm10286_vm2, %v10285_v17  ;;  %v6061_v13 = vadd.f32 1.0, %v9511_v47 }
 0x655   :  { %8474 = vmatprep.subr.bf16.mxu0 %v10285_v17  ;;  %8338 = vmatpush3.bf16.msra.mxu1 %v9343_v44 }
 0x656   :  { %8488 = vmatprep.subr.bf16.mxu1 %v10285_v17  ;;  %9512 = vrcp.f32 %v6061_v13 }
 0x658   :  { %8475 = vmatpush3.bf16.msra.mxu0 %v10096_v22 }
 0x659   :  { %8476 = vmatprep.subr.bf16.mxu0 %v10285_v17 }
 0x65b   :  { %v8259_v14 = vpop.f32.mrf.mxu0 }
 0x65c   :  { %8477 = vmatpush3.bf16.msra.mxu0 %v10097_v56 }
 0x65d   :  { %v8260_v23 = vpop.f32.mrf.mxu0  ;;  %8478 = vmatprep.subr.bf16.mxu0 %v10285_v17 }
 0x65e   :  { %v8261_v54 = vadd.f32 %v8260_v23, %v8259_v14 }
 0x65f   :  { %v8262_v27 = vpop.f32.mrf.mxu0 }
 0x660   :  { %v6393_v6 = vadd.f32 %v8261_v54, %v6353_v25  ;;  %8479 = vmatpush3.bf16.msra.mxu0 %v10098_v42 }
 0x661   :  { %v8263_v3 = vpop.f32.mrf.mxu0  ;;  %8480 = vmatprep.subr.bf16.mxu0 %v10285_v17 }
 0x662   :  { %v6433_v48 = vadd.f32 %v10909_v24, %v6393_v6  ;;  %v9346_v24 = vld [vmem:[#allocation11 + $0xf0] sm:$0xff]   ;;  %v9360_v3 = vld [vmem:[#allocation11 + $0x128] ss:$0 sps:$4 sm:$0xff]  }
 0x663   :  { %v9513_v9 = vpop.eup %9512 }
 0x664   :  { %9514 = vtanh.f32 %v6433_v48  ;;  %8481 = vmatpush3.bf16.msra.mxu0 %v10099_v1 }
 0x665   :  { %8482 = vmatprep.subr.bf16.mxu0 %v10285_v17 }
 0x668   :  { %8483 = vmatpush3.bf16.msra.mxu0 %v10100_v50 }
 0x669   :  { %8345 = vmatprep.subr.bf16.mxu0 %v9344_v33  ;;  %v7170_v33 = vsel %vm1986_vm3, %v9360_v3, 0 }
 0x66b   :  { %8485 = vmatmul.mubr.msk.bf16.vlgmr.msra.gmra.mxu0 %vm1982_vm4, %v10749_v12  ;;  %v9350_v12 = vld [vmem:[#allocation11 + $0xe0] sm:$0xff]  }
 0x66c   :  { %8346 = vmatpush3.bf16.msra.mxu0 %v9345_v57 }
 0x66d   :  { %8347 = vmatprep.subr.bf16.mxu0 %v9346_v24  ;;  %v9363_v24 = vld [vmem:[#allocation11 + $0x110] sm:$0xff]  }
 0x670   :  { %8348 = vmatpush3.bf16.msra.mxu0 %v9347_v7  ;;  %v9365_v7 = vld [vmem:[#allocation11 + $0x100] sm:$0xff]  }
 0x671   :  { %v9515_v0 = vpop.eup %9514  ;;  %8349 = vmatprep.subr.bf16.mxu0 %v9348_v26 }
 0x672   :  { %v10932_v34 = vmul.f32 %v9515_v0, %v9513_v9 }
 0x674   :  { %8350 = vmatpush3.bf16.msra.mxu0 %v9349_v49 }
 0x675   :  { %8351 = vmatprep.subr.bf16.mxu0 %v9350_v12 }
 0x678   :  { %8352 = vmatpush3.bf16.msra.mxu0 %v9351_v38 }
 0x679   :  { %8353 = vmatprep.subr.bf16.mxu0 %v9352_v28 }
 0x67c   :  { %8354 = vmatpush3.bf16.msra.mxu0 %v9353_v55 }
 0x67d   :  { %8355 = vmatprep.subr.bf16.mxu0 %v9354_v40 }
 0x680   :  { %v6518_v29 = vpop.f32.mrf.mxu1  ;;  %8356 = vmatpush3.bf16.msra.mxu0 %v9355_v43 }
 0x681   :  { %8357 = vmatprep.subr.bf16.mxu0 %v9356_v61 }
 0x682   :  { %v6520_v4 = vpop.f32.mrf.mxu1 }
 0x684   :  { %v6522_v35 = vpop.f32.mrf.mxu1  ;;  %8358 = vmatpush3.bf16.msra.mxu0 %v9357_v37 }
 0x685   :  { %8359 = vmatprep.subr.bf16.mxu0 %v9358_v41 }
 0x686   :  { %v6523_v18 = vpop.f32.mrf.mxu1 }
 0x688   :  { %8360 = vmatpush3.bf16.msra.mxu0 %v9359_v2 }
 0x69b   :  { %v6477_v53 = vpop.f32.mrf.mxu0 }
 0x69c   :  { %v6478_v52 = vadd.f32 %v6477_v53, %v10706_v20 }
 0x69d   :  { %v6479_v32 = vpop.f32.mrf.mxu0 }
 0x69e   :  { %v6480_v59 = vadd.f32 %v6479_v32, %v10710_v31  ;;  %v6519_v60 = vadd.f32 %v6518_v29, %v6478_v52  ;;  %v9362_v29 = vld [vmem:[#allocation11 + $0x118] sm:$0xff]  }
 0x69f   :  { %v6481_v5 = vpop.f32.mrf.mxu0 }
 0x6a0   :  { %v6521_v19 = vadd.f32 %v6520_v4, %v6480_v59  ;;  %v9364_v4 = vld [vmem:[#allocation11 + $0x108] sm:$0xff]  }
 0x6a1   :  { %v6482_v39 = vpop.f32.mrf.mxu0 }
 0x6b3   :  { %v6559_v45 = vpop.f32.mrf.mxu0 }
 0x6b4   :  { %v6560_v16 = vadd.f32 %v6559_v45, %v6519_v60 }
 0x6b5   :  { %v6561_v15 = vpop.f32.mrf.mxu0 }
 0x6b6   :  { %v7966_v63 = vmul.f32 -1.442695, %v6560_v16  ;;  %v6562_v30 = vadd.f32 %v6561_v15, %v6521_v19 }
 0x6b7   :  { %v6563_v8 = vpop.f32.mrf.mxu0 }
 0x6b8   :  { %9516 = vpow2.f32 %v7966_v63  ;;  %v7967_v46 = vmul.f32 -1.442695, %v6562_v30 }
 0x6b9   :  { %v6564_v22 = vpop.f32.mrf.mxu0 }
 0x6ba   :  { %9518 = vpow2.f32 %v7967_v46 }
 0x6bb   :  { %9520 = vtanh.f32 %v10882_v51 }
 0x6c0   :  { %v6600_v44 = vpop.f32.mrf.mxu1 }
 0x6c1   :  { %v6601_v35 = vadd.f32 %v6600_v44, %v10726_v11 }
 0x6c2   :  { %v6602_v14 = vpop.f32.mrf.mxu1 }
 0x6c3   :  { %v6603_v18 = vadd.f32 %v6602_v14, %v10730_v58 }
 0x6c4   :  { %v6604_v47 = vpop.f32.mrf.mxu1 }
 0x6c5   :  { %v9517_v56 = vpop.eup %9516 }
 0x6c6   :  { %v6824_v23 = vadd.f32 1.0, %v9517_v56  ;;  %v6605_v20 = vpop.f32.mrf.mxu1 }
 0x6c7   :  { %v9519_v25 = vpop.eup %9518 }
 0x6c8   :  { %9522 = vrcp.f32 %v6824_v23  ;;  %v6825_v31 = vadd.f32 1.0, %v9519_v25  ;;  %v9521_v54 = vpop.eup %9520 }
 0x6c9   :  { %9524 = vtanh.f32 %v10884_v36  ;;  %v9361_v36 = vld [vmem:[#allocation11 + $0x120] sm:$0xff]  }
 0x6ca   :  { %9526 = vrcp.f32 %v6825_v31 }
 0x6d5   :  { %v9523_v13 = vpop.eup %9522 }
 0x6d6   :  { %v9525_v27 = vpop.eup %9524  ;;  %v6849_v42 = vmul.f32 %v9523_v13, %v9521_v54 }
 0x6d7   :  { %v9527_v6 = vpop.eup %9526 }
 0x6d8   :  { %v6682_v48 = vpop.f32.mrf.mxu1  ;;  %v6850_v1 = vmul.f32 %v9527_v6, %v9525_v27  ;;  %v6854_v0 = vpack.c.bf16 %v6849_v42, %v6849_v42 }
 0x6da   :  { %v6684_v50 = vpop.f32.mrf.mxu1  ;;  %v6855_v9 = vpack.c.bf16 %v6850_v1, %v6850_v1 }
 0x6dc   :  { %v6686_v57 = vpop.f32.mrf.mxu1  ;;  %7204 = vmatprep.mubr.bf16.mxu1 %v6855_v9 }
 0x6dd   :  { %7205 = vmatmul.mubr.bf16.vlgmr.msra.gmra.mxu1 %v6854_v0 }
 0x6de   :  { %v6687_v51 = vpop.f32.mrf.mxu1  ;;  %8489 = vmatpush3.bf16.msra.mxu1 %v7170_v33  ;;  %8500 = vmatprep.mubr.msk.bf16.mxu1 %vm10286_vm2, %v10285_v17 }
 0x6df   :  { %8490 = vmatprep.subr.bf16.mxu1 %v10285_v17  ;;  %v7971_v51 = vld [vmem:[#allocation13] ss:$0 sm:$0xff] }
 0x6e2   :  { %8491 = vmatpush3.bf16.msra.mxu1 %v9361_v36 }
 0x6e3   :  { %8492 = vmatprep.subr.bf16.mxu1 %v10285_v17 }
 0x6e6   :  { %8493 = vmatpush3.bf16.msra.mxu1 %v9362_v29 }
 0x6e7   :  { %8494 = vmatprep.subr.bf16.mxu1 %v10285_v17 }
 0x6ea   :  { %8495 = vmatpush3.bf16.msra.mxu1 %v9363_v24 }
 0x6eb   :  { %8496 = vmatprep.subr.bf16.mxu1 %v10285_v17 }
 0x6ee   :  { %8497 = vmatpush3.bf16.msra.mxu1 %v9364_v4 }
 0x6ef   :  { %8498 = vmatprep.subr.bf16.mxu1 %v10285_v17 }
 0x6f2   :  { %8499 = vmatpush3.bf16.msra.mxu1 %v9365_v7 }
 0x6f3   :  { %v6641_v26 = vpop.f32.mrf.mxu0 }
 0x6f4   :  { %v6642_v49 = vadd.f32 %v6641_v26, %v6601_v35 }
 0x6f5   :  { %v6643_v12 = vpop.f32.mrf.mxu0 }
 0x6f6   :  { %v6683_v38 = vadd.f32 %v6682_v48, %v6642_v49  ;;  %v6644_v28 = vadd.f32 %v6643_v12, %v6603_v18 }
 0x6f7   :  { %v6645_v55 = vpop.f32.mrf.mxu0 }
 0x6f8   :  { %v7968_v40 = vmul.f32 -1.442695, %v6683_v38  ;;  %v6685_v43 = vadd.f32 %v6684_v50, %v6644_v28  ;;  %v8310_v61 = vpop.f32.mrf.mxu1 }
 0x6f9   :  { %v6646_v37 = vpop.f32.mrf.mxu0 }
 0x6fa   :  { %9528 = vpow2.f32 %v7968_v40  ;;  %v7969_v41 = vmul.f32 -1.442695, %v6685_v43  ;;  %v8311_v2 = vpop.f32.mrf.mxu1 }
 0x6fb   :  { %v8312_v44 = vadd.f32 %v8311_v2, %v8310_v61 }
 0x6fc   :  { %9530 = vpow2.f32 %v7969_v41  ;;  %v8313_v17 = vpop.f32.mrf.mxu1 }
 0x6fd   :  { %9532 = vtanh.f32 %v10912_v62 }
 0x6fe   :  { %v8314_v53 = vpop.f32.mrf.mxu1 }
 0x707   :  { %v9529_v11 = vpop.eup %9528 }
 0x708   :  { %v6826_v32 = vadd.f32 1.0, %v9529_v11 }
 0x709   :  { %v9531_v5 = vpop.eup %9530 }
 0x70a   :  { %9534 = vrcp.f32 %v6826_v32  ;;  %v6827_v58 = vadd.f32 1.0, %v9531_v5  ;;  %v9533_v59 = vpop.eup %9532 }
 0x70b   :  { %9536 = vtanh.f32 %v10914_v21 }
 0x70c   :  { %9538 = vrcp.f32 %v6827_v58 }
 0x713   :  { %v8288_v39 = vpop.f32.mrf.mxu0 }
 0x715   :  { %v8289_v52 = vpop.f32.mrf.mxu0 }
 0x716   :  { %v8290_v62 = vadd.f32 %v8289_v52, %v8288_v39 }
 0x717   :  { %v9535_v60 = vpop.eup %9534  ;;  %v8291_v45 = vpop.f32.mrf.mxu0 }
 0x718   :  { %v9537_v16 = vpop.eup %9536  ;;  %v6851_v63 = vmul.f32 %v9535_v60, %v9533_v59  ;;  %v6724_v22 = vadd.f32 %v8290_v62, %v10745_v10 }
 0x719   :  { %v9539_v19 = vpop.eup %9538  ;;  %v8292_v15 = vpop.f32.mrf.mxu0 }
 0x71a   :  { %v6852_v30 = vmul.f32 %v9539_v19, %v9537_v16  ;;  %v6856_v46 = vpack.c.bf16 %v6851_v63, %v6851_v63  ;;  %v6764_v21 = vadd.f32 %v8312_v44, %v6724_v22 }
 0x71c   :  { %v6857_v8 = vpack.c.bf16 %v6852_v30, %v6852_v30 }
 0x71e   :  { %7244 = vmatprep.mubr.bf16.mxu0 %v6857_v8 }
 0x71f   :  { %7245 = vmatmul.mubr.bf16.vlgmr.msra.gmra.mxu0 %v6856_v46 }
 0x72b   :  { %v6803_v14 = vpop.f32.mrf.mxu0 }
 0x72c   :  { %v6804_v47 = vadd.f32 %v6803_v14, %v6764_v21 }
 0x72d   :  { %v8486_v56 = vpop.f32.mrf.mxu0 }
 0x72e   :  { %v7970_v23 = vmul.f32 -1.442695, %v6804_v47 }
 0x72f   :  { %v6806_v20 = vpop.f32.mrf.mxu0 }
 0x730   :  { %9540 = vpow2.f32 %v7970_v23 }
 0x731   :  { %v8487_v25 = vpop.f32.mrf.mxu0  ;;  %9542 = vtanh.f32 %v10932_v34 }
 0x73d   :  { %v9541_v31 = vpop.eup %9540 }
 0x73e   :  { %v6828_v54 = vadd.f32 1.0, %v9541_v31  ;;  %v9543_v13 = vpop.eup %9542 }
 0x740   :  { %9544 = vrcp.f32 %v6828_v54 }
 0x74d   :  { %v9545_v27 = vpop.eup %9544 }
 0x74e   :  { %v6853_v6 = vmul.f32 %v9545_v27, %v9543_v13 }
 0x750   :  { %v6858_v42 = vpack.c.bf16 %v6853_v6, %v6853_v6 }
 0x752   :  { %8501 = vmatmul.mubr.msk.bf16.vlgmr.msra.gmra.mxu1 %vm1982_vm4, %v6858_v42 }
 0x79d   :  { %v8339_v10 = vpop.f32.mrf.mxu1 }
 0x79f   :  { %v8340_v3 = vpop.f32.mrf.mxu1 }
 0x7a0   :  { %v8341_v48 = vadd.f32 %v8340_v3, %v8339_v10 }
 0x7a1   :  { %v8342_v1 = vpop.f32.mrf.mxu1 }
 0x7a2   :  { %v7207_v29 = vadd.f32 %v8341_v48, %v7971_v51 }
 0x7a3   :  { %v8343_v50 = vpop.f32.mrf.mxu1 }
 0x7df   :  { %v8361_v9 = vpop.f32.mrf.mxu0 }
 0x7e1   :  { %v8362_v0 = vpop.f32.mrf.mxu0 }
 0x7e2   :  { %v8363_v36 = vadd.f32 %v8362_v0, %v8361_v9 }
 0x7e3   :  { %v8364_v33 = vpop.f32.mrf.mxu0 }
 0x7e4   :  { %v7247_v34 = vadd.f32 %v8363_v36, %v7207_v29 }
 0x7e5   :  { %v8365_v57 = vpop.f32.mrf.mxu0 }
 0x812   :  { %v7286_v24 = vpop.f32.mrf.mxu1 }
 0x813   :  { %v7287_v4 = vadd.f32 %v7286_v24, %v7247_v34 }
 0x814   :  { %v8502_v7 = vpop.f32.mrf.mxu1 }
 0x815   :  { %7292 = vst [vmem:[#allocation14] sm:$0x3] %v7287_v4 }
 0x816   :  { %v7289_v35 = vpop.f32.mrf.mxu1 }
 0x817   :  { %10252 = shalt.err (!%p10249_p11)
}
 0x818   :  { %7302 = dma.vmem_to_hbm [thread:$0]  %s7300_s6, 32, %s10963_s7, [#allocation4]   ;;  %v8503_v26 = vpop.f32.mrf.mxu1 }
 0x819   :  { %10269 = dma.done.wait [#allocation4], 32  }
 0x81a   :  { %10270 = vsyncadd [#allocation4], 4294967264 }
 0x81b   :  { %7306 = vsyncpa [#allocation3], 1 }
 0x81c   :  { %7307 = vsyncpa [#allocation6], 1 }
 0x81d   :  { %7308 = vsyncpa [#allocation9], 1 }
 0x81e   :  { %7309 = vsyncpa [#allocation12], 1 }
 0x81f   :  { %7310 = vsyncpa [#allocation4], 1 }

</bundles_post_ra>
